<compile_context>
chip_gen: v5e
topology: v5e:2x2
jax: 0.10.0
libtpu: 0.0.40
codegen_flags: <defaults>
</compile_context>

<pallas_src>
import functools

import jax
import jax.numpy as jnp
import numpy as np
from jax.experimental import pallas as pl
from jax.experimental.pallas import tpu as pltpu

# Synthetic stand-ins for property_signatures constants (only shapes matter).
NUM_SINGLE_VALUE_PROPERTIES = 10
NUM_COMPARISON_PROPERTIES = 14
NUM_SIGS = NUM_SINGLE_VALUE_PROPERTIES + NUM_COMPARISON_PROPERTIES   # 24
FEAT_DIM = NUM_SIGS * 5                                              # 120


def _round_up(x, m):
    return ((x + m - 1) // m) * m


# ----------------------------------------------------------------------------
# Kernel
# ----------------------------------------------------------------------------
def _packed_mlp_kernel(sig_ref, exp_ref, mod_ref, w1_ref, b1_ref, w2_ref,
                       b2_ref, o_ref, *, pack, num_sigs):
    """One grid step over `tmp` packed rows (each row = `pack` values).

    sig_ref: (tmp, pack*num_sigs) int8     exp_ref: (num_sigs, FP)     bf16
    mod_ref: (1, FP)              f32      w1_ref : (FP, 2H)           bf16
    b1_ref : (1, 2H)              f32      w2_ref : (pack*2H, pack*H)  bf16 (blk-diag)
    b2_ref : (1, pack*H)          f32      o_ref  : (tmp, pack*H)      out dtype
    """
    cdt = w1_ref.dtype
    two_h = w1_ref.shape[1]

    # int8 -> f32 -> bf16: signature values 0..4 are exact at every step.
    sig = sig_ref[...].astype(jnp.float32).astype(cdt)     # (tmp, pack*num_sigs)
    w2_blk = w2_ref[...]                                    # resident, loaded once

    acc = None
    for j in range(pack):                                   # unrolled, pack <= 4
        # Gather-free one-hot for value block j: replicate each signature over
        # its 5 feature lanes with a tiny shared (num_sigs, FP) 0/1 matmul, then
        # compare against the lane's class id (all exact small integers).
        sig_j = sig[:, j * num_sigs:(j + 1) * num_sigs]     # (tmp, num_sigs)
        rep_j = jnp.dot(sig_j, exp_ref[...],
                        preferred_element_type=jnp.float32)  # (tmp, FP) f32
        x_j = jnp.where(rep_j == mod_ref[...], 1.0, 0.0).astype(cdt)

        # Layer 1: shared (FP, 2H) weight -> no block-diagonal K waste, and the
        # hidden width 2H stays unpadded.  Bias + ReLU in f32 (v5e: no bf16 VPU).
        h_j = jnp.dot(x_j, w1_ref[...],
                      preferred_element_type=jnp.float32) + b1_ref[...]
        h_j = jnp.maximum(h_j, 0.0).astype(cdt)             # (tmp, 2H)

        # Layer 2: block-diagonal -- block j writes only output lanes
        # [j*H, (j+1)*H), so partial results just sum (no lane shuffles).
        w2_j = w2_blk[j * two_h:(j + 1) * two_h, :]         # (2H, pack*H)
        o_j = jnp.dot(h_j, w2_j, preferred_element_type=jnp.float32)
        acc = o_j if acc is None else acc + o_j

    o_ref[...] = (acc + b2_ref[...]).astype(o_ref.dtype)    # lane-dense 128-wide store


# ----------------------------------------------------------------------------
# Host-side parameter preparation (done once)
# ----------------------------------------------------------------------------
def build_packed_params(w1, b1, w2, b2, *, num_sigs=NUM_SIGS,
                        compute_dtype=jnp.bfloat16):
    """Builds the kernel operands: shared (F->128)-padded layer-1 weight, the
    per-value expansion / class-id constants, and the block-diagonal layer-2
    weight that maps value block j straight into its 32 output lanes."""
    w1 = np.asarray(w1, np.float32)                  # (F, 2H)
    b1 = np.asarray(b1, np.float32).reshape(-1)      # (2H,)
    w2 = np.asarray(w2, np.float32)                  # (2H, H)
    b2 = np.asarray(b2, np.float32).reshape(-1)      # (H,)
    feat = num_sigs * 5
    two_h = w1.shape[1]
    hid = w2.shape[1]
    assert w1.shape[0] == feat and w2.shape[0] == two_h

    # `pack` consecutive values per kernel row -> 128-lane output block.
    pack = 128 // hid if (hid <= 128 and 128 % hid == 0) else 1
    fp = _round_up(feat, 128)          # one-hot width per value, padded 120 -> 128

    # Shared layer-1 weight, zero-padded on F only (padded rows never fire).
    w1p = np.zeros((fp, two_h), np.float32)
    w1p[:feat, :] = w1

    # Per-value expansion matrix + class-id row for in-kernel one-hot building.
    expand = np.zeros((num_sigs, fp), np.float32)
    mod_row = np.full((1, fp), -1.0, np.float32)     # -1 never matches a signature
    for i in range(num_sigs):
        expand[i, i * 5:(i + 1) * 5] = 1.0
        mod_row[0, i * 5:(i + 1) * 5] = np.arange(5, dtype=np.float32)

    # Block-diagonal layer 2 (the only block-diagonal weight that remains).
    w2_blk = np.zeros((pack * two_h, pack * hid), np.float32)
    for j in range(pack):
        w2_blk[j * two_h:(j + 1) * two_h, j * hid:(j + 1) * hid] = w2
    b1_row = b1[None, :]                             # (1, 2H)
    b2_row = np.tile(b2, pack)[None, :]              # (1, pack*H)

    return dict(
        num_sigs=num_sigs, feat=feat, hidden=hid, two_h=two_h, pack=pack,
        compute_dtype=compute_dtype,
        # Unpadded originals for the tiny-batch plain-JAX path.
        w1=jnp.asarray(w1), b1=jnp.asarray(b1[None, :]),
        w2=jnp.asarray(w2), b2=jnp.asarray(b2[None, :]),
        # Kernel operands (all VMEM-resident via constant index_maps, <0.1 MiB).
        expand=jnp.asarray(expand, compute_dtype),
        mod_row=jnp.asarray(mod_row, jnp.float32),
        w1p=jnp.asarray(w1p, compute_dtype),
        b1_row=jnp.asarray(b1_row, jnp.float32),
        w2_blk=jnp.asarray(w2_blk, compute_dtype),
        b2_row=jnp.asarray(b2_row, jnp.float32),
    )


# ----------------------------------------------------------------------------
# Reference / tiny-batch path (identical math, plain JAX)
# ----------------------------------------------------------------------------
def _mlp_reference(sigs, params):
    cdt = params['compute_dtype']
    x = jax.nn.one_hot(sigs, 5, dtype=jnp.float32).reshape(sigs.shape[0], -1)
    h = jnp.dot(x.astype(cdt), params['w1'].astype(cdt),
                preferred_element_type=jnp.float32) + params['b1']
    h = jnp.maximum(h, 0.0)
    out = jnp.dot(h.astype(cdt), params['w2'].astype(cdt),
                  preferred_element_type=jnp.float32) + params['b2']
    return out


# ----------------------------------------------------------------------------
# Public entry point
# ----------------------------------------------------------------------------
def prop_sig_value_encoder(sigs, params, *, tm=2048, min_kernel_rows=1024,
                           out_dtype=jnp.bfloat16):
    """sigs: (N, num_sigs) ints in [0, 5).  Returns (N, hidden) embeddings.

    tm = target values per grid step (sweep 2048-4096 for very large N; above
    ~4096 set pltpu.CompilerParams(vmem_limit_bytes=...) for v5e's 16 MiB
    scoped-VMEM default).  out_dtype=bf16 halves output HBM traffic; pass
    jnp.float32 if downstream needs full precision.
    """
    n, num_sigs = sigs.shape
    assert num_sigs == params['num_sigs']
    hid = params['hidden']
    pack = params['pack']

    # Tiny batches: kernel launch + per-grid-step overhead dwarfs the work.
    if n < min_kernel_rows:
        return _mlp_reference(sigs, params).astype(out_dtype)

    # int8 signatures (values 0..4): 4x less streamed input traffic than int32.
    sig8 = sigs if sigs.dtype == jnp.int8 else sigs.astype(jnp.int8)

    # Pad rows only to a multiple of `pack` (<= 3 rows).  Ragged row tiles at
    # the end of the grid are handled natively by Pallas (reads padded, writes
    # clipped) -- no whole-array pad / slice HBM round-trip.
    n_pad = _round_up(n, pack)
    if n_pad != n:
        sig8 = jnp.pad(sig8, ((0, n_pad - n), (0, 0)))
    rows = n_pad // pack
    sig_packed = sig8.reshape(rows, pack * num_sigs)   # free row-major packing

    # Row tile: multiple of 32 (int8 sublane tiling), capped at tm/pack, and
    # shrunk so the grid has >= 2 "parallel" steps (v7x dual-TensorCore).
    tmp_cap = max(32, (tm // pack) // 32 * 32)
    tmp = max(32, min(tmp_cap, _round_up((rows + 1) // 2, 32)))
    grid = (pl.cdiv(rows, tmp),)

    kernel = functools.partial(_packed_mlp_kernel, pack=pack, num_sigs=num_sigs)
    out_packed = pl.pallas_call(
        kernel,
        out_shape=jax.ShapeDtypeStruct((rows, pack * hid), out_dtype),
        grid_spec=pltpu.PrefetchScalarGridSpec(
            num_scalar_prefetch=0,
            grid=grid,
            in_specs=[
                # Streamed signature tile (default double-buffering: per-step
                # DMA is already fully hidden behind the matmuls).
                pl.BlockSpec((tmp, pack * num_sigs), lambda i: (i, 0)),
                # Constant-index operands: VMEM-resident, never re-DMA'd.
                pl.BlockSpec(params['expand'].shape, lambda i: (0, 0)),
                pl.BlockSpec(params['mod_row'].shape, lambda i: (0, 0)),
                pl.BlockSpec(params['w1p'].shape, lambda i: (0, 0)),
                pl.BlockSpec(params['b1_row'].shape, lambda i: (0, 0)),
                pl.BlockSpec(params['w2_blk'].shape, lambda i: (0, 0)),
                pl.BlockSpec(params['b2_row'].shape, lambda i: (0, 0)),
            ],
            out_specs=pl.BlockSpec((tmp, pack * hid), lambda i: (i, 0)),
        ),
        compiler_params=pltpu.CompilerParams(
            dimension_semantics=("parallel",)),     # megacore / v7x dual-TC
    )(sig_packed, params['expand'], params['mod_row'], params['w1p'],
      params['b1_row'], params['w2_blk'], params['b2_row'])

    out = out_packed.reshape(n_pad, hid)            # free contiguous un-packing
    return out if n_pad == n else out[:n]


# ----------------------------------------------------------------------------
# Parameter / input synthesis
# ----------------------------------------------------------------------------
def init_params(key, hidden_size):
    """Deterministic init matching nn.Linear default (uniform +/- 1/sqrt(fan_in))."""
    k1, k2, k3, k4 = jax.random.split(key, 4)
    bound1 = 1.0 / np.sqrt(FEAT_DIM)
    bound2 = 1.0 / np.sqrt(hidden_size * 2)
    w1 = jax.random.uniform(k1, (FEAT_DIM, hidden_size * 2), jnp.float32,
                            -bound1, bound1)
    b1 = jax.random.uniform(k2, (1, hidden_size * 2), jnp.float32, -bound1, bound1)
    w2 = jax.random.uniform(k3, (hidden_size * 2, hidden_size), jnp.float32,
                            -bound2, bound2)
    b2 = jax.random.uniform(k4, (1, hidden_size), jnp.float32, -bound2, bound2)
    return w1, b1, w2, b2


def build_val_sigs(key, num_values):
    """Glue: synthesize integer property signatures in {0..4} as int8.
    # TODO(synk): property_signatures.compute_value_signature is host-side
    # Python over arbitrary program values; signatures are synthesized here."""
    return jax.random.randint(key, (num_values, NUM_SIGS), 0, 5,
                              dtype=jnp.int32).astype(jnp.int8)


# ----------------------------------------------------------------------------
if __name__ == "__main__":
    hidden_size = 32
    key = jax.random.PRNGKey(0)
    k_sig, k_par, k_rag, k_small = jax.random.split(key, 4)

    w1, b1, w2, b2 = init_params(k_par, hidden_size)
    params = build_packed_params(w1, b1, w2, b2, compute_dtype=jnp.bfloat16)

    # Main batch: 4 parallel grid steps at tm=2048 (shards across v7x's 2 TCs).
    n = 8192
    sigs = build_val_sigs(k_sig, n)                              # (8192, 24) int8

    val_embed = prop_sig_value_encoder(sigs, params, tm=2048)
    val_embed = jax.block_until_ready(val_embed)
    assert val_embed.shape == (n, hidden_size)
    assert val_embed.dtype == jnp.bfloat16
    out_f32 = val_embed.astype(jnp.float32)

    # Oracle 1: identical math (same bf16 casts, f32 accumulation) -> tight.
    ref_matched = _mlp_reference(sigs, params)
    assert jnp.allclose(out_f32, ref_matched, atol=1e-2, rtol=1e-2)

    # Oracle 2: full-f32 module math (loose; bf16 weight + output rounding only).
    one_hot = jax.nn.one_hot(sigs, 5, dtype=jnp.float32).reshape(n, FEAT_DIM)
    ref_f32 = jnp.maximum(one_hot @ w1 + b1, 0.0) @ w2 + b2
    assert float(jnp.max(jnp.abs(out_f32 - ref_f32))) < 0.06

    # Ragged batch: N not a multiple of the row tile -> last grid tile is
    # handled by Pallas (no whole-array pad/slice round-trip in the wrapper).
    n_rag = 3000
    sigs_rag = build_val_sigs(k_rag, n_rag)
    out_rag = jax.block_until_ready(
        prop_sig_value_encoder(sigs_rag, params, tm=2048))
    assert out_rag.shape == (n_rag, hidden_size)
    assert jnp.allclose(out_rag.astype(jnp.float32),
                        _mlp_reference(sigs_rag, params), atol=1e-2, rtol=1e-2)

    # Tiny batch: plain-JAX fallback (kernel overhead not worth ~20 KFLOP).
    sigs_small = build_val_sigs(k_small, 8)
    out_small = jax.block_until_ready(prop_sig_value_encoder(sigs_small, params))
    assert out_small.shape == (8, hidden_size)

    print("KERNEL_OK")
</pallas_src>

<mosaic_0001>
module attributes {stable_mosaic.version = 11 : i64} {
  func.func @_packed_mlp_kernel(%arg0: i32, %arg1: memref<512x96xi8, #tpu.memory_space<vmem>>, %arg2: memref<24x128xbf16, #tpu.memory_space<vmem>>, %arg3: memref<1x128xf32, #tpu.memory_space<vmem>>, %arg4: memref<128x64xbf16, #tpu.memory_space<vmem>>, %arg5: memref<1x64xf32, #tpu.memory_space<vmem>>, %arg6: memref<256x128xbf16, #tpu.memory_space<vmem>>, %arg7: memref<1x128xf32, #tpu.memory_space<vmem>>, %arg8: memref<512x128xbf16, #tpu.memory_space<vmem>>) attributes {dimension_semantics = [#tpu.dimension_semantics<parallel>], iteration_bounds = array<i64: 4>, scalar_prefetch = 0 : i64, scratch_operands = 0 : i64, tpu.core_type = #tpu.core_type<tc>, window_params = [{transform_indices = @transform_0, window_bounds = array<i64: 512, 96>}, {pipeline_mode = #tpu.pipeline_mode<synchronous>, transform_indices = @transform_1, window_bounds = array<i64: 24, 128>}, {pipeline_mode = #tpu.pipeline_mode<synchronous>, transform_indices = @transform_2, window_bounds = array<i64: 1, 128>}, {pipeline_mode = #tpu.pipeline_mode<synchronous>, transform_indices = @transform_3, window_bounds = array<i64: 128, 64>}, {pipeline_mode = #tpu.pipeline_mode<synchronous>, transform_indices = @transform_4, window_bounds = array<i64: 1, 64>}, {pipeline_mode = #tpu.pipeline_mode<synchronous>, transform_indices = @transform_5, window_bounds = array<i64: 256, 128>}, {pipeline_mode = #tpu.pipeline_mode<synchronous>, transform_indices = @transform_6, window_bounds = array<i64: 1, 128>}, {transform_indices = @transform_7, window_bounds = array<i64: 512, 128>}]} {
    %c0 = arith.constant 0 : index
    %c0_0 = arith.constant 0 : index
    %0 = vector.load %arg1[%c0, %c0_0] : memref<512x96xi8, #tpu.memory_space<vmem>>, vector<512x96xi8>
    %1 = arith.sitofp %0 : vector<512x96xi8> to vector<512x96xf32>
    %2 = arith.truncf %1 : vector<512x96xf32> to vector<512x96xbf16>
    %c0_1 = arith.constant 0 : index
    %c0_2 = arith.constant 0 : index
    %3 = vector.load %arg6[%c0_1, %c0_2] : memref<256x128xbf16, #tpu.memory_space<vmem>>, vector<256x128xbf16>
    %4 = vector.extract_strided_slice %2 {offsets = [0, 0], sizes = [512, 24], strides = [1, 1]} : vector<512x96xbf16> to vector<512x24xbf16>
    %c0_3 = arith.constant 0 : index
    %c0_4 = arith.constant 0 : index
    %5 = vector.load %arg2[%c0_3, %c0_4] : memref<24x128xbf16, #tpu.memory_space<vmem>>, vector<24x128xbf16>
    %cst = arith.constant dense<0.000000e+00> : vector<512x128xf32>
    %6 = tpu.matmul %4, %5, %cst {dimension_numbers = #tpu.dot_dimension_numbers<[1], [0], [0], [1], [0, 0, 1, 1], [], []>} : vector<512x24xbf16>, vector<24x128xbf16>, vector<512x128xf32> -> vector<512x128xf32>
    %c0_5 = arith.constant 0 : index
    %c0_6 = arith.constant 0 : index
    %7 = vector.load %arg3[%c0_5, %c0_6] : memref<1x128xf32, #tpu.memory_space<vmem>>, vector<1x128xf32>
    %8 = vector.broadcast %7 : vector<1x128xf32> to vector<512x128xf32>
    %9 = arith.cmpf oeq, %6, %8 : vector<512x128xf32>
    %cst_7 = arith.constant 1.000000e+00 : f32
    %cst_8 = arith.constant 0.000000e+00 : f32
    %10 = vector.broadcast %cst_7 : f32 to vector<512x128xf32>
    %11 = vector.broadcast %cst_8 : f32 to vector<512x128xf32>
    %12 = arith.select %9, %10, %11 : vector<512x128xi1>, vector<512x128xf32>
    %13 = arith.truncf %12 : vector<512x128xf32> to vector<512x128xbf16>
    %c0_9 = arith.constant 0 : index
    %c0_10 = arith.constant 0 : index
    %14 = vector.load %arg4[%c0_9, %c0_10] : memref<128x64xbf16, #tpu.memory_space<vmem>>, vector<128x64xbf16>
    %cst_11 = arith.constant dense<0.000000e+00> : vector<512x64xf32>
    %15 = tpu.matmul %13, %14, %cst_11 {dimension_numbers = #tpu.dot_dimension_numbers<[1], [0], [0], [1], [0, 0, 1, 1], [], []>} : vector<512x128xbf16>, vector<128x64xbf16>, vector<512x64xf32> -> vector<512x64xf32>
    %c0_12 = arith.constant 0 : index
    %c0_13 = arith.constant 0 : index
    %16 = vector.load %arg5[%c0_12, %c0_13] : memref<1x64xf32, #tpu.memory_space<vmem>>, vector<1x64xf32>
    %17 = vector.broadcast %16 : vector<1x64xf32> to vector<512x64xf32>
    %18 = arith.addf %15, %17 : vector<512x64xf32>
    %cst_14 = arith.constant 0.000000e+00 : f32
    %19 = vector.broadcast %cst_14 : f32 to vector<512x64xf32>
    %20 = arith.maximumf %18, %19 : vector<512x64xf32>
    %21 = arith.truncf %20 : vector<512x64xf32> to vector<512x64xbf16>
    %22 = vector.extract_strided_slice %3 {offsets = [0, 0], sizes = [64, 128], strides = [1, 1]} : vector<256x128xbf16> to vector<64x128xbf16>
    %cst_15 = arith.constant dense<0.000000e+00> : vector<512x128xf32>
    %23 = tpu.matmul %21, %22, %cst_15 {dimension_numbers = #tpu.dot_dimension_numbers<[1], [0], [0], [1], [0, 0, 1, 1], [], []>} : vector<512x64xbf16>, vector<64x128xbf16>, vector<512x128xf32> -> vector<512x128xf32>
    %24 = vector.extract_strided_slice %2 {offsets = [0, 24], sizes = [512, 24], strides = [1, 1]} : vector<512x96xbf16> to vector<512x24xbf16>
    %c0_16 = arith.constant 0 : index
    %c0_17 = arith.constant 0 : index
    %25 = vector.load %arg2[%c0_16, %c0_17] : memref<24x128xbf16, #tpu.memory_space<vmem>>, vector<24x128xbf16>
    %cst_18 = arith.constant dense<0.000000e+00> : vector<512x128xf32>
    %26 = tpu.matmul %24, %25, %cst_18 {dimension_numbers = #tpu.dot_dimension_numbers<[1], [0], [0], [1], [0, 0, 1, 1], [], []>} : vector<512x24xbf16>, vector<24x128xbf16>, vector<512x128xf32> -> vector<512x128xf32>
    %c0_19 = arith.constant 0 : index
    %c0_20 = arith.constant 0 : index
    %27 = vector.load %arg3[%c0_19, %c0_20] : memref<1x128xf32, #tpu.memory_space<vmem>>, vector<1x128xf32>
    %28 = vector.broadcast %27 : vector<1x128xf32> to vector<512x128xf32>
    %29 = arith.cmpf oeq, %26, %28 : vector<512x128xf32>
    %cst_21 = arith.constant 1.000000e+00 : f32
    %cst_22 = arith.constant 0.000000e+00 : f32
    %30 = vector.broadcast %cst_21 : f32 to vector<512x128xf32>
    %31 = vector.broadcast %cst_22 : f32 to vector<512x128xf32>
    %32 = arith.select %29, %30, %31 : vector<512x128xi1>, vector<512x128xf32>
    %33 = arith.truncf %32 : vector<512x128xf32> to vector<512x128xbf16>
    %c0_23 = arith.constant 0 : index
    %c0_24 = arith.constant 0 : index
    %34 = vector.load %arg4[%c0_23, %c0_24] : memref<128x64xbf16, #tpu.memory_space<vmem>>, vector<128x64xbf16>
    %cst_25 = arith.constant dense<0.000000e+00> : vector<512x64xf32>
    %35 = tpu.matmul %33, %34, %cst_25 {dimension_numbers = #tpu.dot_dimension_numbers<[1], [0], [0], [1], [0, 0, 1, 1], [], []>} : vector<512x128xbf16>, vector<128x64xbf16>, vector<512x64xf32> -> vector<512x64xf32>
    %c0_26 = arith.constant 0 : index
    %c0_27 = arith.constant 0 : index
    %36 = vector.load %arg5[%c0_26, %c0_27] : memref<1x64xf32, #tpu.memory_space<vmem>>, vector<1x64xf32>
    %37 = vector.broadcast %36 : vector<1x64xf32> to vector<512x64xf32>
    %38 = arith.addf %35, %37 : vector<512x64xf32>
    %cst_28 = arith.constant 0.000000e+00 : f32
    %39 = vector.broadcast %cst_28 : f32 to vector<512x64xf32>
    %40 = arith.maximumf %38, %39 : vector<512x64xf32>
    %41 = arith.truncf %40 : vector<512x64xf32> to vector<512x64xbf16>
    %42 = vector.extract_strided_slice %3 {offsets = [64, 0], sizes = [64, 128], strides = [1, 1]} : vector<256x128xbf16> to vector<64x128xbf16>
    %cst_29 = arith.constant dense<0.000000e+00> : vector<512x128xf32>
    %43 = tpu.matmul %41, %42, %cst_29 {dimension_numbers = #tpu.dot_dimension_numbers<[1], [0], [0], [1], [0, 0, 1, 1], [], []>} : vector<512x64xbf16>, vector<64x128xbf16>, vector<512x128xf32> -> vector<512x128xf32>
    %44 = arith.addf %23, %43 : vector<512x128xf32>
    %45 = vector.extract_strided_slice %2 {offsets = [0, 48], sizes = [512, 24], strides = [1, 1]} : vector<512x96xbf16> to vector<512x24xbf16>
    %c0_30 = arith.constant 0 : index
    %c0_31 = arith.constant 0 : index
    %46 = vector.load %arg2[%c0_30, %c0_31] : memref<24x128xbf16, #tpu.memory_space<vmem>>, vector<24x128xbf16>
    %cst_32 = arith.constant dense<0.000000e+00> : vector<512x128xf32>
    %47 = tpu.matmul %45, %46, %cst_32 {dimension_numbers = #tpu.dot_dimension_numbers<[1], [0], [0], [1], [0, 0, 1, 1], [], []>} : vector<512x24xbf16>, vector<24x128xbf16>, vector<512x128xf32> -> vector<512x128xf32>
    %c0_33 = arith.constant 0 : index
    %c0_34 = arith.constant 0 : index
    %48 = vector.load %arg3[%c0_33, %c0_34] : memref<1x128xf32, #tpu.memory_space<vmem>>, vector<1x128xf32>
    %49 = vector.broadcast %48 : vector<1x128xf32> to vector<512x128xf32>
    %50 = arith.cmpf oeq, %47, %49 : vector<512x128xf32>
    %cst_35 = arith.constant 1.000000e+00 : f32
    %cst_36 = arith.constant 0.000000e+00 : f32
    %51 = vector.broadcast %cst_35 : f32 to vector<512x128xf32>
    %52 = vector.broadcast %cst_36 : f32 to vector<512x128xf32>
    %53 = arith.select %50, %51, %52 : vector<512x128xi1>, vector<512x128xf32>
    %54 = arith.truncf %53 : vector<512x128xf32> to vector<512x128xbf16>
    %c0_37 = arith.constant 0 : index
    %c0_38 = arith.constant 0 : index
    %55 = vector.load %arg4[%c0_37, %c0_38] : memref<128x64xbf16, #tpu.memory_space<vmem>>, vector<128x64xbf16>
    %cst_39 = arith.constant dense<0.000000e+00> : vector<512x64xf32>
    %56 = tpu.matmul %54, %55, %cst_39 {dimension_numbers = #tpu.dot_dimension_numbers<[1], [0], [0], [1], [0, 0, 1, 1], [], []>} : vector<512x128xbf16>, vector<128x64xbf16>, vector<512x64xf32> -> vector<512x64xf32>
    %c0_40 = arith.constant 0 : index
    %c0_41 = arith.constant 0 : index
    %57 = vector.load %arg5[%c0_40, %c0_41] : memref<1x64xf32, #tpu.memory_space<vmem>>, vector<1x64xf32>
    %58 = vector.broadcast %57 : vector<1x64xf32> to vector<512x64xf32>
    %59 = arith.addf %56, %58 : vector<512x64xf32>
    %cst_42 = arith.constant 0.000000e+00 : f32
    %60 = vector.broadcast %cst_42 : f32 to vector<512x64xf32>
    %61 = arith.maximumf %59, %60 : vector<512x64xf32>
    %62 = arith.truncf %61 : vector<512x64xf32> to vector<512x64xbf16>
    %63 = vector.extract_strided_slice %3 {offsets = [128, 0], sizes = [64, 128], strides = [1, 1]} : vector<256x128xbf16> to vector<64x128xbf16>
    %cst_43 = arith.constant dense<0.000000e+00> : vector<512x128xf32>
    %64 = tpu.matmul %62, %63, %cst_43 {dimension_numbers = #tpu.dot_dimension_numbers<[1], [0], [0], [1], [0, 0, 1, 1], [], []>} : vector<512x64xbf16>, vector<64x128xbf16>, vector<512x128xf32> -> vector<512x128xf32>
    %65 = arith.addf %44, %64 : vector<512x128xf32>
    %66 = vector.extract_strided_slice %2 {offsets = [0, 72], sizes = [512, 24], strides = [1, 1]} : vector<512x96xbf16> to vector<512x24xbf16>
    %c0_44 = arith.constant 0 : index
    %c0_45 = arith.constant 0 : index
    %67 = vector.load %arg2[%c0_44, %c0_45] : memref<24x128xbf16, #tpu.memory_space<vmem>>, vector<24x128xbf16>
    %cst_46 = arith.constant dense<0.000000e+00> : vector<512x128xf32>
    %68 = tpu.matmul %66, %67, %cst_46 {dimension_numbers = #tpu.dot_dimension_numbers<[1], [0], [0], [1], [0, 0, 1, 1], [], []>} : vector<512x24xbf16>, vector<24x128xbf16>, vector<512x128xf32> -> vector<512x128xf32>
    %c0_47 = arith.constant 0 : index
    %c0_48 = arith.constant 0 : index
    %69 = vector.load %arg3[%c0_47, %c0_48] : memref<1x128xf32, #tpu.memory_space<vmem>>, vector<1x128xf32>
    %70 = vector.broadcast %69 : vector<1x128xf32> to vector<512x128xf32>
    %71 = arith.cmpf oeq, %68, %70 : vector<512x128xf32>
    %cst_49 = arith.constant 1.000000e+00 : f32
    %cst_50 = arith.constant 0.000000e+00 : f32
    %72 = vector.broadcast %cst_49 : f32 to vector<512x128xf32>
    %73 = vector.broadcast %cst_50 : f32 to vector<512x128xf32>
    %74 = arith.select %71, %72, %73 : vector<512x128xi1>, vector<512x128xf32>
    %75 = arith.truncf %74 : vector<512x128xf32> to vector<512x128xbf16>
    %c0_51 = arith.constant 0 : index
    %c0_52 = arith.constant 0 : index
    %76 = vector.load %arg4[%c0_51, %c0_52] : memref<128x64xbf16, #tpu.memory_space<vmem>>, vector<128x64xbf16>
    %cst_53 = arith.constant dense<0.000000e+00> : vector<512x64xf32>
    %77 = tpu.matmul %75, %76, %cst_53 {dimension_numbers = #tpu.dot_dimension_numbers<[1], [0], [0], [1], [0, 0, 1, 1], [], []>} : vector<512x128xbf16>, vector<128x64xbf16>, vector<512x64xf32> -> vector<512x64xf32>
    %c0_54 = arith.constant 0 : index
    %c0_55 = arith.constant 0 : index
    %78 = vector.load %arg5[%c0_54, %c0_55] : memref<1x64xf32, #tpu.memory_space<vmem>>, vector<1x64xf32>
    %79 = vector.broadcast %78 : vector<1x64xf32> to vector<512x64xf32>
    %80 = arith.addf %77, %79 : vector<512x64xf32>
    %cst_56 = arith.constant 0.000000e+00 : f32
    %81 = vector.broadcast %cst_56 : f32 to vector<512x64xf32>
    %82 = arith.maximumf %80, %81 : vector<512x64xf32>
    %83 = arith.truncf %82 : vector<512x64xf32> to vector<512x64xbf16>
    %84 = vector.extract_strided_slice %3 {offsets = [192, 0], sizes = [64, 128], strides = [1, 1]} : vector<256x128xbf16> to vector<64x128xbf16>
    %cst_57 = arith.constant dense<0.000000e+00> : vector<512x128xf32>
    %85 = tpu.matmul %83, %84, %cst_57 {dimension_numbers = #tpu.dot_dimension_numbers<[1], [0], [0], [1], [0, 0, 1, 1], [], []>} : vector<512x64xbf16>, vector<64x128xbf16>, vector<512x128xf32> -> vector<512x128xf32>
    %86 = arith.addf %65, %85 : vector<512x128xf32>
    %c0_58 = arith.constant 0 : index
    %c0_59 = arith.constant 0 : index
    %87 = vector.load %arg7[%c0_58, %c0_59] : memref<1x128xf32, #tpu.memory_space<vmem>>, vector<1x128xf32>
    %88 = vector.broadcast %87 : vector<1x128xf32> to vector<512x128xf32>
    %89 = arith.addf %86, %88 : vector<512x128xf32>
    %90 = arith.truncf %89 : vector<512x128xf32> to vector<512x128xbf16>
    %c0_60 = arith.constant 0 : index
    %c0_61 = arith.constant 0 : index
    %91 = vector.load %arg8[%c0_60, %c0_61] : memref<512x128xbf16, #tpu.memory_space<vmem>>, vector<512x128xbf16>
    tpu.vector_store %arg8[%c0_60, %c0_61], %90 {strides = array<i32>} : memref<512x128xbf16, #tpu.memory_space<vmem>>, vector<512x128xbf16>,
    return
  }
  func.func @transform_0(%arg0: i32) -> (i32, i32) {
    %c0_i32 = arith.constant 0 : i32
    %c0_i32_0 = arith.constant 0 : i32
    return %arg0, %c0_i32 : i32, i32
  }
  func.func @transform_1(%arg0: i32) -> (i32, i32) {
    %c0_i32 = arith.constant 0 : i32
    %c0_i32_0 = arith.constant 0 : i32
    %c0_i32_1 = arith.constant 0 : i32
    return %c0_i32, %c0_i32_0 : i32, i32
  }
  func.func @transform_2(%arg0: i32) -> (i32, i32) {
    %c0_i32 = arith.constant 0 : i32
    %c0_i32_0 = arith.constant 0 : i32
    %c0_i32_1 = arith.constant 0 : i32
    return %c0_i32, %c0_i32_0 : i32, i32
  }
  func.func @transform_3(%arg0: i32) -> (i32, i32) {
    %c0_i32 = arith.constant 0 : i32
    %c0_i32_0 = arith.constant 0 : i32
    %c0_i32_1 = arith.constant 0 : i32
    return %c0_i32, %c0_i32_0 : i32, i32
  }
  func.func @transform_4(%arg0: i32) -> (i32, i32) {
    %c0_i32 = arith.constant 0 : i32
    %c0_i32_0 = arith.constant 0 : i32
    %c0_i32_1 = arith.constant 0 : i32
    return %c0_i32, %c0_i32_0 : i32, i32
  }
  func.func @transform_5(%arg0: i32) -> (i32, i32) {
    %c0_i32 = arith.constant 0 : i32
    %c0_i32_0 = arith.constant 0 : i32
    %c0_i32_1 = arith.constant 0 : i32
    return %c0_i32, %c0_i32_0 : i32, i32
  }
  func.func @transform_6(%arg0: i32) -> (i32, i32) {
    %c0_i32 = arith.constant 0 : i32
    %c0_i32_0 = arith.constant 0 : i32
    %c0_i32_1 = arith.constant 0 : i32
    return %c0_i32, %c0_i32_0 : i32, i32
  }
  func.func @transform_7(%arg0: i32) -> (i32, i32) {
    %c0_i32 = arith.constant 0 : i32
    %c0_i32_0 = arith.constant 0 : i32
    return %arg0, %c0_i32 : i32, i32
  }
}

</mosaic_0001>

<bundles_post_ra>
// kernel: tpu_custom_call.1
= control target key start
LH: loop header
LB: loop body
LE: loop exit
PB: predicated region body
PF: predicated region fallthrough
CT: control target
= control target key end

     0   :  { %12 = vsyncpa [#allocation3], 0  ;;  %s8866_s0 = inlined_call_operand.vmem [shape: s8[2048,96], index: 0, kind: input, shape index: {}]   ;;  %s8867_s1 = inlined_call_operand.vmem [shape: bf16[24,128], index: 1, kind: input, shape index: {}]   ;;  %s8868_s2 = inlined_call_operand.vmem [shape: f32[1,128], index: 2, kind: input, shape index: {}]   ;;  %s8869_s3 = inlined_call_operand.vmem [shape: bf16[128,64], index: 3, kind: input, shape index: {}]   ;;  %s8870_s4 = inlined_call_operand.vmem [shape: f32[1,64], index: 4, kind: input, shape index: {}]   ;;  %s8871_s5 = inlined_call_operand.vmem [shape: bf16[256,128], index: 5, kind: input, shape index: {}]   ;;  %s8872_s6 = inlined_call_operand.vmem [shape: f32[1,128], index: 6, kind: input, shape index: {}]   ;;  %s8873_s7 = inlined_call_operand.hbm [shape: bf16[2048,128], index: 7, kind: output, shape index: {}]  }
   0x1   :  { %14 = vsyncpa [#allocation3 + $0x1], 0  ;;  %s6290_s24 = smov 0   ;;  %s6292_s25 = smov 0  }
   0x2   :  { %s6294_s26 = smov 0   ;;  %s6296_s27 = smov 0  }
   0x3 LB: > { %s6311_s28 = sadd.s32 4294967295, %s6242_s27   ;;  %s5281_s29 = sadd.s32 4294967294, %s6242_s27   ;;  %s6242_s27 = sphi %s6296_s27, %s9146_s27   ;;  %s6238_s26 = sphi %s6294_s26, %s9145_s26   ;;  %s6234_s25 = sphi %s6292_s25, %s9144_s25   ;;  %s6230_s24 = sphi %s6290_s24, %s9143_s24  }
   0x4   : > { %s6315_s30 = sadd.s32 1, %s6242_s27   ;;  %s179_s8 = sadd.s32 1, %s6238_s26 }
   0x5   : > { %s176_s9 = ssub.s32 %s6242_s27, %s6315_s30  ;;  %p189_p0 = scmp.ne.s32.totalorder %s6238_s26, %s6234_s25 }
   0x6   : > { %p177_p1 = scmp.eq.s32.totalorder %s176_s9, 0  ;;  %p190_p2 = scmp.eq.s32.totalorder %s6311_s28, 3 }
   0x7   : > { %p195_p3 = scmp.ne.s32.totalorder %s6234_s25, %s6230_s24  ;;  %p196_p4 = scmp.eq.s32.totalorder %s5281_s29, 3 }
   0x8   : > { %s6326_s10 = scalar_select %p177_p1, %s6238_s26, %s179_s8  }
   0x9   : > { %p6328_p5 = por %p190_p2, %p189_p0  ;;  %p6332_p6 = por %p196_p4, %p195_p3 }
   0xa   : > { %p5284_p7 = scmp.ge.s32.totalorder %s6242_s27, 1  ;;  %p241_p8 = scmp.lt.s32.totalorder %s6242_s27, 5 }
   0xc   : > { %p242_p9 = pnand %p5284_p7, %p241_p8 }
   0xe   : > { %245 = sbr.rel (%p242_p9) target bundleno = 2103 (0x837), region = 48 }
  0x13   : > { %v523_v0 = vld [vmem:[%s8867_s1 + $0x8] sm:$0xf]  ;;  %s5286_s15 = sshll.u32 %s6311_s28, 4  ;;  %vm790_vm0 = vcmask 1043456   ;;  %v6348_v4 = vld [vmem:[%s8867_s1] sm:$0xff]  ;;  %vm693_vm1 = vcmask 195584  }
  0x14   : > { %v689_v1 = vunpack.c.l.b16 %v523_v0  ;;  %p274_p10 = scmp.lt.s32.totalorder %s5286_s15, 63  ;;  %s6244_s22 = smov 104  }
  0x15   : > { %s6246_s8 = smov 80   ;;  %s6247_s20 = smov 56  }
  0x16   : > { %v691_v2 = vpack.c.b16 %v689_v1, %v689_v1  ;;  %s9148_s15 = smov (!%p274_p10, %s5286_s15), 63  ;;  %s6200_s18 = scalar_lea.hbm %s8873_s7, 1024 }
  0x17   : > { %s5287_s16 = sshll.u32 %s9148_s15, 3 }
  0x18   : > { %v6342_v3 = vsel %vm790_vm0, %v691_v2, 0  ;;  %s6353_s21 = scalar_lea.vmem %s8866_s0, %s5287_s16 }
  0x19   : > { %800 = vmatpush.bf16.msra.mxu0 %v6342_v3  ;;  %1626 = vmatpush.bf16.msra.mxu2 %v6342_v3  ;;  %v281_v5 = vld [vmem:[%s6353_s21] sm:$0xff]  ;;  %v282_v6 = vld [vmem:[%s6353_s21 + $0x8] sm:$0xff]  ;;  %v283_v43 = vld [vmem:[%s6353_s21 + $0x10] sm:$0xff] }
  0x1a   : > { %v297_v7 = vunpack.c.0.s8 %v281_v5  ;;  %v298_v8 = vunpack.c.1.s8 %v281_v5  ;;  %v299_v9 = vunpack.c.2.s8 %v281_v5  ;;  %v300_v10 = vunpack.c.3.s8 %v281_v5  ;;  %v284_v62 = vld [vmem:[%s6353_s21 + $0x18] sm:$0xff] }
  0x1b   : > { %v301_v11 = vunpack.c.0.s8 %v282_v6  ;;  %v302_v12 = vunpack.c.1.s8 %v282_v6  ;;  %v303_v33 = vunpack.c.2.s8 %v282_v6  ;;  %v304_v34 = vunpack.c.3.s8 %v282_v6 }
  0x1c   : > { %v361_v13 = vcvt.s32.f32 %v297_v7  ;;  %v362_v14 = vcvt.s32.f32 %v298_v8  ;;  %v363_v15 = vcvt.s32.f32 %v299_v9  ;;  %v364_v16 = vcvt.s32.f32 %v300_v10 }
  0x1d   : > { %801 = vmatpush.bf16.msra.mxu0 %v6348_v4  ;;  %1627 = vmatpush.bf16.msra.mxu2 %v6348_v4  ;;  %v365_v17 = vcvt.s32.f32 %v301_v11  ;;  %v366_v18 = vcvt.s32.f32 %v302_v12  ;;  %v367_v35 = vcvt.s32.f32 %v303_v33  ;;  %v368_v36 = vcvt.s32.f32 %v304_v34 }
  0x1e   : > { %v425_v19 = vpack.c.bf16 %v361_v13, %v361_v13  ;;  %v426_v20 = vpack.c.bf16 %v362_v14, %v362_v14  ;;  %v427_v25 = vpack.c.bf16 %v363_v15, %v363_v15  ;;  %v428_v26 = vpack.c.bf16 %v364_v16, %v364_v16 }
  0x1f   : > { %v429_v21 = vpack.c.bf16 %v365_v17, %v365_v17  ;;  %v430_v22 = vpack.c.bf16 %v366_v18, %v366_v18  ;;  %v431_v38 = vpack.c.bf16 %v367_v35, %v367_v35  ;;  %v432_v39 = vpack.c.bf16 %v368_v36, %v368_v36 }
  0x20   : > { %v588_v23 = vunpack.c.l.b16 %v425_v19  ;;  %v589_v24 = vunpack.c.l.b16 %v426_v20  ;;  %v590_v31 = vunpack.c.l.b16 %v427_v25  ;;  %v591_v32 = vunpack.c.l.b16 %v428_v26  ;;  %v5908_v19 = vld [vmem:[%s8871_s5 + $0x18] sm:$0xff]  ;;  %v285_v20 = vld [vmem:[%s6353_s21 + $0x20] sm:$0xff] }
  0x21   : > { %v592_v27 = vunpack.c.l.b16 %v429_v21  ;;  %v593_v28 = vunpack.c.l.b16 %v430_v22  ;;  %v594_v40 = vunpack.c.l.b16 %v431_v38  ;;  %v595_v41 = vunpack.c.l.b16 %v432_v39  ;;  %2628 = vmatpush.bf16.msrb.mxu2 %v5908_v19 }
  0x22   : > { %v6360_v29 = vpack.c.b16 %v589_v24, %v588_v23  ;;  %v6370_v37 = vpack.c.b16 %v591_v32, %v590_v31  ;;  %v305_v44 = vunpack.c.0.s8 %v283_v43  ;;  %v306_v45 = vunpack.c.1.s8 %v283_v43 }
  0x23   : > { %v6362_v30 = vpack.c.b16 %v593_v28, %v592_v27  ;;  %v6374_v42 = vpack.c.b16 %v595_v41, %v594_v40  ;;  %v307_v53 = vunpack.c.2.s8 %v283_v43  ;;  %v308_v54 = vunpack.c.3.s8 %v283_v43 }
  0x24   : > { %1460 = vrot.lane.b32.xlu0 %v6360_v29, %s6244_s22  ;;  %5292 = vmatmul.msk.bf16.vlgmr.msra.gmra.mxu0 %vm693_vm1, %v6360_v29  ;;  %v369_v46 = vcvt.s32.f32 %v305_v44  ;;  %v370_v47 = vcvt.s32.f32 %v306_v45  ;;  %v309_v63 = vunpack.c.0.s8 %v284_v62  ;;  %v310_v0 = vunpack.c.1.s8 %v284_v62  ;;  %v286_v44 = vld [vmem:[%s6353_s21 + $0x28] sm:$0xff] }
  0x25   : > { %1464 = vrot.lane.b32.xlu1 %v6362_v30, %s6244_s22  ;;  %v371_v55 = vcvt.s32.f32 %v307_v53  ;;  %v372_v56 = vcvt.s32.f32 %v308_v54  ;;  %v311_v10 = vunpack.c.2.s8 %v284_v62  ;;  %v312_v11 = vunpack.c.3.s8 %v284_v62 }
  0x26   : > { %v433_v48 = vpack.c.bf16 %v369_v46, %v369_v46  ;;  %v434_v49 = vpack.c.bf16 %v370_v47, %v370_v47  ;;  %v373_v1 = vcvt.s32.f32 %v309_v63  ;;  %v374_v2 = vcvt.s32.f32 %v310_v0 }
  0x27   : > { %v435_v57 = vpack.c.bf16 %v371_v55, %v371_v55  ;;  %v436_v58 = vpack.c.bf16 %v372_v56, %v372_v56  ;;  %v375_v12 = vcvt.s32.f32 %v311_v10  ;;  %v376_v13 = vcvt.s32.f32 %v312_v11  ;;  %v287_v10 = vld [vmem:[%s6353_s21 + $0x30] sm:$0xff] }
  0x28   : > { %v596_v50 = vunpack.c.l.b16 %v433_v48  ;;  %v597_v51 = vunpack.c.l.b16 %v434_v49  ;;  %v437_v5 = vpack.c.bf16 %v373_v1, %v373_v1  ;;  %v438_v6 = vpack.c.bf16 %v374_v2, %v374_v2 }
  0x29   : > { %v598_v59 = vunpack.c.l.b16 %v435_v57  ;;  %v599_v60 = vunpack.c.l.b16 %v436_v58  ;;  %v439_v14 = vpack.c.bf16 %v375_v12, %v375_v12  ;;  %v440_v15 = vpack.c.bf16 %v376_v13, %v376_v13 }
  0x2a   : > { %v6381_v52 = vpack.c.b16 %v597_v51, %v596_v50  ;;  %v600_v7 = vunpack.c.l.b16 %v437_v5  ;;  %v601_v8 = vunpack.c.l.b16 %v438_v6  ;;  %v313_v21 = vunpack.c.0.s8 %v285_v20 }
  0x2b   : > { %v6387_v61 = vpack.c.b16 %v599_v60, %v598_v59  ;;  %v602_v16 = vunpack.c.l.b16 %v439_v14  ;;  %v603_v17 = vunpack.c.l.b16 %v440_v15  ;;  %v314_v22 = vunpack.c.1.s8 %v285_v20 }
  0x2c   : > { %1462 = vrot.lane.b32.xlu0 %v6370_v37, %s6244_s22  ;;  %1468 = vrot.lane.b32.xlu2 %v6381_v52, %s6244_s22  ;;  %v6394_v9 = vpack.c.b16 %v601_v8, %v600_v7  ;;  %v377_v23 = vcvt.s32.f32 %v313_v21  ;;  %v315_v32 = vunpack.c.2.s8 %v285_v20  ;;  %v316_v33 = vunpack.c.3.s8 %v285_v20 }
  0x2d   : > { %1466 = vrot.lane.b32.xlu1 %v6374_v42, %s6244_s22  ;;  %v6400_v18 = vpack.c.b16 %v603_v17, %v602_v16  ;;  %v378_v24 = vcvt.s32.f32 %v314_v22  ;;  %v317_v45 = vunpack.c.0.s8 %v286_v44  ;;  %v318_v46 = vunpack.c.1.s8 %v286_v44 }
  0x2e   : > { %v441_v25 = vpack.c.bf16 %v377_v23, %v377_v23  ;;  %v379_v34 = vcvt.s32.f32 %v315_v32  ;;  %v380_v35 = vcvt.s32.f32 %v316_v33  ;;  %v319_v58 = vunpack.c.2.s8 %v286_v44 }
  0x2f   : > { %v442_v26 = vpack.c.bf16 %v378_v24, %v378_v24  ;;  %v381_v47 = vcvt.s32.f32 %v317_v45  ;;  %v382_v48 = vcvt.s32.f32 %v318_v46  ;;  %v320_v59 = vunpack.c.3.s8 %v286_v44  ;;  %v6461_v24 = vld [vmem:[%s8869_s3 + $0x38] sm:$0xff]  ;;  %v6490_v44 = vld [vmem:[%s8869_s3 + $0x20] sm:$0xff] }
  0x30   : > { %v604_v27 = vunpack.c.l.b16 %v441_v25  ;;  %v443_v36 = vpack.c.bf16 %v379_v34, %v379_v34  ;;  %v444_v38 = vpack.c.bf16 %v380_v35, %v380_v35  ;;  %v383_v60 = vcvt.s32.f32 %v319_v58  ;;  %1195 = vmatpush.bf16.msra.mxu1 %v6461_v24  ;;  %1949 = vmatpush.bf16.msra.mxu3 %v6461_v24  ;;  %v6500_v46 = vld [vmem:[%s8869_s3 + $0x18] sm:$0xff] }
  0x31   : > { %v605_v28 = vunpack.c.l.b16 %v442_v26  ;;  %v445_v49 = vpack.c.bf16 %v381_v47, %v381_v47  ;;  %v446_v50 = vpack.c.bf16 %v382_v48, %v382_v48  ;;  %v384_v62 = vcvt.s32.f32 %v320_v59  ;;  %v288_v47 = vld [vmem:[%s6353_s21 + $0x38] sm:$0xff] }
  0x32   : > { %v606_v39 = vunpack.c.l.b16 %v443_v36  ;;  %v607_v40 = vunpack.c.l.b16 %v444_v38  ;;  %v447_v63 = vpack.c.bf16 %v383_v60, %v383_v60  ;;  %v321_v11 = vunpack.c.0.s8 %v287_v10 }
  0x33   : > { %v6410_v31 = vpack.c.b16 %v605_v28, %v604_v27  ;;  %v608_v51 = vunpack.c.l.b16 %v445_v49  ;;  %v609_v53 = vunpack.c.l.b16 %v446_v50  ;;  %v448_v0 = vpack.c.bf16 %v384_v62, %v384_v62  ;;  %v6467_v27 = vld [vmem:[%s8869_s3 + $0x30] sm:$0xff] }
  0x34   : > { %5293 = vmatmul.msk.bf16.gmra.mxu0 %vm693_vm1, %v6370_v37  ;;  %1470 = vrot.lane.b32.xlu2 %v6387_v61, %s6244_s22  ;;  %v6416_v41 = vpack.c.b16 %v607_v40, %v606_v39  ;;  %v610_v1 = vunpack.c.l.b16 %v447_v63  ;;  %v322_v12 = vunpack.c.1.s8 %v287_v10  ;;  %v385_v13 = vcvt.s32.f32 %v321_v11  ;;  %v6477_v39 = vld [vmem:[%s8869_s3 + $0x28] sm:$0xff]  ;;  %v6507_v50 = vld [vmem:[%s8869_s3 + $0x10] sm:$0xff] }
  0x35   : > { %1472 = vrot.lane.b32.xlu0 %v6394_v9, %s6244_s22  ;;  %1474 = vrot.lane.b32.xlu1 %v6400_v18, %s6244_s22  ;;  %v6426_v55 = vpack.c.b16 %v609_v53, %v608_v51  ;;  %v611_v2 = vunpack.c.l.b16 %v448_v0  ;;  %v323_v25 = vunpack.c.2.s8 %v287_v10  ;;  %v324_v26 = vunpack.c.3.s8 %v287_v10  ;;  %v6517_v63 = vld [vmem:[%s8869_s3 + $0x8] sm:$0xff]  ;;  %v6522_v0 = vld [vmem:[%s8868_s2] ss:$0 sm:$0xff] }
  0x36   : > { %v386_v14 = vcvt.s32.f32 %v322_v12  ;;  %v449_v15 = vpack.c.bf16 %v385_v13, %v385_v13  ;;  %1196 = vmatpush.bf16.msra.mxu1 %v6467_v27  ;;  %1950 = vmatpush.bf16.msra.mxu3 %v6467_v27  ;;  %v325_v48 = vunpack.c.0.s8 %v288_v47  ;;  %v326_v49 = vunpack.c.1.s8 %v288_v47 }
  0x37   : > { %v6437_v6 = vpack.c.b16 %v611_v2, %v610_v1  ;;  %v387_v28 = vcvt.s32.f32 %v323_v25  ;;  %v388_v32 = vcvt.s32.f32 %v324_v26  ;;  %v8876_v11 = vmov 1.0|1.0   ;;  %v289_v26 = vld [vmem:[%s6353_s21 + $0x40] sm:$0xff] }
  0x38   : > { %v450_v16 = vpack.c.bf16 %v386_v14, %v386_v14  ;;  %v612_v17 = vunpack.c.l.b16 %v449_v15  ;;  %v389_v51 = vcvt.s32.f32 %v325_v48  ;;  %v390_v53 = vcvt.s32.f32 %v326_v49 }
  0x39   : > { %v451_v33 = vpack.c.bf16 %v387_v28, %v387_v28  ;;  %v452_v34 = vpack.c.bf16 %v388_v32, %v388_v32  ;;  %v327_v12 = vunpack.c.2.s8 %v288_v47  ;;  %v328_v13 = vunpack.c.3.s8 %v288_v47 }
  0x3a   : > { %v613_v19 = vunpack.c.l.b16 %v450_v16  ;;  %1197 = vmatpush.bf16.msra.mxu1 %v6477_v39  ;;  %1951 = vmatpush.bf16.msra.mxu3 %v6477_v39  ;;  %v454_v58 = vpack.c.bf16 %v390_v53, %v390_v53  ;;  %v332_v47 = vunpack.c.3.s8 %v289_v26 }
  0x3b   : > { %v614_v35 = vunpack.c.l.b16 %v451_v33  ;;  %v615_v36 = vunpack.c.l.b16 %v452_v34 }
  0x3c   : > { %1476 = vrot.lane.b32.xlu2 %v6410_v31, %s6244_s22  ;;  %v6449_v21 = vpack.c.b16 %v613_v19, %v612_v17  ;;  %v617_v60 = vunpack.c.l.b16 %v454_v58  ;;  %v396_v49 = vcvt.s32.f32 %v332_v47  ;;  %v291_v47 = vld [vmem:[%s6353_s21 + $0x50] sm:$0xff] }
  0x3d   : > { %1478 = vrot.lane.b32.xlu0 %v6416_v41, %s6244_s22  ;;  %1480 = vrot.lane.b32.xlu1 %v6426_v55, %s6244_s22  ;;  %v6479_v40 = vpack.c.b16 %v615_v36, %v614_v35 }
  0x3e   : > { %1198 = vmatpush.bf16.msra.mxu1 %v6490_v44  ;;  %1952 = vmatpush.bf16.msra.mxu3 %v6490_v44 }
  0x3f   : > { %8905 = vst [vmem:[#allocation5_spill] sm:$0xff] %v6479_v40 }
  0x42   : > { %1199 = vmatpush.bf16.msra.mxu1 %v6500_v46  ;;  %1953 = vmatpush.bf16.msra.mxu3 %v6500_v46 }
  0x44   : > { %5294 = vmatmul.msk.bf16.gmra.mxu0 %vm693_vm1, %v6362_v30  ;;  %1482 = vrot.lane.b32.xlu2 %v6437_v6, %s6244_s22 }
  0x45   : > { %1484 = vrot.lane.b32.xlu0 %v6449_v21, %s6244_s22  ;;  %1486 = vrot.lane.b32.xlu1 %v6479_v40, %s6244_s22 }
  0x46   : > { %1200 = vmatpush.bf16.msra.mxu1 %v6507_v50  ;;  %1954 = vmatpush.bf16.msra.mxu3 %v6507_v50 }
  0x4a   : > { %1201 = vmatpush.bf16.msra.mxu1 %v6517_v63  ;;  %1955 = vmatpush.bf16.msra.mxu3 %v6517_v63 }
  0x54   : > { %5295 = vmatmul.msk.bf16.gmra.mxu0 %vm693_vm1, %v6374_v42 }
  0x64   : > { %5296 = vmatmul.msk.bf16.gmra.mxu0 %vm693_vm1, %v6381_v52 }
  0x74   : > { %5297 = vmatmul.msk.bf16.gmra.mxu0 %vm693_vm1, %v6387_v61 }
  0x84   : > { %5298 = vmatmul.msk.bf16.gmra.mxu0 %vm693_vm1, %v6394_v9 }
  0x94   : > { %5299 = vmatmul.msk.bf16.gmra.mxu0 %vm693_vm1, %v6400_v18 }
  0x96   : > { %v1461_v43 = vpop.permute.xlu0 %1460 }
  0x97   : > { %5420 = vmatmul.msk.bf16.vlgmr.msra.gmra.mxu2 %vm693_vm1, %v1461_v43  ;;  %v1465_v7 = vpop.permute.xlu1 %1464  ;;  %v1469_v43 = vpop.permute.xlu2 %1468 }
  0x9e   : > { %v1463_v56 = vpop.permute.xlu0 %1462 }
  0x9f   : > { %v1467_v22 = vpop.permute.xlu1 %1466  ;;  %v1471_v2 = vpop.permute.xlu2 %1470 }
  0xa1   : > { %v6424_v54 = vpop.f32.mrf.mxu0 }
  0xa2   : > { %vm967_vm2 = vcmp.eq.f32.partialorder %v6424_v54, %v6522_v0  ;;  %v391_v54 = vcvt.s32.f32 %v327_v12 }
  0xa4   : > { %5300 = vmatmul.msk.bf16.gmra.mxu0 %vm693_vm1, %v6410_v31  ;;  %v455_v14 = vpack.c.bf16 %v391_v54, %v391_v54 }
  0xa6   : > { %v618_v16 = vunpack.c.l.b16 %v455_v14 }
  0xa7   : > { %5421 = vmatmul.msk.bf16.gmra.mxu2 %vm693_vm1, %v1463_v56  ;;  %v453_v56 = vpack.c.bf16 %v389_v51, %v389_v51  ;;  %v1477_v58 = vpop.permute.xlu2 %1476 }
  0xa9   : > { %v6433_v57 = vpop.f32.mrf.mxu0  ;;  %v616_v59 = vunpack.c.l.b16 %v453_v56 }
  0xaa   : > { %vm968_vm3 = vcmp.eq.f32.partialorder %v6433_v57, %v6522_v0  ;;  %v392_v57 = vcvt.s32.f32 %v328_v13 }
  0xab   : > { %v6524_v1 = vpack.c.b16 %v617_v60, %v616_v59  ;;  %vm5356_vm4 = vmpackc.low %vm968_vm3, %vm967_vm2  ;;  %v290_v60 = vld [vmem:[%s6353_s21 + $0x48] sm:$0xff] }
  0xac   : > { %v456_v15 = vpack.c.bf16 %v392_v57, %v392_v57 }
  0xad   : > { %1488 = vrot.lane.b32.xlu2 %v6524_v1, %s6244_s22 }
  0xae   : > { %v619_v17 = vunpack.c.l.b16 %v456_v15 }
  0xb1   : > { %v6435_v5 = vpop.f32.mrf.mxu0 }
  0xb2   : > { %vm969_vm5 = vcmp.eq.f32.partialorder %v6435_v5, %v6522_v0  ;;  %v329_v5 = vunpack.c.0.s8 %v289_v26 }
  0xb4   : > { %5301 = vmatmul.msk.bf16.gmra.mxu0 %vm693_vm1, %v6416_v41 }
  0xb7   : > { %5422 = vmatmul.msk.bf16.gmra.mxu2 %vm693_vm1, %v1465_v7  ;;  %v6532_v7 = vld [vmem:[%s8869_s3] sm:$0xff] }
  0xb8   : > { %1202 = vmatpush.bf16.msra.mxu1 %v6532_v7  ;;  %1956 = vmatpush.bf16.msra.mxu3 %v6532_v7 }
  0xb9   : > { %v6444_v8 = vpop.f32.mrf.mxu0 }
  0xba   : > { %vm970_vm6 = vcmp.eq.f32.partialorder %v6444_v8, %v6522_v0  ;;  %v393_v8 = vcvt.s32.f32 %v329_v5  ;;  %v336_v5 = vunpack.c.3.s8 %v290_v60 }
  0xbb   : > { %5357 = vmatmul.msk.bf16.vlgmr.msra.gmra.mxu1 %vm5356_vm4, %v8876_v11  ;;  %vm5358_vm7 = vmpackc.low %vm970_vm6, %vm969_vm5 }
  0xbc   : > { %2959 = vmatpush.bf16.msrb.mxu1 %v6342_v3  ;;  %3282 = vmatpush.bf16.msrb.mxu3 %v6461_v24  ;;  %v457_v32 = vpack.c.bf16 %v393_v8, %v393_v8  ;;  %v400_v8 = vcvt.s32.f32 %v336_v5 }
  0xbe   : > { %v620_v34 = vunpack.c.l.b16 %v457_v32  ;;  %v464_v32 = vpack.c.bf16 %v400_v8, %v400_v8 }
  0xc0   : > { %2960 = vmatpush.bf16.msrb.mxu1 %v6348_v4  ;;  %3283 = vmatpush.bf16.msrb.mxu3 %v6467_v27  ;;  %v1473_v4 = vpop.permute.xlu0 %1472 }
  0xc1   : > { %v6447_v20 = vpop.f32.mrf.mxu0 }
  0xc2   : > { %vm971_vm8 = vcmp.eq.f32.partialorder %v6447_v20, %v6522_v0 }
  0xc4   : > { %5302 = vmatmul.msk.bf16.gmra.mxu0 %vm693_vm1, %v6426_v55  ;;  %4389 = vmatpush.bf16.msra.mxu1 %v6461_v24  ;;  %v5907_v24 = vld [vmem:[%s8871_s5 + $0x10] sm:$0xff] }
  0xc5   : > { %3284 = vmatpush.bf16.msrb.mxu3 %v6477_v39  ;;  %2629 = vmatpush.bf16.msrb.mxu2 %v5907_v24 }
  0xc7   : > { %5423 = vmatmul.msk.bf16.gmra.mxu2 %vm693_vm1, %v1467_v22  ;;  %v6555_v22 = vpack.c.b16 %v619_v17, %v618_v16 }
  0xc8   : > { %4390 = vmatpush.bf16.msra.mxu1 %v6467_v27  ;;  %v330_v27 = vunpack.c.1.s8 %v289_v26  ;;  %v1479_v17 = vpop.permute.xlu0 %1478 }
  0xc9   : > { %v6456_v23 = vpop.f32.mrf.mxu0  ;;  %1490 = vrot.lane.b32.xlu0 %v6555_v22, %s6244_s22  ;;  %3285 = vmatpush.bf16.msrb.mxu3 %v6490_v44 }
  0xca   : > { %v394_v28 = vcvt.s32.f32 %v330_v27  ;;  %vm972_vm9 = vcmp.eq.f32.partialorder %v6456_v23, %v6522_v0 }
  0xcb   : > { %5359 = vmatmul.msk.bf16.gmra.mxu1 %vm5358_vm7, %v8876_v11  ;;  %vm5360_vm10 = vmpackc.low %vm972_vm9, %vm971_vm8 }
  0xcc   : > { %4391 = vmatpush.bf16.msra.mxu1 %v6477_v39  ;;  %v458_v33 = vpack.c.bf16 %v394_v28, %v394_v28 }
  0xcd   : > { %3286 = vmatpush.bf16.msrb.mxu3 %v6500_v46 }
  0xce   : > { %v621_v35 = vunpack.c.l.b16 %v458_v33 }
  0xd0   : > { %4392 = vmatpush.bf16.msra.mxu1 %v6490_v44  ;;  %v6583_v39 = vpack.c.b16 %v621_v35, %v620_v34  ;;  %v627_v34 = vunpack.c.l.b16 %v464_v32 }
  0xd1   : > { %v6472_v38 = vpop.f32.mrf.mxu0  ;;  %3287 = vmatpush.bf16.msrb.mxu3 %v6507_v50 }
  0xd2   : > { %8906 = vst [vmem:[#allocation6_spill] sm:$0xff] %v6583_v39  ;;  %1492 = vrot.lane.b32.xlu1 %v6583_v39, %s6244_s22  ;;  %vm973_vm11 = vcmp.eq.f32.partialorder %v6472_v38, %v6522_v0 }
  0xd4   : > { %5303 = vmatmul.msk.bf16.gmra.mxu0 %vm693_vm1, %v6437_v6  ;;  %4393 = vmatpush.bf16.msra.mxu1 %v6500_v46  ;;  %v331_v46 = vunpack.c.2.s8 %v289_v26  ;;  %v335_v26 = vunpack.c.2.s8 %v290_v60 }
  0xd5   : > { %3288 = vmatpush.bf16.msrb.mxu3 %v6517_v63 }
  0xd6   : > { %v395_v48 = vcvt.s32.f32 %v331_v46  ;;  %v399_v27 = vcvt.s32.f32 %v335_v26 }
  0xd7   : > { %5424 = vmatmul.msk.bf16.gmra.mxu2 %vm693_vm1, %v1469_v43  ;;  %v1475_v43 = vpop.permute.xlu1 %1474 }
  0xd8   : > { %4394 = vmatpush.bf16.msra.mxu1 %v6507_v50  ;;  %v459_v20 = vpack.c.bf16 %v395_v48, %v395_v48  ;;  %v460_v50 = vpack.c.bf16 %v396_v49, %v396_v49  ;;  %v463_v28 = vpack.c.bf16 %v399_v27, %v399_v27  ;;  %v337_v49 = vunpack.c.0.s8 %v291_v47  ;;  %v1485_v27 = vpop.permute.xlu0 %1484 }
  0xd9   : > { %v6495_v45 = vpop.f32.mrf.mxu0  ;;  %3289 = vmatpush.bf16.msrb.mxu3 %v6532_v7 }
  0xda   : > { %v622_v51 = vunpack.c.l.b16 %v459_v20  ;;  %v623_v23 = vunpack.c.l.b16 %v460_v50  ;;  %vm974_vm12 = vcmp.eq.f32.partialorder %v6495_v45, %v6522_v0  ;;  %v626_v33 = vunpack.c.l.b16 %v463_v28  ;;  %v292_v28 = vld [vmem:[%s6353_s21 + $0x58] sm:$0xff] }
  0xdb   : > { %5361 = vmatmul.msk.bf16.gmra.mxu1 %vm5360_vm10, %v8876_v11  ;;  %vm5362_vm13 = vmpackc.low %vm974_vm12, %vm973_vm11  ;;  %v338_v20 = vunpack.c.1.s8 %v291_v47  ;;  %v401_v50 = vcvt.s32.f32 %v337_v49 }
  0xdc   : > { %4395 = vmatpush.bf16.msra.mxu1 %v6517_v63  ;;  %v6603_v56 = vpack.c.b16 %v623_v23, %v622_v51  ;;  %v6639_v35 = vpack.c.b16 %v627_v34, %v626_v33  ;;  %v341_v33 = vunpack.c.0.s8 %v292_v28  ;;  %v342_v34 = vunpack.c.1.s8 %v292_v28 }
  0xdd   : > { %v402_v51 = vcvt.s32.f32 %v338_v20  ;;  %v465_v23 = vpack.c.bf16 %v401_v50, %v401_v50 }
  0xde   : > { %8907 = vst [vmem:[#allocation7_spill] sm:$0xff] %v6603_v56  ;;  %1494 = vrot.lane.b32.xlu2 %v6603_v56, %s6244_s22  ;;  %1498 = vrot.lane.b32.xlu1 %v6639_v35, %s6244_s22 }
  0xdf   : > { %8909 = vst [vmem:[#allocation9_spill] sm:$0xff] %v6639_v35 }
  0xe0   : > { %4396 = vmatpush.bf16.msra.mxu1 %v6532_v7  ;;  %v334_v7 = vunpack.c.1.s8 %v290_v60 }
  0xe1   : > { %v6512_v62 = vpop.f32.mrf.mxu0 }
  0xe2   : > { %v398_v13 = vcvt.s32.f32 %v334_v7  ;;  %vm975_vm2 = vcmp.eq.f32.partialorder %v6512_v62, %v6522_v0  ;;  %v1483_v7 = vpop.permute.xlu2 %1482 }
  0xe4   : > { %5304 = vmatmul.msk.bf16.gmra.mxu0 %vm693_vm1, %v6449_v21  ;;  %v462_v57 = vpack.c.bf16 %v398_v13, %v398_v13 }
  0xe6   : > { %v625_v38 = vunpack.c.l.b16 %v462_v57  ;;  %v340_v57 = vunpack.c.3.s8 %v291_v47 }
  0xe7   : > { %5425 = vmatmul.msk.bf16.gmra.mxu2 %vm693_vm1, %v1471_v2  ;;  %v333_v2 = vunpack.c.0.s8 %v290_v60  ;;  %v628_v60 = vunpack.c.l.b16 %v465_v23 }
  0xe9   : > { %v6544_v10 = vpop.f32.mrf.mxu0  ;;  %v397_v12 = vcvt.s32.f32 %v333_v2 }
  0xea   : > { %vm976_vm3 = vcmp.eq.f32.partialorder %v6544_v10, %v6522_v0 }
  0xeb   : > { %5363 = vmatmul.msk.bf16.gmra.mxu1 %vm5362_vm13, %v8876_v11  ;;  %v461_v54 = vpack.c.bf16 %v397_v12, %v397_v12  ;;  %vm5364_vm4 = vmpackc.low %vm976_vm3, %vm975_vm2 }
  0xed   : > { %v624_v14 = vunpack.c.l.b16 %v461_v54  ;;  %v339_v54 = vunpack.c.2.s8 %v291_v47 }
  0xef   : > { %v6620_v16 = vpack.c.b16 %v625_v38, %v624_v14  ;;  %v403_v14 = vcvt.s32.f32 %v339_v54  ;;  %v404_v38 = vcvt.s32.f32 %v340_v57 }
  0xf1   : > { %v6552_v19 = vpop.f32.mrf.mxu0  ;;  %8908 = vst [vmem:[#allocation8_spill] sm:$0xff] %v6620_v16  ;;  %1496 = vrot.lane.b32.xlu0 %v6620_v16, %s6244_s22 }
  0xf2   : > { %vm977_vm8 = vcmp.eq.f32.partialorder %v6552_v19, %v6522_v0 }
  0xf4   : > { %5305 = vmatmul.msk.bf16.gmra.mxu0 %vm693_vm1, %v6479_v40 }
  0xf7   : > { %5426 = vmatmul.msk.bf16.gmra.mxu2 %vm693_vm1, %v1473_v4 }
  0xf9   : > { %v6572_v25 = vpop.f32.mrf.mxu0 }
  0xfa   : > { %vm978_vm9 = vcmp.eq.f32.partialorder %v6572_v25, %v6522_v0 }
  0xfb   : > { %5365 = vmatmul.msk.bf16.gmra.mxu1 %vm5364_vm4, %v8876_v11  ;;  %vm5366_vm10 = vmpackc.low %vm978_vm9, %vm977_vm8 }
 0x101   : > { %v6580_v36 = vpop.f32.mrf.mxu0 }
 0x104   : > { %5306 = vmatmul.msk.bf16.gmra.mxu0 %vm693_vm1, %v6524_v1 }
 0x107   : > { %5427 = vmatmul.msk.bf16.gmra.mxu2 %vm693_vm1, %v1475_v43  ;;  %v1481_v43 = vpop.permute.xlu1 %1480 }
 0x109   : > { %v6597_v44 = vpop.f32.mrf.mxu0 }
 0x10b   : > { %5367 = vmatmul.msk.bf16.gmra.mxu1 %vm5366_vm10, %v8876_v11 }
 0x111   : > { %v6601_v53 = vpop.f32.mrf.mxu0 }
 0x114   : > { %5307 = vmatmul.msk.bf16.gmra.mxu0 %vm693_vm1, %v6555_v22 }
 0x117   : > { %5428 = vmatmul.msk.bf16.gmra.mxu2 %vm693_vm1, %v1477_v58  ;;  %v466_v58 = vpack.c.bf16 %v402_v51, %v402_v51  ;;  %v1487_v51 = vpop.permute.xlu1 %1486 }
 0x119   : > { %v6614_v59 = vpop.f32.mrf.mxu0  ;;  %v629_v19 = vunpack.c.l.b16 %v466_v58  ;;  %v6715_v58 = vld [vmem:[%s8870_s4] ss:$0 sm:$0xff] }
 0x11a   : > { %v1629_v63 = vpop.f32.mrf.mxu2 }
 0x11b   : > { %vm1789_vm14 = vcmp.eq.f32.partialorder %v1629_v63, %v6522_v0  ;;  %v6659_v2 = vpack.c.b16 %v629_v19, %v628_v60 }
 0x11d   : > { %8910 = vst [vmem:[#allocation10_spill] sm:$0xff] %v6659_v2  ;;  %1500 = vrot.lane.b32.xlu2 %v6659_v2, %s6244_s22 }
 0x121   : > { %v6618_v15 = vpop.f32.mrf.mxu0 }
 0x122   : > { %v1631_v45 = vpop.f32.mrf.mxu2 }
 0x123   : > { %vm1790_vm15 = vcmp.eq.f32.partialorder %v1631_v45, %v6522_v0  ;;  %v467_v45 = vpack.c.bf16 %v403_v14, %v403_v14 }
 0x124   : > { %5308 = vmatmul.msk.bf16.gmra.mxu0 %vm693_vm1, %v6583_v39  ;;  %vm5452_vm0 = vmpackc.low %vm1790_vm15, %vm1789_vm14  ;;  %vm979_vm14 = vcmp.eq.f32.partialorder %v6580_v36, %v6522_v0  ;;  %vm980_vm15 = vcmp.eq.f32.partialorder %v6597_v44, %v6522_v0 }
 0x125   : > { %5453 = vmatmul.msk.bf16.vlgmr.msra.gmra.mxu3 %vm5452_vm0, %v8876_v11  ;;  %vm5368_vm0 = vmpackc.low %vm980_vm15, %vm979_vm14 }
 0x126   : > { %5369 = vmatmul.msk.bf16.gmra.mxu1 %vm5368_vm0, %v8876_v11 }
 0x127   : > { %5429 = vmatmul.msk.bf16.gmra.mxu2 %vm693_vm1, %v1479_v17  ;;  %v468_v17 = vpack.c.bf16 %v404_v38, %v404_v38 }
 0x129   : > { %v6634_v4 = vpop.f32.mrf.mxu0  ;;  %v631_v26 = vunpack.c.l.b16 %v468_v17 }
 0x12a   : > { %v1634_v24 = vpop.f32.mrf.mxu2 }
 0x12b   : > { %vm1791_vm5 = vcmp.eq.f32.partialorder %v1634_v24, %v6522_v0  ;;  %v630_v24 = vunpack.c.l.b16 %v467_v45 }
 0x12d   : > { %v6678_v5 = vpack.c.b16 %v631_v26, %v630_v24 }
 0x12f   : > { %8911 = vst [vmem:[#allocation11_spill] sm:$0xff] %v6678_v5  ;;  %1502 = vrot.lane.b32.xlu0 %v6678_v5, %s6244_s22 }
 0x131   : > { %v6637_v62 = vpop.f32.mrf.mxu0 }
 0x132   : > { %v1636_v10 = vpop.f32.mrf.mxu2 }
 0x133   : > { %vm1792_vm6 = vcmp.eq.f32.partialorder %v1636_v10, %v6522_v0  ;;  %v405_v10 = vcvt.s32.f32 %v341_v33 }
 0x134   : > { %5309 = vmatmul.msk.bf16.gmra.mxu0 %vm693_vm1, %v6603_v56  ;;  %vm5454_vm7 = vmpackc.low %vm1792_vm6, %vm1791_vm5  ;;  %vm981_vm5 = vcmp.eq.f32.partialorder %v6601_v53, %v6522_v0  ;;  %vm982_vm6 = vcmp.eq.f32.partialorder %v6614_v59, %v6522_v0 }
 0x135   : > { %5455 = vmatmul.msk.bf16.gmra.mxu3 %vm5454_vm7, %v8876_v11  ;;  %vm5370_vm7 = vmpackc.low %vm982_vm6, %vm981_vm5  ;;  %v469_v47 = vpack.c.bf16 %v405_v10, %v405_v10  ;;  %v5906_v10 = vld [vmem:[%s8871_s5 + $0x8] sm:$0xff] }
 0x136   : > { %5371 = vmatmul.msk.bf16.gmra.mxu1 %vm5370_vm7, %v8876_v11  ;;  %2630 = vmatpush.bf16.msrb.mxu2 %v5906_v10 }
 0x137   : > { %5430 = vmatmul.msk.bf16.gmra.mxu2 %vm693_vm1, %v1481_v43  ;;  %v406_v43 = vcvt.s32.f32 %v342_v34  ;;  %v632_v49 = vunpack.c.l.b16 %v469_v47  ;;  %v293_v47 = vld [vmem:[%s6353_s21 + $0x60] sm:$0xff] }
 0x138   : > { %v1204_v23 = vpop.f32.mrf.mxu1 }
 0x139   : > { %v6653_v46 = vpop.f32.mrf.mxu0 }
 0x13a   : > { %v1639_v48 = vpop.f32.mrf.mxu2 }
 0x13b   : > { %vm1793_vm11 = vcmp.eq.f32.partialorder %v1639_v48, %v6522_v0  ;;  %v470_v48 = vpack.c.bf16 %v406_v43, %v406_v43 }
 0x13d   : > { %v633_v53 = vunpack.c.l.b16 %v470_v48 }
 0x13f   : > { %v6698_v50 = vpack.c.b16 %v633_v53, %v632_v49  ;;  %v345_v49 = vunpack.c.0.s8 %v293_v47 }
 0x140   : > { %v1206_v14 = vpop.f32.mrf.mxu1 }
 0x141   : > { %v6657_v63 = vpop.f32.mrf.mxu0  ;;  %8912 = vst [vmem:[#allocation12_spill] sm:$0xff] %v6698_v50  ;;  %1504 = vrot.lane.b32.xlu1 %v6698_v50, %s6244_s22  ;;  %v1207_v45 = vadd.f32 %v6715_v58, %v1206_v14 }
 0x142   : > { %v1641_v25 = vpop.f32.mrf.mxu2 }
 0x143   : > { %vm1794_vm12 = vcmp.eq.f32.partialorder %v1641_v25, %v6522_v0  ;;  %v343_v25 = vunpack.c.2.s8 %v292_v28 }
 0x144   : > { %5310 = vmatmul.msk.bf16.gmra.mxu0 %vm693_vm1, %v6620_v16  ;;  %vm5456_vm13 = vmpackc.low %vm1794_vm12, %vm1793_vm11  ;;  %vm983_vm11 = vcmp.eq.f32.partialorder %v6618_v15, %v6522_v0  ;;  %vm984_vm12 = vcmp.eq.f32.partialorder %v6634_v4, %v6522_v0  ;;  %v1205_v15 = vadd.f32 %v6715_v58, %v1204_v23 }
 0x145   : > { %5457 = vmatmul.msk.bf16.gmra.mxu3 %vm5456_vm13, %v8876_v11  ;;  %vm5372_vm13 = vmpackc.low %vm984_vm12, %vm983_vm11 }
 0x146   : > { %5373 = vmatmul.msk.bf16.gmra.mxu1 %vm5372_vm13, %v8876_v11  ;;  %v1364_v38 = vmax.f32 %v1205_v15, 0.0 }
 0x147   : > { %5431 = vmatmul.msk.bf16.gmra.mxu2 %vm693_vm1, %v1483_v7  ;;  %v344_v7 = vunpack.c.3.s8 %v292_v28  ;;  %v1489_v28 = vpop.permute.xlu2 %1488 }
 0x148   : > { %v1209_v34 = vpop.f32.mrf.mxu1 }
 0x149   : > { %v6673_v12 = vpop.f32.mrf.mxu0  ;;  %v408_v4 = vcvt.s32.f32 %v344_v7  ;;  %v1210_v53 = vadd.f32 %v6715_v58, %v1209_v34 }
 0x14a   : > { %v1644_v13 = vpop.f32.mrf.mxu2 }
 0x14b   : > { %vm1795_vm2 = vcmp.eq.f32.partialorder %v1644_v13, %v6522_v0  ;;  %v407_v13 = vcvt.s32.f32 %v343_v25  ;;  %v472_v57 = vpack.c.bf16 %v408_v4, %v408_v4  ;;  %v1366_v25 = vmax.f32 %v1210_v53, 0.0 }
 0x14d   : > { %v471_v54 = vpack.c.bf16 %v407_v13, %v407_v13  ;;  %v635_v24 = vunpack.c.l.b16 %v472_v57 }
 0x14f   : > { %v634_v17 = vunpack.c.l.b16 %v471_v54 }
 0x151   : > { %v6676_v36 = vpop.f32.mrf.mxu0 }
 0x152   : > { %v1646_v44 = vpop.f32.mrf.mxu2 }
 0x153   : > { %vm1796_vm3 = vcmp.eq.f32.partialorder %v1646_v44, %v6522_v0 }
 0x154   : > { %5311 = vmatmul.msk.bf16.gmra.mxu0 %vm693_vm1, %v6639_v35  ;;  %vm5458_vm4 = vmpackc.low %vm1796_vm3, %vm1795_vm2  ;;  %vm985_vm2 = vcmp.eq.f32.partialorder %v6637_v62, %v6522_v0  ;;  %vm986_vm3 = vcmp.eq.f32.partialorder %v6653_v46, %v6522_v0  ;;  %v346_v62 = vunpack.c.1.s8 %v293_v47  ;;  %v409_v46 = vcvt.s32.f32 %v345_v49 }
 0x155   : > { %5459 = vmatmul.msk.bf16.gmra.mxu3 %vm5458_vm4, %v8876_v11  ;;  %vm5374_vm4 = vmpackc.low %vm986_vm3, %vm985_vm2 }
 0x156   : > { %5375 = vmatmul.msk.bf16.gmra.mxu1 %vm5374_vm4, %v8876_v11 }
 0x157   : > { %5432 = vmatmul.msk.bf16.gmra.mxu2 %vm693_vm1, %v1485_v27  ;;  %v1365_v27 = vmax.f32 %v1207_v45, 0.0 }
 0x159   : > { %v6692_v8 = vpop.f32.mrf.mxu0  ;;  %v6730_v33 = vpack.c.bf16 %v1365_v27, %v1364_v38  ;;  %v1491_v38 = vpop.permute.xlu0 %1490  ;;  %v347_v27 = vunpack.c.2.s8 %v293_v47 }
 0x15a   : > { %v1649_v32 = vpop.f32.mrf.mxu2 }
 0x15b   : > { %vm1797_vm8 = vcmp.eq.f32.partialorder %v1649_v32, %v6522_v0  ;;  %v6724_v32 = vpack.c.b16 %v635_v24, %v634_v17  ;;  %8914 = vst [vmem:[#allocation14_spill] sm:$0xff] %v6730_v33  ;;  %v411_v10 = vcvt.s32.f32 %v347_v27 }
 0x15d   : > { %8913 = vst [vmem:[#allocation13_spill] sm:$0xff] %v6724_v32  ;;  %1506 = vrot.lane.b32.xlu2 %v6724_v32, %s6244_s22  ;;  %v475_v49 = vpack.c.bf16 %v411_v10, %v411_v10 }
 0x161   : > { %v6696_v20 = vpop.f32.mrf.mxu0 }
 0x162   : > { %v1651_v59 = vpop.f32.mrf.mxu2  ;;  %vm991_vm4 = vcmp.eq.f32.partialorder %v6696_v20, %v6522_v0 }
 0x163   : > { %vm1798_vm9 = vcmp.eq.f32.partialorder %v1651_v59, %v6522_v0  ;;  %v410_v59 = vcvt.s32.f32 %v346_v62 }
 0x164   : > { %5312 = vmatmul.msk.bf16.gmra.mxu0 %vm693_vm1, %v6659_v2  ;;  %vm5460_vm10 = vmpackc.low %vm1798_vm9, %vm1797_vm8  ;;  %vm987_vm8 = vcmp.eq.f32.partialorder %v6657_v63, %v6522_v0  ;;  %vm988_vm9 = vcmp.eq.f32.partialorder %v6673_v12, %v6522_v0 }
 0x165   : > { %5461 = vmatmul.msk.bf16.gmra.mxu3 %vm5460_vm10, %v8876_v11  ;;  %v474_v23 = vpack.c.bf16 %v410_v59, %v410_v59  ;;  %vm5376_vm10 = vmpackc.low %vm988_vm9, %vm987_vm8 }
 0x166   : > { %5377 = vmatmul.msk.bf16.gmra.mxu1 %vm5376_vm10, %v8876_v11 }
 0x167   : > { %5433 = vmatmul.msk.bf16.gmra.mxu2 %vm693_vm1, %v1487_v51  ;;  %v473_v51 = vpack.c.bf16 %v409_v46, %v409_v46  ;;  %v637_v13 = vunpack.c.l.b16 %v474_v23  ;;  %v638_v46 = vunpack.c.l.b16 %v475_v49 }
 0x169   : > { %v6717_v60 = vpop.f32.mrf.mxu0  ;;  %v636_v15 = vunpack.c.l.b16 %v473_v51 }
 0x16a   : > { %v1654_v19 = vpop.f32.mrf.mxu2 }
 0x16b   : > { %vm1799_vm14 = vcmp.eq.f32.partialorder %v1654_v19, %v6522_v0  ;;  %v1211_v19 = vpop.f32.mrf.mxu1  ;;  %v6751_v14 = vpack.c.b16 %v637_v13, %v636_v15  ;;  %v5912_v15 = vld [vmem:[%s8871_s5 + $0x38] sm:$0xff] }
 0x16c   : > { %v1212_v7 = vadd.f32 %v6715_v58, %v1211_v19  ;;  %2339 = vmatpush.bf16.msrb.mxu0 %v5912_v15 }
 0x16d   : > { %8915 = vst [vmem:[#allocation15_spill] sm:$0xff] %v6751_v14  ;;  %1508 = vrot.lane.b32.xlu0 %v6751_v14, %s6244_s22 }
 0x16e   : > { %v1367_v57 = vmax.f32 %v1212_v7, 0.0 }
 0x170   : > { %v6757_v45 = vpack.c.bf16 %v1367_v57, %v1366_v25  ;;  %v294_v57 = vld [vmem:[%s6353_s21 + $0x68] sm:$0xff] }
 0x171   : > { %v6722_v26 = vpop.f32.mrf.mxu0 }
 0x172   : > { %v1656_v44 = vpop.f32.mrf.mxu2  ;;  %8916 = vst [vmem:[#allocation16_spill] sm:$0xff] %v6757_v45  ;;  %vm993_vm10 = vcmp.eq.f32.partialorder %v6722_v26, %v6522_v0 }
 0x173   : > { %vm1800_vm15 = vcmp.eq.f32.partialorder %v1656_v44, %v6522_v0  ;;  %v1214_v17 = vpop.f32.mrf.mxu1 }
 0x174   : > { %5313 = vmatmul.msk.bf16.gmra.mxu0 %vm693_vm1, %v6678_v5  ;;  %vm5462_vm0 = vmpackc.low %vm1800_vm15, %vm1799_vm14  ;;  %v1215_v34 = vadd.f32 %v6715_v58, %v1214_v17  ;;  %vm989_vm14 = vcmp.eq.f32.partialorder %v6676_v36, %v6522_v0  ;;  %vm990_vm15 = vcmp.eq.f32.partialorder %v6692_v8, %v6522_v0  ;;  %v349_v17 = vunpack.c.0.s8 %v294_v57 }
 0x175   : > { %5463 = vmatmul.msk.bf16.gmra.mxu3 %vm5462_vm0, %v8876_v11  ;;  %vm5378_vm0 = vmpackc.low %vm990_vm15, %vm989_vm14 }
 0x176   : > { %v1368_v53 = vmax.f32 %v1215_v34, 0.0  ;;  %5379 = vmatmul.msk.bf16.gmra.mxu1 %vm5378_vm0, %v8876_v11 }
 0x177   : > { %5434 = vmatmul.msk.bf16.gmra.mxu2 %vm693_vm1, %v1489_v28  ;;  %v348_v28 = vunpack.c.3.s8 %v293_v47  ;;  %v1493_v47 = vpop.permute.xlu1 %1492 }
 0x179   : > { %v6743_v43 = vpop.f32.mrf.mxu0 }
 0x17a   : > { %v1659_v48 = vpop.f32.mrf.mxu2 }
 0x17b   : > { %vm1801_vm5 = vcmp.eq.f32.partialorder %v1659_v48, %v6522_v0  ;;  %v412_v48 = vcvt.s32.f32 %v348_v28  ;;  %v1216_v62 = vpop.f32.mrf.mxu1  ;;  %v413_v28 = vcvt.s32.f32 %v349_v17 }
 0x17c   : > { %v1217_v12 = vadd.f32 %v6715_v58, %v1216_v62 }
 0x17d   : > { %v476_v63 = vpack.c.bf16 %v412_v48, %v412_v48  ;;  %v477_v34 = vpack.c.bf16 %v413_v28, %v413_v28 }
 0x17e   : > { %v1369_v19 = vmax.f32 %v1217_v12, 0.0 }
 0x17f   : > { %v639_v59 = vunpack.c.l.b16 %v476_v63  ;;  %v640_v63 = vunpack.c.l.b16 %v477_v34 }
 0x180   : > { %v6780_v7 = vpack.c.bf16 %v1369_v19, %v1368_v53 }
 0x181   : > { %v6749_v4 = vpop.f32.mrf.mxu0  ;;  %v6774_v25 = vpack.c.b16 %v639_v59, %v638_v46 }
 0x182   : > { %v1661_v54 = vpop.f32.mrf.mxu2  ;;  %8918 = vst [vmem:[#allocation18_spill] sm:$0xff] %v6780_v7  ;;  %vm995_vm0 = vcmp.eq.f32.partialorder %v6749_v4, %v6522_v0 }
 0x183   : > { %vm1802_vm6 = vcmp.eq.f32.partialorder %v1661_v54, %v6522_v0  ;;  %8917 = vst [vmem:[#allocation17_spill] sm:$0xff] %v6774_v25  ;;  %1510 = vrot.lane.b32.xlu1 %v6774_v25, %s6244_s22  ;;  %v1219_v13 = vpop.f32.mrf.mxu1 }
 0x184   : > { %5314 = vmatmul.msk.bf16.gmra.mxu0 %vm693_vm1, %v6698_v50  ;;  %vm5464_vm7 = vmpackc.low %vm1802_vm6, %vm1801_vm5  ;;  %v1220_v27 = vadd.f32 %v6715_v58, %v1219_v13  ;;  %vm992_vm5 = vcmp.eq.f32.partialorder %v6717_v60, %v6522_v0  ;;  %v351_v13 = vunpack.c.2.s8 %v294_v57 }
 0x185   : > { %5465 = vmatmul.msk.bf16.gmra.mxu3 %vm5464_vm7, %v8876_v11  ;;  %vm5380_vm7 = vmpackc.low %vm992_vm5, %vm991_vm4 }
 0x186   : > { %v1370_v48 = vmax.f32 %v1220_v27, 0.0  ;;  %5381 = vmatmul.msk.bf16.gmra.mxu1 %vm5380_vm7, %v8876_v11 }
 0x187   : > { %5435 = vmatmul.msk.bf16.gmra.mxu2 %vm693_vm1, %v1491_v38 }
 0x189   : > { %v6767_v24 = vpop.f32.mrf.mxu0 }
 0x18a   : > { %v1664_v44 = vpop.f32.mrf.mxu2 }
 0x18b   : > { %vm1803_vm11 = vcmp.eq.f32.partialorder %v1664_v44, %v6522_v0  ;;  %v350_v44 = vunpack.c.1.s8 %v294_v57  ;;  %v1221_v8 = vpop.f32.mrf.mxu1 }
 0x18c   : > { %v1222_v49 = vadd.f32 %v6715_v58, %v1221_v8 }
 0x18d   : > { %v414_v36 = vcvt.s32.f32 %v350_v44  ;;  %v415_v44 = vcvt.s32.f32 %v351_v13 }
 0x18e   : > { %v1371_v46 = vmax.f32 %v1222_v49, 0.0 }
 0x18f   : > { %v478_v10 = vpack.c.bf16 %v414_v36, %v414_v36  ;;  %v479_v28 = vpack.c.bf16 %v415_v44, %v415_v44 }
 0x190   : > { %v6811_v19 = vpack.c.bf16 %v1371_v46, %v1370_v48 }
 0x191   : > { %v6772_v51 = vpop.f32.mrf.mxu0  ;;  %v641_v62 = vunpack.c.l.b16 %v478_v10  ;;  %v642_v49 = vunpack.c.l.b16 %v479_v28 }
 0x192   : > { %v1666_v23 = vpop.f32.mrf.mxu2  ;;  %8920 = vst [vmem:[#allocation20_spill] sm:$0xff] %v6811_v19  ;;  %vm997_vm7 = vcmp.eq.f32.partialorder %v6772_v51, %v6522_v0 }
 0x193   : > { %vm1804_vm12 = vcmp.eq.f32.partialorder %v1666_v23, %v6522_v0  ;;  %v6801_v59 = vpack.c.b16 %v641_v62, %v640_v63  ;;  %v1495_v23 = vpop.permute.xlu2 %1494 }
 0x194   : > { %5315 = vmatmul.msk.bf16.gmra.mxu0 %vm693_vm1, %v6724_v32  ;;  %vm5466_vm13 = vmpackc.low %vm1804_vm12, %vm1803_vm11  ;;  %vm994_vm11 = vcmp.eq.f32.partialorder %v6743_v43, %v6522_v0  ;;  %v295_v43 = vld [vmem:[%s6353_s21 + $0x70] sm:$0xff] }
 0x195   : > { %5467 = vmatmul.msk.bf16.gmra.mxu3 %vm5466_vm13, %v8876_v11  ;;  %8919 = vst [vmem:[#allocation19_spill] sm:$0xff] %v6801_v59  ;;  %1512 = vrot.lane.b32.xlu2 %v6801_v59, %s6244_s22  ;;  %vm5382_vm13 = vmpackc.low %vm994_vm11, %vm993_vm10  ;;  %v354_v44 = vunpack.c.1.s8 %v295_v43 }
 0x196   : > { %5383 = vmatmul.msk.bf16.gmra.mxu1 %vm5382_vm13, %v8876_v11 }
 0x197   : > { %5436 = vmatmul.msk.bf16.gmra.mxu2 %vm693_vm1, %v1493_v47  ;;  %v1224_v47 = vpop.f32.mrf.mxu1 }
 0x198   : > { %v1225_v17 = vadd.f32 %v6715_v58, %v1224_v47 }
 0x199   : > { %v6793_v54 = vpop.f32.mrf.mxu0 }
 0x19a   : > { %v1669_v38 = vpop.f32.mrf.mxu2  ;;  %v1372_v8 = vmax.f32 %v1225_v17, 0.0  ;;  %v353_v17 = vunpack.c.0.s8 %v295_v43 }
 0x19b   : > { %vm1805_vm2 = vcmp.eq.f32.partialorder %v1669_v38, %v6522_v0  ;;  %v352_v38 = vunpack.c.3.s8 %v294_v57  ;;  %v1497_v57 = vpop.permute.xlu0 %1496 }
 0x19c   : > { %v417_v28 = vcvt.s32.f32 %v353_v17 }
 0x19d   : > { %v416_v27 = vcvt.s32.f32 %v352_v38 }
 0x19f   : > { %v480_v36 = vpack.c.bf16 %v416_v27, %v416_v27  ;;  %v1226_v34 = vpop.f32.mrf.mxu1 }
 0x1a0   : > { %v1227_v48 = vadd.f32 %v6715_v58, %v1226_v34  ;;  %v481_v34 = vpack.c.bf16 %v417_v28, %v417_v28  ;;  %v356_v28 = vunpack.c.3.s8 %v295_v43 }
 0x1a1   : > { %v6799_v53 = vpop.f32.mrf.mxu0  ;;  %v643_v63 = vunpack.c.l.b16 %v480_v36  ;;  %v418_v36 = vcvt.s32.f32 %v354_v44  ;;  %v8925_v44 = vmov 1.0|1.0  }
 0x1a2   : > { %v1671_v12 = vpop.f32.mrf.mxu2  ;;  %v1373_v46 = vmax.f32 %v1227_v48, 0.0  ;;  %vm999_vm13 = vcmp.eq.f32.partialorder %v6799_v53, %v6522_v0 }
 0x1a3   : > { %vm1806_vm3 = vcmp.eq.f32.partialorder %v1671_v12, %v6522_v0 }
 0x1a4   : > { %5316 = vmatmul.msk.bf16.gmra.mxu0 %vm693_vm1, %v6751_v14  ;;  %vm5468_vm6 = vmpackc.low %vm1806_vm3, %vm1805_vm2  ;;  %v6838_v47 = vpack.c.bf16 %v1373_v46, %v1372_v8  ;;  %v482_v8 = vpack.c.bf16 %v418_v36, %v418_v36  ;;  %v644_v46 = vunpack.c.l.b16 %v481_v34  ;;  %vm996_vm2 = vcmp.eq.f32.partialorder %v6767_v24, %v6522_v0 }
 0x1a5   : > { %5469 = vmatmul.msk.bf16.gmra.mxu3 %vm5468_vm6, %v8876_v11  ;;  %vm5384_vm4 = vmpackc.low %vm996_vm2, %vm995_vm0  ;;  %v420_v34 = vcvt.s32.f32 %v356_v28 }
 0x1a6   : > { %8922 = vst [vmem:[#allocation22_spill] sm:$0xff] %v6838_v47  ;;  %5385 = vmatmul.msk.bf16.gmra.mxu1 %vm5384_vm4, %v8925_v44 }
 0x1a7   : > { %5437 = vmatmul.msk.bf16.gmra.mxu2 %vm693_vm1, %v1495_v23  ;;  %v6828_v23 = vpack.c.b16 %v643_v63, %v642_v49 }
 0x1a8   : > { %v6817_v20 = vpop.f32.mrf.mxu3 }
 0x1a9   : > { %v6819_v15 = vpop.f32.mrf.mxu0  ;;  %8921 = vst [vmem:[#allocation21_spill] sm:$0xff] %v6828_v23  ;;  %1514 = vrot.lane.b32.xlu0 %v6828_v23, %s6244_s22 }
 0x1aa   : > { %v1674_v60 = vpop.f32.mrf.mxu2 }
 0x1ab   : > { %vm1807_vm8 = vcmp.eq.f32.partialorder %v1674_v60, %v6522_v0  ;;  %v1229_v60 = vpop.f32.mrf.mxu1 }
 0x1ac   : > { %v1230_v27 = vadd.f32 %v6715_v58, %v1229_v60  ;;  %v1499_v60 = vpop.permute.xlu1 %1498 }
 0x1ae   : > { %v1374_v63 = vmax.f32 %v1230_v27, 0.0  ;;  %v355_v27 = vunpack.c.2.s8 %v295_v43  ;;  %v1501_v43 = vpop.permute.xlu2 %1500 }
 0x1b0   : > { %v6823_v10 = vpop.f32.mrf.mxu3  ;;  %v419_v36 = vcvt.s32.f32 %v355_v27 }
 0x1b1   : > { %v6826_v62 = vpop.f32.mrf.mxu0 }
 0x1b2   : > { %v1676_v12 = vpop.f32.mrf.mxu2 }
 0x1b3   : > { %vm1808_vm9 = vcmp.eq.f32.partialorder %v1676_v12, %v6522_v0  ;;  %v1231_v48 = vpop.f32.mrf.mxu1 }
 0x1b4   : > { %5317 = vmatmul.msk.bf16.gmra.mxu0 %vm693_vm1, %v6774_v25  ;;  %vm5470_vm12 = vmpackc.low %vm1808_vm9, %vm1807_vm8  ;;  %v1232_v12 = vadd.f32 %v6715_v58, %v1231_v48  ;;  %v484_v48 = vpack.c.bf16 %v420_v34, %v420_v34  ;;  %vm998_vm8 = vcmp.eq.f32.partialorder %v6793_v54, %v6522_v0  ;;  %v296_v54 = vld [vmem:[%s6353_s21 + $0x78] sm:$0xff]  ;;  %s270_s21 = sand.u32 1, %s6234_s25  }
 0x1b5   : > { %5471 = vmatmul.msk.bf16.gmra.mxu3 %vm5470_vm12, %v8876_v11  ;;  %vm5386_vm10 = vmpackc.low %vm998_vm8, %vm997_vm7  ;;  %v357_v27 = vunpack.c.0.s8 %v296_v54  ;;  %s5285_s15 = sshll.u32 %s270_s21, 8 }
 0x1b6   : > { %v1375_v11 = vmax.f32 %v1232_v12, 0.0  ;;  %5387 = vmatmul.msk.bf16.gmra.mxu1 %vm5386_vm10, %v8925_v44  ;;  %s8528_s16 = scalar_lea.vmem [#allocation2], %s5285_s15 }
 0x1b7   : > { %5438 = vmatmul.msk.bf16.gmra.mxu2 %vm693_vm1, %v1497_v57  ;;  %v645_v57 = vunpack.c.l.b16 %v482_v8  ;;  %v483_v8 = vpack.c.bf16 %v419_v36, %v419_v36  ;;  %s5216_s9 = sshll.u32 %s8528_s16, 4  ;;  %s5217_s9 = int_to_ptr.vmem [resolvable:$true] %s5216_s9 }
 0x1b8   : > { %v6844_v26 = vpop.f32.mrf.mxu3  ;;  %v6866_v17 = vpack.c.bf16 %v1375_v11, %v1374_v63 }
 0x1b9   : > { %v6846_v13 = vpop.f32.mrf.mxu0  ;;  %v6856_v19 = vpack.c.b16 %v645_v57, %v644_v46 }
 0x1ba   : > { %v1679_v38 = vpop.f32.mrf.mxu2  ;;  %8924 = vst [vmem:[#allocation24_spill] sm:$0xff] %v6866_v17 }
 0x1bb   : > { %8923 = vst [vmem:[#allocation23_spill] sm:$0xff] %v6856_v19  ;;  %vm1809_vm14 = vcmp.eq.f32.partialorder %v1679_v38, %v6522_v0  ;;  %1516 = vrot.lane.b32.xlu1 %v6856_v19, %s6244_s22 }
 0x1c0   : > { %v6851_v49 = vpop.f32.mrf.mxu3 }
 0x1c1   : > { %v6854_v25 = vpop.f32.mrf.mxu0 }
 0x1c2   : > { %v1681_v47 = vpop.f32.mrf.mxu2 }
 0x1c3   : > { %vm1810_vm15 = vcmp.eq.f32.partialorder %v1681_v47, %v6522_v0  ;;  %v1234_v47 = vpop.f32.mrf.mxu1 }
 0x1c4   : > { %5318 = vmatmul.msk.bf16.gmra.mxu0 %vm693_vm1, %v6801_v59  ;;  %vm5472_vm3 = vmpackc.low %vm1810_vm15, %vm1809_vm14  ;;  %v1235_v11 = vadd.f32 %v6715_v58, %v1234_v47  ;;  %v647_v59 = vunpack.c.l.b16 %v484_v48  ;;  %vm1000_vm14 = vcmp.eq.f32.partialorder %v6819_v15, %v6522_v0  ;;  %v359_v15 = vunpack.c.2.s8 %v296_v54 }
 0x1c5   : > { %5473 = vmatmul.msk.bf16.gmra.mxu3 %vm5472_vm3, %v8925_v44  ;;  %vm5388_vm0 = vmpackc.low %vm1000_vm14, %vm999_vm13 }
 0x1c6   : > { %v1376_v46 = vmax.f32 %v1235_v11, 0.0  ;;  %v421_v11 = vcvt.s32.f32 %v357_v27  ;;  %5389 = vmatmul.msk.bf16.gmra.mxu1 %vm5388_vm0, %v8925_v44 }
 0x1c7   : > { %5439 = vmatmul.msk.bf16.gmra.mxu2 %vm693_vm1, %v1499_v60  ;;  %v646_v60 = vunpack.c.l.b16 %v483_v8 }
 0x1c8   : > { %v6872_v4 = vpop.f32.mrf.mxu3  ;;  %v485_v34 = vpack.c.bf16 %v421_v11, %v421_v11 }
 0x1c9   : > { %v6874_v38 = vpop.f32.mrf.mxu0  ;;  %v6883_v33 = vpack.c.b16 %v647_v59, %v646_v60 }
 0x1ca   : > { %v1684_v24 = vpop.f32.mrf.mxu2  ;;  %v648_v60 = vunpack.c.l.b16 %v485_v34 }
 0x1cb   : > { %v1236_v63 = vpop.f32.mrf.mxu1  ;;  %8926 = vst [vmem:[#allocation25_spill] sm:$0xff] %v6883_v33  ;;  %vm1811_vm5 = vcmp.eq.f32.partialorder %v1684_v24, %v6522_v0  ;;  %1518 = vrot.lane.b32.xlu2 %v6883_v33, %s6244_s22 }
 0x1cc   : > { %v1237_v57 = vadd.f32 %v6715_v58, %v1236_v63 }
 0x1ce   : > { %v1377_v45 = vmax.f32 %v1237_v57, 0.0 }
 0x1d0   : > { %v6878_v12 = vpop.f32.mrf.mxu3  ;;  %v6893_v47 = vpack.c.bf16 %v1377_v45, %v1376_v46  ;;  %v358_v45 = vunpack.c.1.s8 %v296_v54 }
 0x1d1   : > { %v6881_v17 = vpop.f32.mrf.mxu0 }
 0x1d2   : > { %v1686_v7 = vpop.f32.mrf.mxu2  ;;  %8927 = vst [vmem:[#allocation26_spill] sm:$0xff] %v6893_v47  ;;  %v422_v36 = vcvt.s32.f32 %v358_v45  ;;  %v360_v45 = vunpack.c.3.s8 %v296_v54  ;;  %v6943_v54 = vld [vmem:[%s8868_s2] ss:$0 sm:$0xff] }
 0x1d3   : > { %vm1812_vm6 = vcmp.eq.f32.partialorder %v1686_v7, %v6522_v0  ;;  %v1239_v7 = vpop.f32.mrf.mxu1  ;;  %vm1001_vm4 = vcmp.eq.f32.partialorder %v6826_v62, %v6943_v54  ;;  %v5905_v62 = vld [vmem:[%s8871_s5] sm:$0xff]  ;;  %vm1003_vm10 = vcmp.eq.f32.partialorder %v6854_v25, %v6943_v54  ;;  %vm1005_vm0 = vcmp.eq.f32.partialorder %v6881_v17, %v6943_v54  ;;  %2793 = vrot.lane.b32.xlu2 %v6360_v29, %s6246_s8 }
 0x1d4   : > { %5319 = vmatmul.msk.bf16.gmra.mxu0 %vm693_vm1, %v6828_v23  ;;  %vm5474_vm9 = vmpackc.low %vm1812_vm6, %vm1811_vm5  ;;  %v1240_v28 = vadd.f32 %v6715_v58, %v1239_v7  ;;  %v486_v8 = vpack.c.bf16 %v422_v36, %v422_v36  ;;  %v1503_v7 = vpop.permute.xlu0 %1502  ;;  %v424_v11 = vcvt.s32.f32 %v360_v45  ;;  %vm1002_vm5 = vcmp.eq.f32.partialorder %v6846_v13, %v6943_v54  ;;  %v5911_v13 = vld [vmem:[%s8871_s5 + $0x30] sm:$0xff]  ;;  %2631 = vmatpush.bf16.msrb.mxu2 %v5905_v62 }
 0x1d5   : > { %5475 = vmatmul.msk.bf16.gmra.mxu3 %vm5474_vm9, %v8925_v44  ;;  %vm5390_vm7 = vmpackc.low %vm1002_vm5, %vm1001_vm4  ;;  %2340 = vmatpush.bf16.msrb.mxu0 %v5911_v13  ;;  %v1961_v17 = vadd.f32 %v6715_v58, %v6823_v10  ;;  %vm2238_vm5 = vcmask 523264  }
 0x1d6   : > { %v1378_v46 = vmax.f32 %v1240_v28, 0.0  ;;  %v423_v28 = vcvt.s32.f32 %v359_v15  ;;  %v488_v34 = vpack.c.bf16 %v424_v11, %v424_v11  ;;  %5391 = vmatmul.msk.bf16.gmra.mxu1 %vm5390_vm7, %v8925_v44  ;;  %v6171_v11 = vld [vmem:[%s8867_s1] sm:$0xff] }
 0x1d7   : > { %5440 = vmatmul.msk.bf16.gmra.mxu2 %vm693_vm1, %v1501_v43  ;;  %v649_v43 = vunpack.c.l.b16 %v486_v8 }
 0x1d8   : > { %v6899_v51 = vpop.f32.mrf.mxu3  ;;  %v487_v36 = vpack.c.bf16 %v423_v28, %v423_v28  ;;  %4066 = vmatpush.bf16.msra.mxu2 %v6342_v3 }
 0x1d9   : > { %v6901_v59 = vpop.f32.mrf.mxu0  ;;  %v6911_v32 = vpack.c.b16 %v649_v43, %v648_v60  ;;  %v651_v43 = vunpack.c.l.b16 %v488_v34  ;;  %v5909_v34 = vld [vmem:[%s8871_s5 + $0x20] sm:$0xff] }
 0x1da   : > { %v1689_v24 = vpop.f32.mrf.mxu2  ;;  %v650_v60 = vunpack.c.l.b16 %v487_v36 }
 0x1db   : > { %v1241_v48 = vpop.f32.mrf.mxu1  ;;  %8928 = vst [vmem:[#allocation27_spill] sm:$0xff] %v6911_v32  ;;  %vm1813_vm11 = vcmp.eq.f32.partialorder %v1689_v24, %v6522_v0  ;;  %1520 = vrot.lane.b32.xlu0 %v6911_v32, %s6244_s22  ;;  %2799 = vrot.lane.b32.xlu2 %v6374_v42, %s6246_s8 }
 0x1dc   : > { %v1242_v57 = vadd.f32 %v6715_v58, %v1241_v48  ;;  %v6938_v5 = vpack.c.b16 %v651_v43, %v650_v60  ;;  %4067 = vmatpush.bf16.msra.mxu2 %v6171_v11 }
 0x1de   : > { %v1379_v14 = vmax.f32 %v1242_v57, 0.0  ;;  %8930 = vst [vmem:[#allocation29_spill] sm:$0xff] %v6938_v5  ;;  %1522 = vrot.lane.b32.xlu1 %v6938_v5, %s6244_s22 }
 0x1e0   : > { %v6906_v63 = vpop.f32.mrf.mxu3  ;;  %v6921_v27 = vpack.c.bf16 %v1379_v14, %v1378_v46 }
 0x1e1   : > { %v6909_v23 = vpop.f32.mrf.mxu0 }
 0x1e2   : > { %v1691_v47 = vpop.f32.mrf.mxu2  ;;  %8929 = vst [vmem:[#allocation28_spill] sm:$0xff] %v6921_v27 }
 0x1e3   : > { %vm1814_vm12 = vcmp.eq.f32.partialorder %v1691_v47, %v6522_v0  ;;  %v1244_v47 = vpop.f32.mrf.mxu1  ;;  %2795 = vrot.lane.b32.xlu0 %v6370_v37, %s6246_s8  ;;  %2805 = vrot.lane.b32.xlu2 %v6394_v9, %s6246_s8 }
 0x1e4   : > { %vm5476_vm15 = vmpackc.low %vm1814_vm12, %vm1813_vm11  ;;  %5320 = vmatmul.msk.bf16.gmra.mxu0 %vm693_vm1, %v6856_v19  ;;  %v1245_v14 = vadd.f32 %v6715_v58, %v1244_v47  ;;  %v1505_v47 = vpop.permute.xlu1 %1504  ;;  %vm1004_vm11 = vcmp.eq.f32.partialorder %v6874_v38, %v6943_v54 }
 0x1e5   : > { %5477 = vmatmul.msk.bf16.gmra.mxu3 %vm5476_vm15, %v8925_v44  ;;  %vm5392_vm13 = vmpackc.low %vm1004_vm11, %vm1003_vm10 }
 0x1e6   : > { %v1380_v46 = vmax.f32 %v1245_v14, 0.0  ;;  %v5910_v14 = vld [vmem:[%s8871_s5 + $0x28] sm:$0xff]  ;;  %5393 = vmatmul.msk.bf16.gmra.mxu1 %vm5392_vm13, %v8925_v44  ;;  %2797 = vrot.lane.b32.xlu1 %v6362_v30, %s6246_s8 }
 0x1e7   : > { %5441 = vmatmul.msk.bf16.gmra.mxu2 %vm693_vm1, %v1503_v7  ;;  %2341 = vmatpush.bf16.msrb.mxu0 %v5910_v14 }
 0x1e8   : > { %v6927_v53 = vpop.f32.mrf.mxu3 }
 0x1e9   : > { %v6929_v24 = vpop.f32.mrf.mxu0 }
 0x1ea   : > { %v1694_v0 = vpop.f32.mrf.mxu2 }
 0x1eb   : > { %v1246_v8 = vpop.f32.mrf.mxu1  ;;  %vm1815_vm2 = vcmp.eq.f32.partialorder %v1694_v0, %v6943_v54  ;;  %2342 = vmatpush.bf16.msrb.mxu0 %v5909_v34  ;;  %2801 = vrot.lane.b32.xlu0 %v6381_v52, %s6246_s8 }
 0x1ec   : > { %v1247_v57 = vadd.f32 %v6715_v58, %v1246_v8  ;;  %2811 = vrot.lane.b32.xlu2 %v6416_v41, %s6246_s8 }
 0x1ee   : > { %v1381_v27 = vmax.f32 %v1247_v57, 0.0  ;;  %2803 = vrot.lane.b32.xlu1 %v6387_v61, %s6246_s8 }
 0x1f0   : > { %v6933_v48 = vpop.f32.mrf.mxu3  ;;  %v6953_v15 = vpack.c.bf16 %v1381_v27, %v1380_v46 }
 0x1f1   : > { %v6936_v7 = vpop.f32.mrf.mxu0 }
 0x1f2   : > { %v1696_v19 = vpop.f32.mrf.mxu2 }
 0x1f3   : > { %vm1816_vm3 = vcmp.eq.f32.partialorder %v1696_v19, %v6943_v54  ;;  %v1249_v19 = vpop.f32.mrf.mxu1  ;;  %2807 = vrot.lane.b32.xlu0 %v6400_v18, %s6246_s8 }
 0x1f4   : > { %vm5478_vm6 = vmpackc.low %vm1816_vm3, %vm1815_vm2  ;;  %5321 = vmatmul.msk.bf16.gmra.mxu0 %vm693_vm1, %v6883_v33  ;;  %v1250_v28 = vadd.f32 %v6715_v58, %v1249_v19  ;;  %vm1006_vm2 = vcmp.eq.f32.partialorder %v6901_v59, %v6943_v54  ;;  %2817 = vrot.lane.b32.xlu2 %v6449_v21, %s6246_s8 }
 0x1f5   : > { %5479 = vmatmul.msk.bf16.gmra.mxu3 %vm5478_vm6, %v8925_v44  ;;  %vm5394_vm4 = vmpackc.low %vm1006_vm2, %vm1005_vm0 }
 0x1f6   : > { %v1382_v3 = vmax.f32 %v1250_v28, 0.0  ;;  %5395 = vmatmul.msk.bf16.gmra.mxu1 %vm5394_vm4, %v8925_v44  ;;  %2809 = vrot.lane.b32.xlu1 %v6410_v31, %s6246_s8 }
 0x1f7   : > { %5442 = vmatmul.msk.bf16.gmra.mxu2 %vm693_vm1, %v1505_v47  ;;  %v1507_v47 = vpop.permute.xlu2 %1506 }
 0x1f8   : > { %v6965_v0 = vpop.f32.mrf.mxu3 }
 0x1f9   : > { %v6967_v27 = vpop.f32.mrf.mxu0 }
 0x1fa   : > { %v1699_v45 = vpop.f32.mrf.mxu2 }
 0x1fb   : > { %v1251_v36 = vpop.f32.mrf.mxu1  ;;  %vm1817_vm8 = vcmp.eq.f32.partialorder %v1699_v45, %v6943_v54  ;;  %2813 = vrot.lane.b32.xlu0 %v6426_v55, %s6246_s8 }
 0x1fc   : > { %v1252_v46 = vadd.f32 %v6715_v58, %v1251_v36  ;;  %2823 = vrot.lane.b32.xlu2 %v6555_v22, %s6246_s8 }
 0x1fe   : > { %v1383_v43 = vmax.f32 %v1252_v46, 0.0  ;;  %2815 = vrot.lane.b32.xlu1 %v6437_v6, %s6246_s8 }
 0x200   : > { %v6981_v8 = vpop.f32.mrf.mxu3  ;;  %v6994_v19 = vpack.c.bf16 %v1383_v43, %v1382_v3 }
 0x201   : > { %v6984_v57 = vpop.f32.mrf.mxu0 }
 0x202   : > { %v1701_v60 = vpop.f32.mrf.mxu2 }
 0x203   : > { %vm1818_vm9 = vcmp.eq.f32.partialorder %v1701_v60, %v6943_v54  ;;  %v1254_v62 = vpop.f32.mrf.mxu1  ;;  %v1509_v60 = vpop.permute.xlu0 %1508  ;;  %2819 = vrot.lane.b32.xlu0 %v6479_v40, %s6246_s8 }
 0x204   : > { %vm5480_vm12 = vmpackc.low %vm1818_vm9, %vm1817_vm8  ;;  %5322 = vmatmul.msk.bf16.gmra.mxu0 %vm693_vm1, %v6911_v32  ;;  %v1255_v38 = vadd.f32 %v6715_v58, %v1254_v62  ;;  %vm1007_vm8 = vcmp.eq.f32.partialorder %v6909_v23, %v6943_v54  ;;  %vm1008_vm9 = vcmp.eq.f32.partialorder %v6929_v24, %v6943_v54  ;;  %v1966_v24 = vadd.f32 %v6715_v58, %v6851_v49 }
 0x205   : > { %5481 = vmatmul.msk.bf16.gmra.mxu3 %vm5480_vm12, %v8925_v44  ;;  %vm5396_vm11 = vmpackc.low %vm1008_vm9, %vm1007_vm8  ;;  %2829 = vrot.lane.b32.xlu2 %v6620_v16, %s6246_s8 }
 0x206   : > { %v1384_v11 = vmax.f32 %v1255_v38, 0.0  ;;  %v1959_v38 = vadd.f32 %v6715_v58, %v6817_v20  ;;  %v1511_v20 = vpop.permute.xlu1 %1510  ;;  %5397 = vmatmul.msk.bf16.gmra.mxu1 %vm5396_vm11, %v8925_v44  ;;  %2821 = vrot.lane.b32.xlu1 %v6524_v1, %s6246_s8 }
 0x207   : > { %5443 = vmatmul.msk.bf16.gmra.mxu2 %vm693_vm1, %v1507_v47 }
 0x208   : > { %v6998_v13 = vpop.f32.mrf.mxu3 }
 0x209   : > { %v7000_v45 = vpop.f32.mrf.mxu0 }
 0x20a   : > { %v1704_v25 = vpop.f32.mrf.mxu2 }
 0x20b   : > { %v1256_v14 = vpop.f32.mrf.mxu1  ;;  %vm1819_vm14 = vcmp.eq.f32.partialorder %v1704_v25, %v6943_v54  ;;  %2825 = vrot.lane.b32.xlu0 %v6583_v39, %s6246_s8 }
 0x20c   : > { %v1257_v36 = vadd.f32 %v6715_v58, %v1256_v14 }
 0x20e   : > { %v1385_v46 = vmax.f32 %v1257_v36, 0.0  ;;  %2827 = vrot.lane.b32.xlu1 %v6603_v56, %s6246_s8 }
 0x210   : > { %v7004_v28 = vpop.f32.mrf.mxu3  ;;  %v7017_v43 = vpack.c.bf16 %v1385_v46, %v1384_v11  ;;  %v2119_v11 = vmax.f32 %v1961_v17, 0.0  ;;  %v1964_v17 = vadd.f32 %v6715_v58, %v6844_v26 }
 0x211   : > { %v7007_v34 = vpop.f32.mrf.mxu0 }
 0x212   : > { %v1706_v3 = vpop.f32.mrf.mxu2  ;;  %8931 = vst [vmem:[#allocation30_spill] sm:$0xff] %v7017_v43  ;;  %v2120_v49 = vmax.f32 %v1964_v17, 0.0  ;;  %v1971_v17 = vadd.f32 %v6715_v58, %v6878_v12 }
 0x213   : > { %vm1820_vm15 = vcmp.eq.f32.partialorder %v1706_v3, %v6943_v54  ;;  %v1259_v47 = vpop.f32.mrf.mxu1  ;;  %v2118_v3 = vmax.f32 %v1959_v38, 0.0  ;;  %v2121_v38 = vmax.f32 %v1966_v24, 0.0  ;;  %2831 = vrot.lane.b32.xlu0 %v6639_v35, %s6246_s8 }
 0x214   : > { %vm5482_vm3 = vmpackc.low %vm1820_vm15, %vm1819_vm14  ;;  %5323 = vmatmul.msk.bf16.gmra.mxu0 %vm693_vm1, %v6938_v5  ;;  %v1260_v14 = vadd.f32 %v6715_v58, %v1259_v47  ;;  %vm1009_vm14 = vcmp.eq.f32.partialorder %v6936_v7, %v6943_v54  ;;  %vm1010_vm15 = vcmp.eq.f32.partialorder %v6967_v27, %v6943_v54 }
 0x215   : > { %5483 = vmatmul.msk.bf16.gmra.mxu3 %vm5482_vm3, %v8925_v44  ;;  %v2182_v10 = vpack.c.bf16 %v2119_v11, %v2118_v3  ;;  %vm5398_vm2 = vmpackc.low %vm1010_vm15, %vm1009_vm14 }
 0x216   : > { %5399 = vmatmul.msk.bf16.gmra.mxu1 %vm5398_vm2, %v8925_v44  ;;  %2833 = vrot.lane.b32.xlu1 %v6659_v2, %s6246_s8 }
 0x217   : > { %5444 = vmatmul.msk.bf16.gmra.mxu2 %vm693_vm1, %v1509_v60  ;;  %v1386_v60 = vmax.f32 %v1260_v14, 0.0 }
 0x218   : > { %v7021_v62 = vpop.f32.mrf.mxu3 }
 0x219   : > { %v7023_v25 = vpop.f32.mrf.mxu0 }
 0x21a   : > { %v1709_v59 = vpop.f32.mrf.mxu2 }
 0x21b   : > { %v1261_v36 = vpop.f32.mrf.mxu1  ;;  %vm1821_vm6 = vcmp.eq.f32.partialorder %v1709_v59, %v6943_v54  ;;  %2837 = vrot.lane.b32.xlu0 %v6698_v50, %s6246_s8 }
 0x21c   : > { %v1262_v5 = vadd.f32 %v6715_v58, %v1261_v36 }
 0x21e   : > { %v1387_v43 = vmax.f32 %v1262_v5, 0.0 }
 0x220   : > { %v7031_v46 = vpop.f32.mrf.mxu3  ;;  %v7043_v47 = vpack.c.bf16 %v1387_v43, %v1386_v60  ;;  %v2183_v60 = vpack.c.bf16 %v2121_v38, %v2120_v49  ;;  %v1969_v38 = vadd.f32 %v6715_v58, %v6872_v4  ;;  %v2123_v49 = vmax.f32 %v1971_v17, 0.0  ;;  %v1515_v17 = vpop.permute.xlu0 %1514 }
 0x221   : > { %v7034_v32 = vpop.f32.mrf.mxu0 }
 0x222   : > { %v1711_v33 = vpop.f32.mrf.mxu2  ;;  %v2122_v12 = vmax.f32 %v1969_v38, 0.0 }
 0x223   : > { %vm1822_vm7 = vcmp.eq.f32.partialorder %v1711_v33, %v6943_v54  ;;  %v1264_v5 = vpop.f32.mrf.mxu1 }
 0x224   : > { %vm5484_vm10 = vmpackc.low %vm1822_vm7, %vm1821_vm6  ;;  %5532 = vmatmul.msk.bf16.vlgmr.msrb.gmra.mxu0 %vm2238_vm5, %v2182_v10  ;;  %v1265_v59 = vadd.f32 %v6715_v58, %v1264_v5  ;;  %v1513_v5 = vpop.permute.xlu2 %1512  ;;  %vm1011_vm6 = vcmp.eq.f32.partialorder %v6984_v57, %v6943_v54  ;;  %vm1012_vm7 = vcmp.eq.f32.partialorder %v7000_v45, %v6943_v54 }
 0x225   : > { %5485 = vmatmul.msk.bf16.gmra.mxu3 %vm5484_vm10, %v8925_v44  ;;  %vm5400_vm9 = vmpackc.low %vm1012_vm7, %vm1011_vm6 }
 0x226   : > { %v1388_v36 = vmax.f32 %v1265_v59, 0.0  ;;  %5401 = vmatmul.msk.bf16.gmra.mxu1 %vm5400_vm9, %v8925_v44 }
 0x227   : > { %5445 = vmatmul.msk.bf16.gmra.mxu2 %vm693_vm1, %v1511_v20 }
 0x228   : > { %v7053_v33 = vpop.f32.mrf.mxu3 }
 0x229   : > { %v7055_v23 = vpop.f32.mrf.mxu0 }
 0x22a   : > { %v1714_v43 = vpop.f32.mrf.mxu2 }
 0x22b   : > { %v1266_v14 = vpop.f32.mrf.mxu1  ;;  %vm1823_vm12 = vcmp.eq.f32.partialorder %v1714_v43, %v6943_v54 }
 0x22c   : > { %v1267_v3 = vadd.f32 %v6715_v58, %v1266_v14 }
 0x22e   : > { %v1389_v20 = vmax.f32 %v1267_v3, 0.0 }
 0x230   : > { %v7069_v11 = vpop.f32.mrf.mxu3  ;;  %v7081_v24 = vpack.c.bf16 %v1389_v20, %v1388_v36  ;;  %v2184_v20 = vpack.c.bf16 %v2123_v49, %v2122_v12 }
 0x231   : > { %v7072_v26 = vpop.f32.mrf.mxu0 }
 0x232   : > { %v1716_v10 = vpop.f32.mrf.mxu2 }
 0x233   : > { %vm1824_vm13 = vcmp.eq.f32.partialorder %v1716_v10, %v6943_v54  ;;  %v1269_v7 = vpop.f32.mrf.mxu1 }
 0x234   : > { %vm5486_vm0 = vmpackc.low %vm1824_vm13, %vm1823_vm12  ;;  %5533 = vmatmul.msk.bf16.gmra.mxu0 %vm2238_vm5, %v2183_v60  ;;  %v1270_v14 = vadd.f32 %v6715_v58, %v1269_v7  ;;  %vm1013_vm12 = vcmp.eq.f32.partialorder %v7007_v34, %v6943_v54  ;;  %vm1014_vm13 = vcmp.eq.f32.partialorder %v7023_v25, %v6943_v54 }
 0x235   : > { %5487 = vmatmul.msk.bf16.gmra.mxu3 %vm5486_vm0, %v8925_v44  ;;  %vm5402_vm15 = vmpackc.low %vm1014_vm13, %vm1013_vm12 }
 0x236   : > { %v1390_v60 = vmax.f32 %v1270_v14, 0.0  ;;  %v1976_v14 = vadd.f32 %v6715_v58, %v6906_v63  ;;  %5403 = vmatmul.msk.bf16.gmra.mxu1 %vm5402_vm15, %v8925_v44 }
 0x237   : > { %5446 = vmatmul.msk.bf16.gmra.mxu2 %vm693_vm1, %v1513_v5 }
 0x238   : > { %v7091_v27 = vpop.f32.mrf.mxu3 }
 0x239   : > { %v7093_v43 = vpop.f32.mrf.mxu0 }
 0x23a   : > { %v1719_v59 = vpop.f32.mrf.mxu2 }
 0x23b   : > { %v1271_v36 = vpop.f32.mrf.mxu1  ;;  %vm1825_vm3 = vcmp.eq.f32.partialorder %v1719_v59, %v6943_v54 }
 0x23c   : > { %v1272_v10 = vadd.f32 %v6715_v58, %v1271_v36  ;;  %v1974_v36 = vadd.f32 %v6715_v58, %v6899_v51 }
 0x23e   : > { %v1391_v7 = vmax.f32 %v1272_v10, 0.0  ;;  %v2124_v63 = vmax.f32 %v1974_v36, 0.0  ;;  %v1517_v36 = vpop.permute.xlu1 %1516 }
 0x240   : > { %v7107_v3 = vpop.f32.mrf.mxu3  ;;  %v7119_v38 = vpack.c.bf16 %v1391_v7, %v1390_v60  ;;  %v2125_v60 = vmax.f32 %v1976_v14, 0.0 }
 0x241   : > { %v7110_v4 = vpop.f32.mrf.mxu0 }
 0x242   : > { %v1721_v5 = vpop.f32.mrf.mxu2 }
 0x243   : > { %vm1826_vm4 = vcmp.eq.f32.partialorder %v1721_v5, %v6943_v54  ;;  %v1274_v57 = vpop.f32.mrf.mxu1 }
 0x244   : > { %vm5488_vm8 = vmpackc.low %vm1826_vm4, %vm1825_vm3  ;;  %5534 = vmatmul.msk.bf16.gmra.mxu0 %vm2238_vm5, %v2184_v20  ;;  %v1275_v12 = vadd.f32 %v6715_v58, %v1274_v57  ;;  %vm1015_vm3 = vcmp.eq.f32.partialorder %v7034_v32, %v6943_v54  ;;  %vm1016_vm4 = vcmp.eq.f32.partialorder %v7055_v23, %v6943_v54 }
 0x245   : > { %5489 = vmatmul.msk.bf16.gmra.mxu3 %vm5488_vm8, %v8925_v44  ;;  %vm5404_vm7 = vmpackc.low %vm1016_vm4, %vm1015_vm3 }
 0x246   : > { %v1392_v5 = vmax.f32 %v1275_v12, 0.0  ;;  %5405 = vmatmul.msk.bf16.gmra.mxu1 %vm5404_vm7, %v8925_v44 }
 0x247   : > { %5447 = vmatmul.msk.bf16.gmra.mxu2 %vm693_vm1, %v1515_v17  ;;  %v2185_v17 = vpack.c.bf16 %v2125_v60, %v2124_v63  ;;  %v1981_v60 = vadd.f32 %v6715_v58, %v6933_v48  ;;  %v1979_v63 = vadd.f32 %v6715_v58, %v6927_v53  ;;  %v7188_v53 = vld [vmem:[%s8870_s4] ss:$0 sm:$0xff] }
 0x248   : > { %v7129_v45 = vpop.f32.mrf.mxu3  ;;  %v1986_v23 = vadd.f32 %v7188_v53, %v6981_v8 }
 0x249   : > { %v7131_v59 = vpop.f32.mrf.mxu0  ;;  %v2126_v48 = vmax.f32 %v1979_v63, 0.0  ;;  %v1519_v63 = vpop.permute.xlu2 %1518 }
 0x24a   : > { %v1724_v49 = vpop.f32.mrf.mxu2 }
 0x24b   : > { %v1276_v10 = vpop.f32.mrf.mxu1  ;;  %vm1827_vm10 = vcmp.eq.f32.partialorder %v1724_v49, %v6943_v54 }
 0x24c   : > { %v1277_v7 = vadd.f32 %v6715_v58, %v1276_v10 }
 0x24e   : > { %v1393_v14 = vmax.f32 %v1277_v7, 0.0  ;;  %v2127_v7 = vmax.f32 %v1981_v60, 0.0 }
 0x250   : > { %v7145_v20 = vpop.f32.mrf.mxu3  ;;  %v7157_v12 = vpack.c.bf16 %v1393_v14, %v1392_v5  ;;  %v8933_v14 = vld [vmem:[#allocation13_spill] sm:$0xff]  ;;  %v2186_v60 = vpack.c.bf16 %v2127_v7, %v2126_v48  ;;  %v8934_v7 = vld [vmem:[#allocation15_spill] sm:$0xff]  ;;  %v2129_v48 = vmax.f32 %v1986_v23, 0.0 }
 0x251   : > { %v7148_v51 = vpop.f32.mrf.mxu0  ;;  %2839 = vrot.lane.b32.xlu1 %v8933_v14, %s6246_s8  ;;  %2841 = vrot.lane.b32.xlu0 %v8934_v7, %s6246_s8 }
 0x252   : > { %v1726_v57 = vpop.f32.mrf.mxu2 }
 0x253   : > { %vm1828_vm11 = vcmp.eq.f32.partialorder %v1726_v57, %v6943_v54  ;;  %v1279_v34 = vpop.f32.mrf.mxu1 }
 0x254   : > { %vm5490_vm14 = vmpackc.low %vm1828_vm11, %vm1827_vm10  ;;  %5535 = vmatmul.msk.bf16.gmra.mxu0 %vm2238_vm5, %v2185_v17  ;;  %v1280_v5 = vadd.f32 %v6715_v58, %v1279_v34  ;;  %v8932_v17 = vld [vmem:[#allocation11_spill] sm:$0xff]  ;;  %vm1017_vm10 = vcmp.eq.f32.partialorder %v7072_v26, %v6943_v54  ;;  %vm1018_vm11 = vcmp.eq.f32.partialorder %v7093_v43, %v6943_v54  ;;  %v1991_v26 = vadd.f32 %v7188_v53, %v7004_v28 }
 0x255   : > { %5491 = vmatmul.msk.bf16.gmra.mxu3 %vm5490_vm14, %v8925_v44  ;;  %2835 = vrot.lane.b32.xlu2 %v8932_v17, %s6246_s8  ;;  %vm5406_vm13 = vmpackc.low %vm1018_vm11, %vm1017_vm10 }
 0x256   : > { %v1394_v35 = vmax.f32 %v1280_v5, 0.0  ;;  %5407 = vmatmul.msk.bf16.gmra.mxu1 %vm5406_vm13, %v8925_v44 }
 0x257   : > { %5448 = vmatmul.msk.bf16.gmra.mxu2 %vm693_vm1, %v1517_v36 }
 0x258   : > { %v7167_v25 = vpop.f32.mrf.mxu3 }
 0x259   : > { %v7169_v49 = vpop.f32.mrf.mxu0  ;;  %3902 = vrot.lane.b32.xlu1 %v6370_v37, %s6247_s20  ;;  %3904 = vrot.lane.b32.xlu0 %v6362_v30, %s6247_s20  ;;  %v8982_v30 = vld [vmem:[#allocation17_spill] sm:$0xff] }
 0x25a   : > { %v1729_v10 = vpop.f32.mrf.mxu2 }
 0x25b   : > { %v1281_v57 = vpop.f32.mrf.mxu1  ;;  %vm1829_vm0 = vcmp.eq.f32.partialorder %v1729_v10, %v6943_v54 }
 0x25c   : > { %v1282_v58 = vadd.f32 %v7188_v53, %v1281_v57 }
 0x25d   : > { %3900 = vrot.lane.b32.xlu2 %v6360_v29, %s6247_s20  ;;  %v8981_v29 = vld [vmem:[#allocation19_spill] sm:$0xff] }
 0x25e   : > { %v1395_v17 = vmax.f32 %v1282_v58, 0.0 }
 0x260   : > { %v7183_v36 = vpop.f32.mrf.mxu3  ;;  %v7200_v5 = vpack.c.bf16 %v1395_v17, %v1394_v35  ;;  %v1984_v35 = vadd.f32 %v7188_v53, %v6965_v0  ;;  %v1521_v0 = vpop.permute.xlu0 %1520 }
 0x261   : > { %v7191_v34 = vpop.f32.mrf.mxu0  ;;  %2845 = vrot.lane.b32.xlu1 %v8981_v29, %s6246_s8 }
 0x262   : > { %v1731_v50 = vpop.f32.mrf.mxu2 }
 0x263   : > { %vm1830_vm2 = vcmp.eq.f32.partialorder %v1731_v50, %v6943_v54  ;;  %v1284_v50 = vpop.f32.mrf.mxu1 }
 0x264   : > { %vm5492_vm6 = vmpackc.low %vm1830_vm2, %vm1829_vm0  ;;  %5536 = vmatmul.msk.bf16.gmra.mxu0 %vm2238_vm5, %v2186_v60  ;;  %v1285_v17 = vadd.f32 %v7188_v53, %v1284_v50  ;;  %v2128_v60 = vmax.f32 %v1984_v35, 0.0  ;;  %vm1019_vm0 = vcmp.eq.f32.partialorder %v7110_v4, %v6943_v54  ;;  %vm1020_vm2 = vcmp.eq.f32.partialorder %v7131_v59, %v6943_v54 }
 0x265   : > { %5493 = vmatmul.msk.bf16.gmra.mxu3 %vm5492_vm6, %v8925_v44  ;;  %vm5408_vm4 = vmpackc.low %vm1020_vm2, %vm1019_vm0  ;;  %v1996_v4 = vadd.f32 %v7188_v53, %v7031_v46  ;;  %2843 = vrot.lane.b32.xlu2 %v8982_v30, %s6246_s8 }
 0x266   : > { %v1396_v7 = vmax.f32 %v1285_v17, 0.0  ;;  %v2187_v39 = vpack.c.bf16 %v2129_v48, %v2128_v60  ;;  %5409 = vmatmul.msk.bf16.gmra.mxu1 %vm5408_vm4, %v8925_v44 }
 0x267   : > { %5449 = vmatmul.msk.bf16.gmra.mxu2 %vm693_vm1, %v1519_v63 }
 0x268   : > { %v7206_v10 = vpop.f32.mrf.mxu3 }
 0x269   : > { %v7208_v32 = vpop.f32.mrf.mxu0  ;;  %3908 = vrot.lane.b32.xlu1 %v6381_v52, %s6247_s20 }
 0x26a   : > { %v1734_v57 = vpop.f32.mrf.mxu2 }
 0x26b   : > { %v1286_v58 = vpop.f32.mrf.mxu1  ;;  %vm1831_vm8 = vcmp.eq.f32.partialorder %v1734_v57, %v6943_v54 }
 0x26c   : > { %v1287_v14 = vadd.f32 %v7188_v53, %v1286_v58 }
 0x26d   : > { %3906 = vrot.lane.b32.xlu2 %v6374_v42, %s6247_s20  ;;  %v8986_v42 = vld [vmem:[#allocation25_spill] sm:$0xff] }
 0x26e   : > { %v1397_v16 = vmax.f32 %v1287_v14, 0.0 }
 0x270   : > { %v7216_v63 = vpop.f32.mrf.mxu3  ;;  %v7228_v50 = vpack.c.bf16 %v1397_v16, %v1396_v7  ;;  %v2131_v7 = vmax.f32 %v1991_v26, 0.0 }
 0x271   : > { %v7219_v2 = vpop.f32.mrf.mxu0  ;;  %2851 = vrot.lane.b32.xlu1 %v8986_v42, %s6246_s8 }
 0x272   : > { %v1736_v8 = vpop.f32.mrf.mxu2 }
 0x273   : > { %vm1832_vm9 = vcmp.eq.f32.partialorder %v1736_v8, %v6943_v54  ;;  %v1289_v14 = vpop.f32.mrf.mxu1 }
 0x274   : > { %vm5494_vm12 = vmpackc.low %vm1832_vm9, %vm1831_vm8  ;;  %5537 = vmatmul.msk.bf16.gmra.mxu0 %vm2238_vm5, %v2187_v39  ;;  %v1989_v39 = vadd.f32 %v7188_v53, %v6998_v13  ;;  %v1290_v16 = vadd.f32 %v7188_v53, %v1289_v14  ;;  %v1523_v14 = vpop.permute.xlu1 %1522  ;;  %vm1021_vm8 = vcmp.eq.f32.partialorder %v7148_v51, %v6943_v54  ;;  %vm1022_vm9 = vcmp.eq.f32.partialorder %v7169_v49, %v6943_v54 }
 0x275   : > { %5495 = vmatmul.msk.bf16.gmra.mxu3 %vm5494_vm12, %v8925_v44  ;;  %vm5410_vm11 = vmpackc.low %vm1022_vm9, %vm1021_vm8  ;;  %v2001_v51 = vadd.f32 %v7188_v53, %v7069_v11 }
 0x276   : > { %v2130_v17 = vmax.f32 %v1989_v39, 0.0  ;;  %v1398_v48 = vmax.f32 %v1290_v16, 0.0  ;;  %v1994_v16 = vadd.f32 %v7188_v53, %v7021_v62  ;;  %5411 = vmatmul.msk.bf16.gmra.mxu1 %vm5410_vm11, %v8925_v44 }
 0x277   : > { %5450 = vmatmul.msk.bf16.gmra.mxu2 %vm693_vm1, %v1521_v0 }
 0x278   : > { %v7236_v57 = vpop.f32.mrf.mxu3  ;;  %v2188_v8 = vpack.c.bf16 %v2131_v7, %v2130_v17 }
 0x279   : > { %v7232_v23 = vpop.f32.mrf.mxu0  ;;  %3914 = vrot.lane.b32.xlu1 %v6400_v18, %s6247_s20 }
 0x27a   : > { %v1739_v43 = vpop.f32.mrf.mxu2 }
 0x27b   : > { %v1291_v35 = vpop.f32.mrf.mxu1  ;;  %vm1833_vm14 = vcmp.eq.f32.partialorder %v1739_v43, %v6943_v54 }
 0x27c   : > { %v1292_v58 = vadd.f32 %v7188_v53, %v1291_v35  ;;  %v2133_v35 = vmax.f32 %v1996_v4, 0.0 }
 0x27e   : > { %v1399_v0 = vmax.f32 %v1292_v58, 0.0  ;;  %v2132_v58 = vmax.f32 %v1994_v16, 0.0 }
 0x280   : > { %v7251_v13 = vpop.f32.mrf.mxu3  ;;  %v7254_v26 = vpack.c.bf16 %v1399_v0, %v1398_v48 }
 0x281   : > { %v7243_v60 = vpop.f32.mrf.mxu0  ;;  %3918 = vrot.lane.b32.xlu1 %v6416_v41, %s6247_s20 }
 0x282   : > { %v1741_v28 = vpop.f32.mrf.mxu2 }
 0x283   : > { %vm1834_vm15 = vcmp.eq.f32.partialorder %v1741_v28, %v6943_v54  ;;  %v1294_v43 = vpop.f32.mrf.mxu1 }
 0x284   : > { %vm5496_vm3 = vmpackc.low %vm1834_vm15, %vm1833_vm14  ;;  %5538 = vmatmul.msk.bf16.gmra.mxu0 %vm2238_vm5, %v2188_v8  ;;  %v1295_v7 = vadd.f32 %v7188_v53, %v1294_v43  ;;  %v8935_v43 = vld [vmem:[#allocation14_spill] sm:$0xff]  ;;  %vm1023_vm14 = vcmp.eq.f32.partialorder %v7191_v34, %v6943_v54  ;;  %vm1024_vm15 = vcmp.eq.f32.partialorder %v7208_v32, %v6943_v54  ;;  %v2006_v34 = vadd.f32 %v7188_v53, %v7107_v3 }
 0x285   : > { %5497 = vmatmul.msk.bf16.gmra.mxu3 %vm5496_vm3, %v8925_v44  ;;  %vm5412_vm2 = vmpackc.low %vm1024_vm15, %vm1023_vm14  ;;  %v2004_v32 = vadd.f32 %v7188_v53, %v7091_v27 }
 0x286   : > { %v1400_v8 = vmax.f32 %v1295_v7, 0.0  ;;  %5413 = vmatmul.msk.bf16.gmra.mxu1 %vm5412_vm2, %v8925_v44 }
 0x287   : > { %5451 = vmatmul.msk.bf16.gmra.mxu2 %vm693_vm1, %v1523_v14  ;;  %v2189_v14 = vpack.c.bf16 %v2133_v35, %v2132_v58  ;;  %v2135_v35 = vmax.f32 %v2001_v51, 0.0 }
 0x288   : > { %v7266_v17 = vpop.f32.mrf.mxu3 }
 0x289   : > { %v7258_v39 = vpop.f32.mrf.mxu0  ;;  %3924 = vrot.lane.b32.xlu1 %v6449_v21, %s6247_s20 }
 0x28a   : > { %v1744_v59 = vpop.f32.mrf.mxu2 }
 0x28b   : > { %v1296_v48 = vpop.f32.mrf.mxu1  ;;  %vm1835_vm6 = vcmp.eq.f32.partialorder %v1744_v59, %v6943_v54 }
 0x28c   : > { %v1297_v28 = vadd.f32 %v7188_v53, %v1296_v48 }
 0x28e   : > { %v1401_v56 = vmax.f32 %v1297_v28, 0.0 }
 0x290   : > { %v7278_v62 = vpack.c.bf16 %v1401_v56, %v1400_v8  ;;  %v7283_v59 = vpop.f32.mrf.mxu3  ;;  %v1999_v56 = vadd.f32 %v7188_v53, %v7053_v33 }
 0x291   : > { %v7269_v0 = vpop.f32.mrf.mxu0  ;;  %3930 = vrot.lane.b32.xlu1 %v6555_v22, %s6247_s20 }
 0x292   : > { %v1746_v46 = vpop.f32.mrf.mxu2  ;;  %v2134_v58 = vmax.f32 %v1999_v56, 0.0 }
 0x293   : > { %vm1836_vm7 = vcmp.eq.f32.partialorder %v1746_v46, %v6943_v54  ;;  %v1299_v4 = vpop.f32.mrf.mxu1 }
 0x294   : > { %vm5498_vm10 = vmpackc.low %vm1836_vm7, %vm1835_vm6  ;;  %5539 = vmatmul.msk.bf16.gmra.mxu0 %vm2238_vm5, %v2189_v14  ;;  %v1300_v7 = vadd.f32 %v7188_v53, %v1299_v4  ;;  %v2190_v46 = vpack.c.bf16 %v2135_v35, %v2134_v58  ;;  %v8936_v4 = vld [vmem:[#allocation16_spill] sm:$0xff]  ;;  %v2137_v35 = vmax.f32 %v2006_v34, 0.0  ;;  %v2136_v58 = vmax.f32 %v2004_v32, 0.0  ;;  %v8938_v34 = vld [vmem:[#allocation18_spill] sm:$0xff] }
 0x295   : > { %5499 = vmatmul.msk.bf16.gmra.mxu3 %vm5498_vm10, %v8925_v44  ;;  %vm1025_vm6 = vcmp.eq.f32.partialorder %v7219_v2, %v6943_v54  ;;  %vm1026_vm7 = vcmp.eq.f32.partialorder %v7232_v23, %v6943_v54  ;;  %v2011_v2 = vadd.f32 %v7188_v53, %v7145_v20 }
 0x296   : > { %v1402_v8 = vmax.f32 %v1300_v7, 0.0  ;;  %vm5414_vm9 = vmpackc.low %vm1026_vm7, %vm1025_vm6 }
 0x297   : > { %5580 = vmatmul.msk.bf16.vlgmr.msrb.gmra.mxu2 %vm2238_vm5, %v8935_v43  ;;  %5415 = vmatmul.msk.bf16.gmra.mxu1 %vm5414_vm9, %v8925_v44 }
 0x298   : > { %v7296_v43 = vpop.f32.mrf.mxu3 }
 0x299   : > { %v7285_v16 = vpop.f32.mrf.mxu0 }
 0x29a   : > { %v1749_v49 = vpop.f32.mrf.mxu2 }
 0x29b   : > { %v1301_v48 = vpop.f32.mrf.mxu1  ;;  %vm1837_vm12 = vcmp.eq.f32.partialorder %v1749_v49, %v6943_v54 }
 0x29c   : > { %v1302_v28 = vadd.f32 %v7188_v53, %v1301_v48 }
 0x29e   : > { %v1403_v40 = vmax.f32 %v1302_v28, 0.0 }
 0x2a0   : > { %v7305_v33 = vpack.c.bf16 %v1403_v40, %v1402_v8  ;;  %v7317_v40 = vpop.f32.mrf.mxu3 }
 0x2a1   : > { %v7294_v14 = vpop.f32.mrf.mxu0 }
 0x2a2   : > { %v1751_v11 = vpop.f32.mrf.mxu2 }
 0x2a3   : > { %vm1838_vm13 = vcmp.eq.f32.partialorder %v1751_v11, %v6943_v54  ;;  %v1304_v51 = vpop.f32.mrf.mxu1  ;;  %v2191_v11 = vpack.c.bf16 %v2137_v35, %v2136_v58 }
 0x2a4   : > { %vm5500_vm0 = vmpackc.low %vm1838_vm13, %vm1837_vm12  ;;  %5540 = vmatmul.msk.bf16.gmra.mxu0 %vm2238_vm5, %v2190_v46  ;;  %v1305_v7 = vadd.f32 %v7188_v53, %v1304_v51  ;;  %vm1027_vm12 = vcmp.eq.f32.partialorder %v7243_v60, %v6943_v54  ;;  %vm1028_vm13 = vcmp.eq.f32.partialorder %v7258_v39, %v6943_v54  ;;  %v2016_v60 = vadd.f32 %v7188_v53, %v7183_v36 }
 0x2a5   : > { %5501 = vmatmul.msk.bf16.gmra.mxu3 %vm5500_vm0, %v8925_v44  ;;  %vm5416_vm15 = vmpackc.low %vm1028_vm13, %vm1027_vm12 }
 0x2a6   : > { %v1404_v8 = vmax.f32 %v1305_v7, 0.0  ;;  %v2009_v7 = vadd.f32 %v7188_v53, %v7129_v45 }
 0x2a7   : > { %5581 = vmatmul.msk.bf16.gmra.mxu2 %vm2238_vm5, %v8936_v4  ;;  %5417 = vmatmul.msk.bf16.gmra.mxu1 %vm5416_vm15, %v8925_v44 }
 0x2a8   : > { %v7333_v51 = vpop.f32.mrf.mxu3 }
 0x2a9   : > { %v7310_v49 = vpop.f32.mrf.mxu0 }
 0x2aa   : > { %v1754_v56 = vpop.f32.mrf.mxu2 }
 0x2ab   : > { %v1306_v48 = vpop.f32.mrf.mxu1  ;;  %vm1839_vm3 = vcmp.eq.f32.partialorder %v1754_v56, %v6943_v54 }
 0x2ac   : > { %v1307_v28 = vadd.f32 %v7188_v53, %v1306_v48  ;;  %v2139_v48 = vmax.f32 %v2011_v2, 0.0 }
 0x2ae   : > { %v1405_v4 = vmax.f32 %v1307_v28, 0.0 }
 0x2b0   : > { %v7330_v27 = vpack.c.bf16 %v1405_v4, %v1404_v8  ;;  %v2138_v8 = vmax.f32 %v2009_v7, 0.0  ;;  %v7345_v28 = vpop.f32.mrf.mxu3 }
 0x2b1   : > { %v7321_v46 = vpop.f32.mrf.mxu0 }
 0x2b2   : > { %8937 = vst [vmem:[#allocation14_spill] sm:$0xff] %v7321_v46  ;;  %v1756_v3 = vpop.f32.mrf.mxu2 }
 0x2b3   : > { %vm1840_vm4 = vcmp.eq.f32.partialorder %v1756_v3, %v6943_v54  ;;  %v1309_v56 = vpop.f32.mrf.mxu1 }
 0x2b4   : > { %vm5502_vm8 = vmpackc.low %vm1840_vm4, %vm1839_vm3  ;;  %5541 = vmatmul.msk.bf16.gmra.mxu0 %vm2238_vm5, %v2191_v11  ;;  %v1310_v35 = vadd.f32 %v7188_v53, %v1309_v56  ;;  %v8941_v56 = vld [vmem:[#allocation20_spill] sm:$0xff]  ;;  %vm1029_vm3 = vcmp.eq.f32.partialorder %v7269_v0, %v6943_v54  ;;  %vm1030_vm4 = vcmp.eq.f32.partialorder %v7285_v16, %v6943_v54  ;;  %v2021_v0 = vadd.f32 %v7188_v53, %v7216_v63 }
 0x2b5   : > { %5503 = vmatmul.msk.bf16.gmra.mxu3 %vm5502_vm8, %v8925_v44  ;;  %vm5418_vm7 = vmpackc.low %vm1030_vm4, %vm1029_vm3 }
 0x2b6   : > { %v1406_v11 = vmax.f32 %v1310_v35, 0.0 }
 0x2b7   : > { %5582 = vmatmul.msk.bf16.gmra.mxu2 %vm2238_vm5, %v8938_v34  ;;  %v2192_v34 = vpack.c.bf16 %v2139_v48, %v2138_v8  ;;  %v2141_v48 = vmax.f32 %v2016_v60, 0.0  ;;  %v8944_v60 = vld [vmem:[#allocation22_spill] sm:$0xff]  ;;  %5419 = vmatmul.msk.bf16.gmra.mxu1 %vm5418_vm7, %v8925_v44 }
 0x2b8   : > { %v7366_v7 = vpop.f32.mrf.mxu3 }
 0x2b9   : > { %v7337_v32 = vpop.f32.mrf.mxu0 }
 0x2ba   : > { %8939 = vst [vmem:[#allocation16_spill] sm:$0xff] %v7337_v32  ;;  %v1759_v23 = vpop.f32.mrf.mxu2 }
 0x2bb   : > { %v1311_v58 = vpop.f32.mrf.mxu1  ;;  %vm1841_vm10 = vcmp.eq.f32.partialorder %v1759_v23, %v6943_v54 }
 0x2bc   : > { %v1312_v3 = vadd.f32 %v7188_v53, %v1311_v58 }
 0x2be   : > { %v1407_v32 = vmax.f32 %v1312_v3, 0.0 }
 0x2c0   : > { %v7357_v45 = vpack.c.bf16 %v1407_v32, %v1406_v11  ;;  %v2014_v32 = vadd.f32 %v7188_v53, %v7167_v25  ;;  %v7381_v25 = vpop.f32.mrf.mxu3 }
 0x2c1   : > { %v7348_v4 = vpop.f32.mrf.mxu0 }
 0x2c2   : > { %8940 = vst [vmem:[#allocation18_spill] sm:$0xff] %v7348_v4  ;;  %v1761_v20 = vpop.f32.mrf.mxu2  ;;  %v2140_v8 = vmax.f32 %v2014_v32, 0.0 }
 0x2c3   : > { %vm1842_vm11 = vcmp.eq.f32.partialorder %v1761_v20, %v6943_v54  ;;  %v1314_v2 = vpop.f32.mrf.mxu1 }
 0x2c4   : > { %vm5504_vm14 = vmpackc.low %vm1842_vm11, %vm1841_vm10  ;;  %5542 = vmatmul.msk.bf16.gmra.mxu0 %vm2238_vm5, %v2192_v34  ;;  %v1315_v35 = vadd.f32 %v7188_v53, %v1314_v2  ;;  %v2193_v20 = vpack.c.bf16 %v2141_v48, %v2140_v8 }
 0x2c5   : > { %5505 = vmatmul.msk.bf16.gmra.mxu3 %vm5504_vm14, %v8925_v44 }
 0x2c6   : > { %v1408_v11 = vmax.f32 %v1315_v35, 0.0  ;;  %v2019_v35 = vadd.f32 %v7188_v53, %v7206_v10 }
 0x2c7   : > { %5583 = vmatmul.msk.bf16.gmra.mxu2 %vm2238_vm5, %v8941_v56 }
 0x2c8   : > { %v7397_v8 = vpop.f32.mrf.mxu3 }
 0x2c9   : > { %v7362_v23 = vpop.f32.mrf.mxu0 }
 0x2ca   : > { %8942 = vst [vmem:[#allocation20_spill] sm:$0xff] %v7362_v23  ;;  %v1764_v39 = vpop.f32.mrf.mxu2 }
 0x2cb   : > { %v1316_v58 = vpop.f32.mrf.mxu1  ;;  %vm1843_vm0 = vcmp.eq.f32.partialorder %v1764_v39, %v6943_v54 }
 0x2cc   : > { %v1317_v3 = vadd.f32 %v7188_v53, %v1316_v58  ;;  %v2143_v58 = vmax.f32 %v2021_v0, 0.0 }
 0x2ce   : > { %v1409_v56 = vmax.f32 %v1317_v3, 0.0  ;;  %v2142_v3 = vmax.f32 %v2019_v35, 0.0 }
 0x2d0   : > { %v7384_v2 = vpack.c.bf16 %v1409_v56, %v1408_v11  ;;  %v7410_v35 = vpop.f32.mrf.mxu3 }
 0x2d1   : > { %v7373_v34 = vpop.f32.mrf.mxu0 }
 0x2d2   : > { %8943 = vst [vmem:[#allocation31_spill] sm:$0xff] %v7373_v34  ;;  %v1766_v36 = vpop.f32.mrf.mxu2 }
 0x2d3   : > { %vm1844_vm2 = vcmp.eq.f32.partialorder %v1766_v36, %v6943_v54  ;;  %v1319_v39 = vpop.f32.mrf.mxu1 }
 0x2d4   : > { %vm5506_vm6 = vmpackc.low %vm1844_vm2, %vm1843_vm0  ;;  %5543 = vmatmul.msk.bf16.gmra.mxu0 %vm2238_vm5, %v2193_v20  ;;  %v1320_v48 = vadd.f32 %v7188_v53, %v1319_v39  ;;  %v8947_v39 = vld [vmem:[#allocation24_spill] sm:$0xff] }
 0x2d5   : > { %5507 = vmatmul.msk.bf16.gmra.mxu3 %vm5506_vm6, %v8925_v44 }
 0x2d6   : > { %v1410_v20 = vmax.f32 %v1320_v48, 0.0 }
 0x2d7   : > { %5584 = vmatmul.msk.bf16.gmra.mxu2 %vm2238_vm5, %v8944_v60  ;;  %v2194_v60 = vpack.c.bf16 %v2143_v58, %v2142_v3  ;;  %v2794_v58 = vpop.permute.xlu2 %2793 }
 0x2d8   : > { %5612 = vmatmul.msk.bf16.vlgmr.msrb.gmra.mxu1 %vm693_vm1, %v2794_v58  ;;  %v7423_v34 = vpop.f32.mrf.mxu3 }
 0x2d9   : > { %v7389_v32 = vpop.f32.mrf.mxu0 }
 0x2da   : > { %8945 = vst [vmem:[#allocation22_spill] sm:$0xff] %v7389_v32  ;;  %v1769_v16 = vpop.f32.mrf.mxu2 }
 0x2db   : > { %v1321_v11 = vpop.f32.mrf.mxu1  ;;  %vm1845_vm8 = vcmp.eq.f32.partialorder %v1769_v16, %v6943_v54  ;;  %v2026_v16 = vadd.f32 %v7188_v53, %v7251_v13 }
 0x2dc   : > { %v1322_v36 = vadd.f32 %v7188_v53, %v1321_v11 }
 0x2de   : > { %v1411_v32 = vmax.f32 %v1322_v36, 0.0 }
 0x2e0   : > { %v7405_v10 = vpack.c.bf16 %v1411_v32, %v1410_v20  ;;  %v2024_v32 = vadd.f32 %v7188_v53, %v7236_v57  ;;  %v2145_v20 = vmax.f32 %v2026_v16, 0.0 }
 0x2e1   : > { %v7400_v56 = vpop.f32.mrf.mxu0 }
 0x2e2   : > { %8946 = vst [vmem:[#allocation32_spill] sm:$0xff] %v7400_v56  ;;  %v1771_v63 = vpop.f32.mrf.mxu2 }
 0x2e3   : > { %vm1846_vm9 = vcmp.eq.f32.partialorder %v1771_v63, %v6943_v54  ;;  %v1324_v0 = vpop.f32.mrf.mxu1 }
 0x2e4   : > { %vm5508_vm10 = vmpackc.low %vm1846_vm9, %vm1845_vm8  ;;  %5544 = vmatmul.msk.bf16.gmra.mxu0 %vm2238_vm5, %v2194_v60  ;;  %v1325_v3 = vadd.f32 %v7188_v53, %v1324_v0  ;;  %v2144_v60 = vmax.f32 %v2024_v32, 0.0  ;;  %v8950_v0 = vld [vmem:[#allocation26_spill] sm:$0xff]  ;;  %v2796_v32 = vpop.permute.xlu0 %2795 }
 0x2e5   : > { %5509 = vmatmul.msk.bf16.gmra.mxu3 %vm5508_vm10, %v8925_v44 }
 0x2e6   : > { %v1412_v63 = vmax.f32 %v1325_v3, 0.0  ;;  %v2031_v3 = vadd.f32 %v7188_v53, %v7283_v59 }
 0x2e7   : > { %5585 = vmatmul.msk.bf16.gmra.mxu2 %vm2238_vm5, %v8947_v39 }
 0x2e8   : > { %5613 = vmatmul.msk.bf16.gmra.mxu1 %vm693_vm1, %v2796_v32  ;;  %v8953_v32 = vld [vmem:[#allocation28_spill] sm:$0xff] }
 0x2e9   : > { %v7412_v48 = vpop.f32.mrf.mxu0 }
 0x2ea   : > { %8948 = vst [vmem:[#allocation24_spill] sm:$0xff] %v7412_v48  ;;  %v1774_v11 = vpop.f32.mrf.mxu2  ;;  %v2195_v48 = vpack.c.bf16 %v2145_v20, %v2144_v60 }
 0x2eb   : > { %v1326_v36 = vpop.f32.mrf.mxu1  ;;  %vm1847_vm11 = vcmp.eq.f32.partialorder %v1774_v11, %v6943_v54 }
 0x2ec   : > { %v1327_v39 = vadd.f32 %v7188_v53, %v1326_v36  ;;  %v2147_v36 = vmax.f32 %v2031_v3, 0.0 }
 0x2ee   : > { %v1413_v23 = vmax.f32 %v1327_v39, 0.0 }
 0x2f0   : > { %v7428_v57 = vpack.c.bf16 %v1413_v23, %v1412_v63  ;;  %v7440_v23 = vpop.f32.mrf.mxu3 }
 0x2f1   : > { %v7421_v56 = vpop.f32.mrf.mxu0 }
 0x2f2   : > { %8949 = vst [vmem:[#allocation33_spill] sm:$0xff] %v7421_v56  ;;  %v1776_v13 = vpop.f32.mrf.mxu2 }
 0x2f3   : > { %vm1848_vm12 = vcmp.eq.f32.partialorder %v1776_v13, %v6943_v54  ;;  %v1329_v58 = vpop.f32.mrf.mxu1 }
 0x2f4   : > { %vm5510_vm13 = vmpackc.low %vm1848_vm12, %vm1847_vm11  ;;  %5545 = vmatmul.msk.bf16.gmra.mxu0 %vm2238_vm5, %v2195_v48  ;;  %v2029_v48 = vadd.f32 %v7188_v53, %v7266_v17  ;;  %v1330_v20 = vadd.f32 %v7188_v53, %v1329_v58 }
 0x2f5   : > { %5511 = vmatmul.msk.bf16.gmra.mxu3 %vm5510_vm13, %v8925_v44 }
 0x2f6   : > { %v2146_v63 = vmax.f32 %v2029_v48, 0.0  ;;  %v1414_v39 = vmax.f32 %v1330_v20, 0.0  ;;  %v2798_v20 = vpop.permute.xlu1 %2797 }
 0x2f7   : > { %5586 = vmatmul.msk.bf16.gmra.mxu2 %vm2238_vm5, %v8950_v0 }
 0x2f8   : > { %v7452_v58 = vpop.f32.mrf.mxu3  ;;  %5614 = vmatmul.msk.bf16.gmra.mxu1 %vm693_vm1, %v2798_v20  ;;  %v7472_v20 = vld [vmem:[%s8868_s2] ss:$0 sm:$0xff] }
 0x2f9   : > { %v7433_v16 = vpop.f32.mrf.mxu0 }
 0x2fa   : > { %8951 = vst [vmem:[#allocation26_spill] sm:$0xff] %v7433_v16  ;;  %v1779_v11 = vpop.f32.mrf.mxu2  ;;  %v2196_v16 = vpack.c.bf16 %v2147_v36, %v2146_v63 }
 0x2fb   : > { %v1331_v60 = vpop.f32.mrf.mxu1  ;;  %vm1849_vm14 = vcmp.eq.f32.partialorder %v1779_v11, %v6943_v54  ;;  %v2036_v11 = vadd.f32 %v7188_v53, %v7317_v40 }
 0x2fc   : > { %v1332_v13 = vadd.f32 %v7188_v53, %v1331_v60 }
 0x2fd   : > { %v2149_v36 = vmax.f32 %v2036_v11, 0.0 }
 0x2fe   : > { %v1415_v56 = vmax.f32 %v1332_v13, 0.0 }
 0x300   : > { %v7449_v17 = vpack.c.bf16 %v1415_v56, %v1414_v39  ;;  %v2034_v56 = vadd.f32 %v7188_v53, %v7296_v43  ;;  %v7464_v39 = vpop.f32.mrf.mxu3 }
 0x301   : > { %v7444_v0 = vpop.f32.mrf.mxu0 }
 0x302   : > { %8952 = vst [vmem:[#allocation34_spill] sm:$0xff] %v7444_v0  ;;  %v1781_v59 = vpop.f32.mrf.mxu2  ;;  %v2148_v63 = vmax.f32 %v2034_v56, 0.0  ;;  %v2800_v56 = vpop.permute.xlu2 %2799 }
 0x303   : > { %vm1850_vm15 = vcmp.eq.f32.partialorder %v1781_v59, %v6943_v54  ;;  %v1334_v3 = vpop.f32.mrf.mxu1 }
 0x304   : > { %vm5512_vm0 = vmpackc.low %vm1850_vm15, %vm1849_vm14  ;;  %5546 = vmatmul.msk.bf16.gmra.mxu0 %vm2238_vm5, %v2196_v16  ;;  %v1335_v16 = vadd.f32 %v7188_v53, %v1334_v3 }
 0x305   : > { %5513 = vmatmul.msk.bf16.gmra.mxu3 %vm5512_vm0, %v8925_v44 }
 0x306   : > { %v1416_v13 = vmax.f32 %v1335_v16, 0.0  ;;  %v2041_v16 = vadd.f32 %v7188_v53, %v7345_v28 }
 0x307   : > { %5587 = vmatmul.msk.bf16.gmra.mxu2 %vm2238_vm5, %v8953_v32 }
 0x308   : > { %5615 = vmatmul.msk.bf16.gmra.mxu1 %vm693_vm1, %v2800_v56 }
 0x309   : > { %v7456_v48 = vpop.f32.mrf.mxu0 }
 0x30a   : > { %8954 = vst [vmem:[#allocation28_spill] sm:$0xff] %v7456_v48  ;;  %v1784_v54 = vpop.f32.mrf.mxu2  ;;  %v2197_v48 = vpack.c.bf16 %v2149_v36, %v2148_v63 }
 0x30b   : > { %v1336_v60 = vpop.f32.mrf.mxu1  ;;  %vm1851_vm2 = vcmp.eq.f32.partialorder %v1784_v54, %v7472_v20  ;;  %v7486_v54 = vpop.f32.mrf.mxu3 }
 0x30c   : > { %v1337_v59 = vadd.f32 %v7188_v53, %v1336_v60  ;;  %v2151_v60 = vmax.f32 %v2041_v16, 0.0  ;;  %v2802_v16 = vpop.permute.xlu0 %2801 }
 0x30e   : > { %v1417_v0 = vmax.f32 %v1337_v59, 0.0 }
 0x310   : > { %v7477_v43 = vpack.c.bf16 %v1417_v0, %v1416_v13  ;;  %v2039_v0 = vadd.f32 %v7188_v53, %v7333_v51 }
 0x311   : > { %v7467_v32 = vpop.f32.mrf.mxu0 }
 0x312   : > { %8955 = vst [vmem:[#allocation35_spill] sm:$0xff] %v7467_v32  ;;  %v1786_v40 = vpop.f32.mrf.mxu2  ;;  %v2150_v63 = vmax.f32 %v2039_v0, 0.0  ;;  %v2046_v0 = vadd.f32 %v7188_v53, %v7381_v25 }
 0x313   : > { %vm1852_vm3 = vcmp.eq.f32.partialorder %v1786_v40, %v7472_v20  ;;  %v1339_v3 = vpop.f32.mrf.mxu1  ;;  %v7499_v4 = vpop.f32.mrf.mxu3 }
 0x314   : > { %vm5514_vm4 = vmpackc.low %vm1852_vm3, %vm1851_vm2  ;;  %5547 = vmatmul.msk.bf16.gmra.mxu0 %vm2238_vm5, %v2197_v48  ;;  %v1340_v48 = vadd.f32 %v7188_v53, %v1339_v3  ;;  %v2198_v28 = vpack.c.bf16 %v2151_v60, %v2150_v63  ;;  %v2044_v60 = vadd.f32 %v7188_v53, %v7366_v7  ;;  %v8962_v7 = vld [vmem:[#allocation30_spill] sm:$0xff] }
 0x315   : > { %5515 = vmatmul.msk.bf16.gmra.mxu3 %vm5514_vm4, %v8925_v44 }
 0x316   : > { %v1418_v13 = vmax.f32 %v1340_v48, 0.0 }
 0x317   : > { %5588 = vmatmul.msk.bf16.gmra.mxu2 %vm2238_vm5, %v6953_v15 }
 0x318   : > { %5616 = vmatmul.msk.bf16.gmra.mxu1 %vm693_vm1, %v2802_v16 }
 0x319   : > { %v7482_v11 = vpop.f32.mrf.mxu0 }
 0x31a   : > { %8956 = vst [vmem:[#allocation36_spill] sm:$0xff] %v7482_v11  ;;  %v7488_v36 = vpop.f32.mrf.mxu2 }
 0x31b   : > { %v1341_v15 = vpop.f32.mrf.mxu1  ;;  %v7516_v63 = vpop.f32.mrf.mxu3 }
 0x31c   : > { %v1342_v59 = vadd.f32 %v7188_v53, %v1341_v15  ;;  %v2153_v15 = vmax.f32 %v2046_v0, 0.0 }
 0x31e   : > { %v1419_v32 = vmax.f32 %v1342_v59, 0.0 }
 0x320   : > { %v7502_v56 = vpack.c.bf16 %v1419_v32, %v1418_v13  ;;  %v2152_v13 = vmax.f32 %v2044_v60, 0.0 }
 0x321   : > { %v7495_v40 = vpop.f32.mrf.mxu0 }
 0x322   : > { %8957 = vst [vmem:[#allocation37_spill] sm:$0xff] %v7495_v40  ;;  %v7497_v11 = vpop.f32.mrf.mxu2  ;;  %v2199_v25 = vpack.c.bf16 %v2153_v15, %v2152_v13 }
 0x323   : > { %v1344_v51 = vpop.f32.mrf.mxu1  ;;  %v7528_v0 = vpop.f32.mrf.mxu3 }
 0x324   : > { %5548 = vmatmul.msk.bf16.gmra.mxu0 %vm2238_vm5, %v2198_v28  ;;  %v1345_v32 = vadd.f32 %v7188_v53, %v1344_v51 }
 0x326   : > { %v1420_v59 = vmax.f32 %v1345_v32, 0.0  ;;  %v2804_v32 = vpop.permute.xlu1 %2803 }
 0x327   : > { %5589 = vmatmul.msk.bf16.gmra.mxu2 %vm2238_vm5, %v6994_v19 }
 0x328   : > { %5617 = vmatmul.msk.bf16.gmra.mxu1 %vm693_vm1, %v2804_v32 }
 0x329   : > { %v7506_v3 = vpop.f32.mrf.mxu0 }
 0x32a   : > { %8958 = vst [vmem:[#allocation38_spill] sm:$0xff] %v7506_v3  ;;  %v7510_v48 = vpop.f32.mrf.mxu2 }
 0x32b   : > { %8959 = vst [vmem:[#allocation39_spill] sm:$0xff] %v7510_v48  ;;  %v1346_v19 = vpop.f32.mrf.mxu1  ;;  %v7543_v46 = vpop.f32.mrf.mxu3 }
 0x32c   : > { %v1347_v28 = vadd.f32 %v7188_v53, %v1346_v19  ;;  %v2051_v19 = vadd.f32 %v7188_v53, %v7410_v35 }
 0x32e   : > { %v1421_v48 = vmax.f32 %v1347_v28, 0.0 }
 0x330   : > { %v7524_v16 = vpack.c.bf16 %v1421_v48, %v1420_v59  ;;  %v2049_v48 = vadd.f32 %v7188_v53, %v7397_v8  ;;  %v2155_v59 = vmax.f32 %v2051_v19, 0.0  ;;  %v2806_v19 = vpop.permute.xlu2 %2805 }
 0x331   : > { %v7519_v3 = vpop.f32.mrf.mxu0 }
 0x332   : > { %8960 = vst [vmem:[#allocation40_spill] sm:$0xff] %v7519_v3  ;;  %v7521_v40 = vpop.f32.mrf.mxu2 }
 0x333   : > { %8961 = vst [vmem:[#allocation41_spill] sm:$0xff] %v7521_v40  ;;  %v1349_v51 = vpop.f32.mrf.mxu1 }
 0x334   : > { %5549 = vmatmul.msk.bf16.gmra.mxu0 %vm2238_vm5, %v2199_v25  ;;  %v1350_v13 = vadd.f32 %v7188_v53, %v1349_v51  ;;  %v2154_v25 = vmax.f32 %v2049_v48, 0.0  ;;  %v2056_v48 = vadd.f32 %v7188_v53, %v7440_v23 }
 0x336   : > { %v2200_v40 = vpack.c.bf16 %v2155_v59, %v2154_v25  ;;  %v2157_v59 = vmax.f32 %v2056_v48, 0.0 }
 0x337   : > { %5590 = vmatmul.msk.bf16.gmra.mxu2 %vm2238_vm5, %v8962_v7  ;;  %v1422_v7 = vmax.f32 %v1350_v13, 0.0 }
 0x338   : > { %5618 = vmatmul.msk.bf16.gmra.mxu1 %vm693_vm1, %v2806_v19 }
 0x339   : > { %v7530_v60 = vpop.f32.mrf.mxu0 }
 0x33a   : > { %8963 = vst [vmem:[#allocation30_spill] sm:$0xff] %v7530_v60  ;;  %v7534_v15 = vpop.f32.mrf.mxu2 }
 0x33b   : > { %8964 = vst [vmem:[#allocation42_spill] sm:$0xff] %v7534_v15  ;;  %v1351_v28 = vpop.f32.mrf.mxu1 }
 0x33c   : > { %v1352_v3 = vadd.f32 %v7188_v53, %v1351_v28 }
 0x33e   : > { %v1423_v15 = vmax.f32 %v1352_v3, 0.0  ;;  %v2054_v3 = vadd.f32 %v7188_v53, %v7423_v34 }
 0x340   : > { %v7548_v32 = vpack.c.bf16 %v1423_v15, %v1422_v7  ;;  %v2156_v28 = vmax.f32 %v2054_v3, 0.0  ;;  %v2808_v3 = vpop.permute.xlu0 %2807 }
 0x341   : > { %v7541_v60 = vpop.f32.mrf.mxu0 }
 0x342   : > { %8965 = vst [vmem:[#allocation43_spill] sm:$0xff] %v7541_v60  ;;  %v7545_v35 = vpop.f32.mrf.mxu2  ;;  %v2201_v23 = vpack.c.bf16 %v2157_v59, %v2156_v28 }
 0x343   : > { %v1354_v8 = vpop.f32.mrf.mxu1 }
 0x344   : > { %5550 = vmatmul.msk.bf16.gmra.mxu0 %vm2238_vm5, %v2200_v40  ;;  %v7561_v40 = vpop.f32.mrf.mxu3  ;;  %v1355_v15 = vadd.f32 %v7188_v53, %v1354_v8 }
 0x346   : > { %v1424_v25 = vmax.f32 %v1355_v15, 0.0  ;;  %v2061_v15 = vadd.f32 %v7188_v53, %v7464_v39 }
 0x347   : > { %5591 = vmatmul.msk.bf16.gmra.mxu2 %vm2238_vm5, %v7043_v47 }
 0x348   : > { %5619 = vmatmul.msk.bf16.gmra.mxu1 %vm693_vm1, %v2808_v3  ;;  %v2159_v28 = vmax.f32 %v2061_v15, 0.0  ;;  %v2810_v15 = vpop.permute.xlu1 %2809 }
 0x349   : > { %v7552_v51 = vpop.f32.mrf.mxu0 }
 0x34a   : > { %8966 = vst [vmem:[#allocation44_spill] sm:$0xff] %v7552_v51  ;;  %v7556_v13 = vpop.f32.mrf.mxu2 }
 0x34b   : > { %8967 = vst [vmem:[#allocation45_spill] sm:$0xff] %v7556_v13  ;;  %v1356_v47 = vpop.f32.mrf.mxu1 }
 0x34c   : > { %v1357_v7 = vadd.f32 %v7188_v53, %v1356_v47  ;;  %v7572_v34 = vpop.f32.mrf.mxu3 }
 0x34e   : > { %v1425_v13 = vmax.f32 %v1357_v7, 0.0 }
 0x350   : > { %v7570_v19 = vpack.c.bf16 %v1425_v13, %v1424_v25  ;;  %v2059_v13 = vadd.f32 %v7188_v53, %v7452_v58 }
 0x351   : > { %v7565_v51 = vpop.f32.mrf.mxu0 }
 0x352   : > { %8968 = vst [vmem:[#allocation46_spill] sm:$0xff] %v7565_v51  ;;  %v7567_v60 = vpop.f32.mrf.mxu2  ;;  %v2158_v7 = vmax.f32 %v2059_v13, 0.0  ;;  %v2066_v13 = vadd.f32 %v7188_v53, %v7499_v4 }
 0x353   : > { %8969 = vst [vmem:[#allocation47_spill] sm:$0xff] %v7567_v60  ;;  %v1359_v8 = vpop.f32.mrf.mxu1 }
 0x354   : > { %5551 = vmatmul.msk.bf16.gmra.mxu0 %vm2238_vm5, %v2201_v23  ;;  %v1360_v47 = vadd.f32 %v7188_v53, %v1359_v8  ;;  %v2202_v39 = vpack.c.bf16 %v2159_v28, %v2158_v7 }
 0x356   : > { %v1426_v23 = vmax.f32 %v1360_v47, 0.0 }
 0x357   : > { %5592 = vmatmul.msk.bf16.gmra.mxu2 %vm2238_vm5, %v7081_v24  ;;  %v7586_v24 = vpop.f32.mrf.mxu3 }
 0x358   : > { %5620 = vmatmul.msk.bf16.gmra.mxu1 %vm693_vm1, %v2810_v15  ;;  %v2812_v15 = vpop.permute.xlu2 %2811 }
 0x359   : > { %v7576_v48 = vpop.f32.mrf.mxu0 }
 0x35a   : > { %8970 = vst [vmem:[#allocation48_spill] sm:$0xff] %v7576_v48  ;;  %v7580_v59 = vpop.f32.mrf.mxu2 }
 0x35b   : > { %8971 = vst [vmem:[#allocation49_spill] sm:$0xff] %v7580_v59  ;;  %v1361_v25 = vpop.f32.mrf.mxu1 }
 0x35c   : > { %v1362_v48 = vadd.f32 %v7188_v53, %v1361_v25 }
 0x35e   : > { %v1427_v59 = vmax.f32 %v1362_v48, 0.0  ;;  %v2064_v48 = vadd.f32 %v7188_v53, %v7486_v54 }
 0x35f   : > { %v7602_v47 = vpop.f32.mrf.mxu3 }
 0x360   : > { %v7594_v3 = vpack.c.bf16 %v1427_v59, %v1426_v23  ;;  %v2161_v59 = vmax.f32 %v2066_v13, 0.0  ;;  %v2160_v25 = vmax.f32 %v2064_v48, 0.0  ;;  %v2071_v13 = vadd.f32 %v7188_v53, %v7528_v0 }
 0x361   : > { %v7589_v51 = vpop.f32.mrf.mxu0 }
 0x362   : > { %v7591_v60 = vpop.f32.mrf.mxu2  ;;  %v2203_v4 = vpack.c.bf16 %v2161_v59, %v2160_v25  ;;  %v2069_v59 = vadd.f32 %v7188_v53, %v7516_v63 }
 0x363   : > { %v2962_v58 = vpop.f32.mrf.mxu1 }
 0x364   : > { %5552 = vmatmul.msk.bf16.gmra.mxu0 %vm2238_vm5, %v2202_v39  ;;  %vm3122_vm6 = vcmp.eq.f32.partialorder %v2962_v58, %v7472_v20 }
 0x367   : > { %5593 = vmatmul.msk.bf16.gmra.mxu2 %vm2238_vm5, %v7119_v38  ;;  %v7616_v39 = vpop.f32.mrf.mxu3 }
 0x368   : > { %5621 = vmatmul.msk.bf16.gmra.mxu1 %vm693_vm1, %v2812_v15  ;;  %v2814_v15 = vpop.permute.xlu0 %2813 }
 0x369   : > { %v7598_v8 = vpop.f32.mrf.mxu0 }
 0x36a   : > { %8972 = vst [vmem:[#allocation50_spill] sm:$0xff] %v7598_v8  ;;  %v7604_v28 = vpop.f32.mrf.mxu2 }
 0x36b   : > { %v2964_v38 = vpop.f32.mrf.mxu1 }
 0x36c   : > { %vm3123_vm7 = vcmp.eq.f32.partialorder %v2964_v38, %v7472_v20  ;;  %v2163_v38 = vmax.f32 %v2071_v13, 0.0 }
 0x36d   : > { %vm5644_vm8 = vmpackc.low %vm3123_vm7, %vm3122_vm6 }
 0x36e   : > { %5645 = vmatmul.msk.bf16.vlgmr.msrb.gmra.mxu3 %vm5644_vm8, %v8925_v44 }
 0x36f   : > { %v7630_v25 = vpop.f32.mrf.mxu3 }
 0x371   : > { %v7611_v7 = vpop.f32.mrf.mxu0 }
 0x372   : > { %8973 = vst [vmem:[#allocation51_spill] sm:$0xff] %v7611_v7  ;;  %v7613_v23 = vpop.f32.mrf.mxu2 }
 0x373   : > { %v2967_v54 = vpop.f32.mrf.mxu1 }
 0x374   : > { %5553 = vmatmul.msk.bf16.gmra.mxu0 %vm2238_vm5, %v2203_v4  ;;  %vm3124_vm9 = vcmp.eq.f32.partialorder %v2967_v54, %v7472_v20  ;;  %v2162_v4 = vmax.f32 %v2069_v59, 0.0  ;;  %v2076_v59 = vadd.f32 %v7188_v53, %v7561_v40  ;;  %v5920_v40 = vld [vmem:[%s8871_s5 + $0x78] sm:$0xff] }
 0x375   : > { %4778 = vmatpush.bf16.msra.mxu3 %v5920_v40 }
 0x376   : > { %v2204_v0 = vpack.c.bf16 %v2163_v38, %v2162_v4  ;;  %v2074_v38 = vadd.f32 %v7188_v53, %v7543_v46  ;;  %v2165_v4 = vmax.f32 %v2076_v59, 0.0  ;;  %v5916_v46 = vld [vmem:[%s8871_s5 + $0x58] sm:$0xff]  ;;  %v2816_v59 = vpop.permute.xlu1 %2815 }
 0x377   : > { %5594 = vmatmul.msk.bf16.gmra.mxu2 %vm2238_vm5, %v7157_v12  ;;  %v7642_v54 = vpop.f32.mrf.mxu3  ;;  %3671 = vmatpush.bf16.msra.mxu0 %v5916_v46 }
 0x378   : > { %5622 = vmatmul.msk.bf16.gmra.mxu1 %vm693_vm1, %v2814_v15 }
 0x379   : > { %v7621_v58 = vpop.f32.mrf.mxu0 }
 0x37a   : > { %8974 = vst [vmem:[#allocation52_spill] sm:$0xff] %v7621_v58  ;;  %v7625_v48 = vpop.f32.mrf.mxu2 }
 0x37b   : > { %v2969_v12 = vpop.f32.mrf.mxu1 }
 0x37c   : > { %vm3125_vm10 = vcmp.eq.f32.partialorder %v2969_v12, %v7472_v20 }
 0x37d   : > { %vm5646_vm11 = vmpackc.low %vm3125_vm10, %vm3124_vm9 }
 0x37e   : > { %5647 = vmatmul.msk.bf16.gmra.mxu3 %vm5646_vm11, %v8925_v44 }
 0x37f   : > { %v7660_v8 = vpop.f32.mrf.mxu3 }
 0x381   : > { %v7634_v58 = vpop.f32.mrf.mxu0 }
 0x382   : > { %8975 = vst [vmem:[#allocation53_spill] sm:$0xff] %v7634_v58  ;;  %v7636_v7 = vpop.f32.mrf.mxu2 }
 0x383   : > { %v2972_v63 = vpop.f32.mrf.mxu1 }
 0x384   : > { %5554 = vmatmul.msk.bf16.gmra.mxu0 %vm2238_vm5, %v2204_v0  ;;  %vm3126_vm12 = vcmp.eq.f32.partialorder %v2972_v63, %v7472_v20  ;;  %v2164_v0 = vmax.f32 %v2074_v38, 0.0 }
 0x387   : > { %5595 = vmatmul.msk.bf16.gmra.mxu2 %vm2238_vm5, %v7200_v5 }
 0x388   : > { %5623 = vmatmul.msk.bf16.gmra.mxu1 %vm693_vm1, %v2816_v59 }
 0x389   : > { %v7644_v13 = vpop.f32.mrf.mxu0 }
 0x38a   : > { %8976 = vst [vmem:[#allocation54_spill] sm:$0xff] %v7644_v13  ;;  %v7648_v12 = vpop.f32.mrf.mxu2  ;;  %v2205_v13 = vpack.c.bf16 %v2165_v4, %v2164_v0  ;;  %v2081_v4 = vadd.f32 %v7188_v53, %v7586_v24  ;;  %v7680_v0 = vpop.f32.mrf.mxu3 }
 0x38b   : > { %v2974_v5 = vpop.f32.mrf.mxu1 }
 0x38c   : > { %vm3127_vm13 = vcmp.eq.f32.partialorder %v2974_v5, %v7472_v20  ;;  %v2167_v40 = vmax.f32 %v2081_v4, 0.0  ;;  %v7699_v4 = vld [vmem:[%s8870_s4] ss:$0 sm:$0xff] }
 0x38d   : > { %vm5648_vm14 = vmpackc.low %vm3127_vm13, %vm3126_vm12 }
 0x38e   : > { %5649 = vmatmul.msk.bf16.gmra.mxu3 %vm5648_vm14, %v8925_v44 }
 0x391   : > { %v7655_v58 = vpop.f32.mrf.mxu0 }
 0x392   : > { %8977 = vst [vmem:[#allocation55_spill] sm:$0xff] %v7655_v58  ;;  %v7662_v15 = vpop.f32.mrf.mxu2 }
 0x393   : > { %v2977_v63 = vpop.f32.mrf.mxu1 }
 0x394   : > { %5555 = vmatmul.msk.bf16.gmra.mxu0 %vm2238_vm5, %v2205_v13  ;;  %v2079_v13 = vadd.f32 %v7188_v53, %v7572_v34  ;;  %vm3128_vm15 = vcmp.eq.f32.partialorder %v2977_v63, %v7472_v20  ;;  %v7690_v53 = vpop.f32.mrf.mxu3  ;;  %v2818_v63 = vpop.permute.xlu2 %2817 }
 0x395   : > { %v2099_v41 = vadd.f32 %v7699_v4, %v7690_v53 }
 0x396   : > { %v2166_v46 = vmax.f32 %v2079_v13, 0.0  ;;  %v2086_v13 = vadd.f32 %v7699_v4, %v7616_v39 }
 0x397   : > { %5596 = vmatmul.msk.bf16.gmra.mxu2 %vm2238_vm5, %v7228_v50 }
 0x398   : > { %v2206_v24 = vpack.c.bf16 %v2167_v40, %v2166_v46  ;;  %5624 = vmatmul.msk.bf16.gmra.mxu1 %vm693_vm1, %v2818_v63 }
 0x399   : > { %v7671_v38 = vpop.f32.mrf.mxu0 }
 0x39a   : > { %8978 = vst [vmem:[#allocation56_spill] sm:$0xff] %v7671_v38  ;;  %v7675_v5 = vpop.f32.mrf.mxu2 }
 0x39b   : > { %v2979_v50 = vpop.f32.mrf.mxu1 }
 0x39c   : > { %vm3129_vm0 = vcmp.eq.f32.partialorder %v2979_v50, %v7472_v20  ;;  %v2084_v50 = vadd.f32 %v7699_v4, %v7602_v47 }
 0x39d   : > { %vm5650_vm2 = vmpackc.low %vm3129_vm0, %vm3128_vm15 }
 0x39e   : > { %5651 = vmatmul.msk.bf16.gmra.mxu3 %vm5650_vm2, %v8925_v44  ;;  %v2168_v46 = vmax.f32 %v2084_v50, 0.0  ;;  %v2820_v50 = vpop.permute.xlu0 %2819 }
 0x3a1   : > { %v7684_v38 = vpop.f32.mrf.mxu0 }
 0x3a2   : > { %v7686_v58 = vpop.f32.mrf.mxu2 }
 0x3a3   : > { %v2982_v34 = vpop.f32.mrf.mxu1 }
 0x3a4   : > { %5556 = vmatmul.msk.bf16.gmra.mxu0 %vm2238_vm5, %v2206_v24  ;;  %vm3130_vm3 = vcmp.eq.f32.partialorder %v2982_v34, %v7472_v20  ;;  %v7716_v24 = vpop.f32.mrf.mxu3  ;;  %v8983_v34 = vld [vmem:[#allocation21_spill] sm:$0xff] }
 0x3a5   : > { %2847 = vrot.lane.b32.xlu0 %v8983_v34, %s6246_s8 }
 0x3a7   : > { %5597 = vmatmul.msk.bf16.gmra.mxu2 %vm2238_vm5, %v7254_v26  ;;  %v2169_v26 = vmax.f32 %v2086_v13, 0.0 }
 0x3a8   : > { %5625 = vmatmul.msk.bf16.gmra.mxu1 %vm693_vm1, %v2820_v50 }
 0x3a9   : > { %v7694_v59 = vpop.f32.mrf.mxu0  ;;  %v2207_v63 = vpack.c.bf16 %v2169_v26, %v2168_v46 }
 0x3aa   : > { %8979 = vst [vmem:[#allocation57_spill] sm:$0xff] %v7694_v59  ;;  %v7703_v40 = vpop.f32.mrf.mxu2 }
 0x3ab   : > { %v2984_v39 = vpop.f32.mrf.mxu1 }
 0x3ac   : > { %vm3131_vm4 = vcmp.eq.f32.partialorder %v2984_v39, %v7472_v20  ;;  %v2091_v39 = vadd.f32 %v7699_v4, %v7642_v54 }
 0x3ad   : > { %vm5652_vm6 = vmpackc.low %vm3131_vm4, %vm3130_vm3  ;;  %3910 = vrot.lane.b32.xlu0 %v6387_v61, %s6247_s20  ;;  %v8987_v61 = vld [vmem:[#allocation23_spill] sm:$0xff] }
 0x3ae   : > { %5653 = vmatmul.msk.bf16.gmra.mxu3 %vm5652_vm6, %v8925_v44  ;;  %2849 = vrot.lane.b32.xlu2 %v8987_v61, %s6246_s8 }
 0x3b1   : > { %v7718_v47 = vpop.f32.mrf.mxu0 }
 0x3b2   : > { %8980 = vst [vmem:[#allocation58_spill] sm:$0xff] %v7718_v47  ;;  %v7720_v37 = vpop.f32.mrf.mxu2  ;;  %v2089_v47 = vadd.f32 %v7699_v4, %v7630_v25 }
 0x3b3   : > { %v2987_v13 = vpop.f32.mrf.mxu1 }
 0x3b4   : > { %5557 = vmatmul.msk.bf16.gmra.mxu0 %vm2238_vm5, %v2207_v63  ;;  %v7739_v63 = vpop.f32.mrf.mxu3  ;;  %vm3132_vm7 = vcmp.eq.f32.partialorder %v2987_v13, %v7472_v20 }
 0x3b5   : > { %v2104_v22 = vadd.f32 %v7699_v4, %v7739_v63 }
 0x3b6   : > { %3912 = vrot.lane.b32.xlu2 %v6394_v9, %s6247_s20  ;;  %v8990_v9 = vld [vmem:[#allocation29_spill] sm:$0xff] }
 0x3b7   : > { %5598 = vmatmul.msk.bf16.gmra.mxu2 %vm2238_vm5, %v7278_v62  ;;  %v2171_v62 = vmax.f32 %v2091_v39, 0.0 }
 0x3b9   : > { %v7732_v26 = vpop.f32.mrf.mxu0 }
 0x3ba   : > { %8984 = vst [vmem:[#allocation19_spill] sm:$0xff] %v7732_v26  ;;  %v7736_v46 = vpop.f32.mrf.mxu2  ;;  %v2170_v26 = vmax.f32 %v2089_v47, 0.0  ;;  %v8988_v47 = vld [vmem:[#allocation27_spill] sm:$0xff] }
 0x3bb   : > { %v2989_v54 = vpop.f32.mrf.mxu1  ;;  %2853 = vrot.lane.b32.xlu0 %v8988_v47, %s6246_s8 }
 0x3bc   : > { %vm3133_vm8 = vcmp.eq.f32.partialorder %v2989_v54, %v7472_v20  ;;  %v2208_v25 = vpack.c.bf16 %v2171_v62, %v2170_v26  ;;  %v2105_v52 = vpop.f32.mrf.mxu3  ;;  %v2822_v26 = vpop.permute.xlu1 %2821  ;;  %v2096_v62 = vadd.f32 %v7699_v4, %v7680_v0 }
 0x3bd   : > { %vm5654_vm9 = vmpackc.low %vm3133_vm8, %vm3132_vm7  ;;  %5626 = vmatmul.msk.bf16.gmra.mxu1 %vm693_vm1, %v2822_v26 }
 0x3be   : > { %5655 = vmatmul.msk.bf16.gmra.mxu3 %vm5654_vm9, %v8925_v44  ;;  %2855 = vrot.lane.b32.xlu2 %v8990_v9, %s6246_s8 }
 0x3c1   : > { %v7751_v50 = vpop.f32.mrf.mxu0 }
 0x3c2   : > { %8985 = vst [vmem:[#allocation17_spill] sm:$0xff] %v7751_v50  ;;  %v7753_v59 = vpop.f32.mrf.mxu2 }
 0x3c3   : > { %v2992_v13 = vpop.f32.mrf.mxu1  ;;  %3916 = vrot.lane.b32.xlu0 %v6410_v31, %s6247_s20 }
 0x3c4   : > { %5558 = vmatmul.msk.bf16.gmra.mxu0 %vm2238_vm5, %v2208_v25  ;;  %v2094_v25 = vadd.f32 %v7699_v4, %v7660_v8  ;;  %vm3134_vm10 = vcmp.eq.f32.partialorder %v2992_v13, %v7472_v20  ;;  %v7781_v0 = vpop.f32.mrf.mxu3 }
 0x3c6   : > { %v2172_v50 = vmax.f32 %v2094_v25, 0.0  ;;  %3920 = vrot.lane.b32.xlu2 %v6426_v55, %s6247_s20  ;;  %v8992_v55 = vld [vmem:[#allocation5_spill] sm:$0xff] }
 0x3c7   : > { %5599 = vmatmul.msk.bf16.gmra.mxu2 %vm2238_vm5, %v7305_v33  ;;  %v2173_v33 = vmax.f32 %v2096_v62, 0.0  ;;  %v2101_v62 = vadd.f32 %v7699_v4, %v7716_v24  ;;  %v2174_v24 = vmax.f32 %v2099_v41, 0.0  ;;  %v2106_v41 = vadd.f32 %v7699_v4, %v2105_v52 }
 0x3c9   : > { %v7765_v39 = vpop.f32.mrf.mxu0  ;;  %v2209_v8 = vpack.c.bf16 %v2173_v33, %v2172_v50  ;;  %v2824_v50 = vpop.permute.xlu2 %2823 }
 0x3ca   : > { %8989 = vst [vmem:[#allocation21_spill] sm:$0xff] %v7765_v39  ;;  %v7769_v54 = vpop.f32.mrf.mxu2 }
 0x3cb   : > { %v2994_v39 = vpop.f32.mrf.mxu1  ;;  %3922 = vrot.lane.b32.xlu0 %v6437_v6, %s6247_s20  ;;  %v2175_v6 = vmax.f32 %v2101_v62, 0.0 }
 0x3cc   : > { %vm3135_vm11 = vcmp.eq.f32.partialorder %v2994_v39, %v7472_v20  ;;  %v2110_v13 = vpop.f32.mrf.mxu3 }
 0x3cd   : > { %vm5656_vm12 = vmpackc.low %vm3135_vm11, %vm3134_vm10  ;;  %5627 = vmatmul.msk.bf16.gmra.mxu1 %vm693_vm1, %v2824_v50  ;;  %v2210_v53 = vpack.c.bf16 %v2175_v6, %v2174_v24  ;;  %v2826_v50 = vpop.permute.xlu0 %2825 }
 0x3ce   : > { %5657 = vmatmul.msk.bf16.gmra.mxu3 %vm5656_vm12, %v8925_v44  ;;  %3926 = vrot.lane.b32.xlu2 %v8992_v55, %s6247_s20  ;;  %v2177_v55 = vmax.f32 %v2106_v41, 0.0 }
 0x3d1   : > { %v7784_v26 = vpop.f32.mrf.mxu0 }
 0x3d2   : > { %v7786_v18 = vpop.f32.mrf.mxu2 }
 0x3d3   : > { %v2997_v31 = vpop.f32.mrf.mxu1  ;;  %3928 = vrot.lane.b32.xlu0 %v6524_v1, %s6247_s20  ;;  %v8993_v1 = vld [vmem:[#allocation7_spill] sm:$0xff] }
 0x3d4   : > { %5559 = vmatmul.msk.bf16.gmra.mxu0 %vm2238_vm5, %v2209_v8  ;;  %vm3136_vm13 = vcmp.eq.f32.partialorder %v2997_v31, %v7472_v20  ;;  %v7820_v21 = vpop.f32.mrf.mxu3 }
 0x3d7   : > { %5600 = vmatmul.msk.bf16.gmra.mxu2 %vm2238_vm5, %v7330_v27 }
 0x3d9   : > { %v7798_v39 = vpop.f32.mrf.mxu0 }
 0x3da   : > { %v7802_v25 = vpop.f32.mrf.mxu2 }
 0x3db   : > { %v2999_v27 = vpop.f32.mrf.mxu1  ;;  %3934 = vrot.lane.b32.xlu0 %v8993_v1, %s6247_s20  ;;  %v2176_v1 = vmax.f32 %v2104_v22, 0.0  ;;  %v9001_v22 = vld [vmem:[#allocation13_spill] sm:$0xff] }
 0x3dc   : > { %vm3137_vm14 = vcmp.eq.f32.partialorder %v2999_v27, %v7472_v20  ;;  %v8995_v27 = vld [vmem:[#allocation8_spill] sm:$0xff]  ;;  %v2115_v24 = vpop.f32.mrf.mxu3 }
 0x3dd   : > { %vm5658_vm15 = vmpackc.low %vm3137_vm14, %vm3136_vm13  ;;  %5628 = vmatmul.msk.bf16.gmra.mxu1 %vm693_vm1, %v2826_v50  ;;  %3936 = vrot.lane.b32.xlu1 %v8995_v27, %s6247_s20  ;;  %v2211_v63 = vpack.c.bf16 %v2177_v55, %v2176_v1  ;;  %v8999_v27 = vld [vmem:[#allocation11_spill] sm:$0xff]  ;;  %v2111_v1 = vadd.f32 %v7699_v4, %v2110_v13 }
 0x3de   : > { %5659 = vmatmul.msk.bf16.gmra.mxu3 %vm5658_vm15, %v8925_v44  ;;  %v5915_v55 = vld [vmem:[%s8871_s5 + $0x50] sm:$0xff] }
 0x3df   : > { %3672 = vmatpush.bf16.msra.mxu0 %v5915_v55  ;;  %v9004_v55 = vld [vmem:[#allocation12_spill] sm:$0xff]  ;;  %v2179_v13 = vmax.f32 %v2111_v1, 0.0 }
 0x3e1   : > { %v7815_v33 = vpop.f32.mrf.mxu0 }
 0x3e2   : > { %8991 = vst [vmem:[#allocation25_spill] sm:$0xff] %v7815_v33  ;;  %v7817_v8 = vpop.f32.mrf.mxu2 }
 0x3e3   : > { %v3002_v31 = vpop.f32.mrf.mxu1 }
 0x3e4   : > { %5560 = vmatmul.msk.bf16.gmra.mxu0 %vm2238_vm5, %v2210_v53  ;;  %v8996_v53 = vld [vmem:[#allocation6_spill] sm:$0xff]  ;;  %vm3138_vm0 = vcmp.eq.f32.partialorder %v3002_v31, %v7472_v20  ;;  %v9000_v31 = vld [vmem:[#allocation9_spill] sm:$0xff] }
 0x3e5   : > { %3932 = vrot.lane.b32.xlu2 %v8996_v53, %s6247_s20  ;;  %3942 = vrot.lane.b32.xlu1 %v8999_v27, %s6247_s20  ;;  %v5914_v27 = vld [vmem:[%s8871_s5 + $0x48] sm:$0xff] }
 0x3e6   : > { %3673 = vmatpush.bf16.msra.mxu0 %v5914_v27 }
 0x3e7   : > { %5601 = vmatmul.msk.bf16.gmra.mxu2 %vm2238_vm5, %v7357_v45  ;;  %v8997_v45 = vld [vmem:[#allocation10_spill] sm:$0xff] }
 0x3e8   : > { %3940 = vrot.lane.b32.xlu0 %v8997_v45, %s6247_s20  ;;  %v2828_v45 = vpop.permute.xlu1 %2827 }
 0x3e9   : > { %v7831_v62 = vpop.f32.mrf.mxu0 }
 0x3ea   : > { %8994 = vst [vmem:[#allocation23_spill] sm:$0xff] %v7831_v62  ;;  %v7834_v6 = vpop.f32.mrf.mxu2 }
 0x3eb   : > { %v3004_v52 = vpop.f32.mrf.mxu1 }
 0x3ec   : > { %vm3139_vm2 = vcmp.eq.f32.partialorder %v3004_v52, %v7472_v20 }
 0x3ed   : > { %vm5660_vm3 = vmpackc.low %vm3139_vm2, %vm3138_vm0  ;;  %3938 = vrot.lane.b32.xlu2 %v9000_v31, %s6247_s20  ;;  %5629 = vmatmul.msk.bf16.gmra.mxu1 %vm693_vm1, %v2828_v45  ;;  %v9003_v31 = vld [vmem:[#allocation15_spill] sm:$0xff] }
 0x3ee   : > { %5661 = vmatmul.msk.bf16.gmra.mxu3 %vm5660_vm3, %v8925_v44  ;;  %3948 = vrot.lane.b32.xlu1 %v9003_v31, %s6247_s20 }
 0x3f0   : > { %3946 = vrot.lane.b32.xlu0 %v9001_v22, %s6247_s20 }
 0x3f1   : > { %v7847_v50 = vpop.f32.mrf.mxu0  ;;  %v7855_v41 = vpop.f32.mrf.mxu3 }
 0x3f2   : > { %8998 = vst [vmem:[#allocation27_spill] sm:$0xff] %v7847_v50  ;;  %v7849_v62 = vpop.f32.mrf.mxu2 }
 0x3f3   : > { %v3007_v53 = vpop.f32.mrf.mxu1 }
 0x3f4   : > { %5561 = vmatmul.msk.bf16.gmra.mxu0 %vm2238_vm5, %v2211_v63  ;;  %vm3140_vm4 = vcmp.eq.f32.partialorder %v3007_v53, %v7472_v20 }
 0x3f5   : > { %3944 = vrot.lane.b32.xlu2 %v9004_v55, %s6247_s20 }
 0x3f6   : > { %3954 = vrot.lane.b32.xlu1 %v8983_v34, %s6247_s20  ;;  %v2114_v34 = vadd.f32 %v7699_v4, %v7820_v21  ;;  %v5919_v21 = vld [vmem:[%s8871_s5 + $0x70] sm:$0xff] }
 0x3f7   : > { %5602 = vmatmul.msk.bf16.gmra.mxu2 %vm2238_vm5, %v7384_v2  ;;  %v2109_v2 = vadd.f32 %v7699_v4, %v7781_v0  ;;  %4779 = vmatpush.bf16.msra.mxu3 %v5919_v21 }
 0x3f8   : > { %3952 = vrot.lane.b32.xlu0 %v8981_v29, %s6247_s20 }
 0x3f9   : > { %v7866_v52 = vpop.f32.mrf.mxu0  ;;  %v3293_v22 = vpop.f32.mrf.mxu3  ;;  %v2178_v0 = vmax.f32 %v2109_v2, 0.0  ;;  %v2116_v2 = vadd.f32 %v7699_v4, %v2115_v24 }
 0x3fa   : > { %9002 = vst [vmem:[#allocation29_spill] sm:$0xff] %v7866_v52  ;;  %v7869_v63 = vpop.f32.mrf.mxu2  ;;  %v5913_v52 = vld [vmem:[%s8871_s5 + $0x40] sm:$0xff] }
 0x3fb   : > { %v3009_v45 = vpop.f32.mrf.mxu1  ;;  %3674 = vmatpush.bf16.msra.mxu0 %v5913_v52  ;;  %v2212_v27 = vpack.c.bf16 %v2179_v13, %v2178_v0  ;;  %v2830_v52 = vpop.permute.xlu2 %2829 }
 0x3fc   : > { %vm3141_vm6 = vcmp.eq.f32.partialorder %v3009_v45, %v7472_v20  ;;  %v2180_v45 = vmax.f32 %v2114_v34, 0.0 }
 0x3fd   : > { %vm5662_vm7 = vmpackc.low %vm3141_vm6, %vm3140_vm4  ;;  %3950 = vrot.lane.b32.xlu2 %v8982_v30, %s6247_s20  ;;  %5630 = vmatmul.msk.bf16.gmra.mxu1 %vm693_vm1, %v2830_v52  ;;  %v3292_v52 = vadd.f32 %v7699_v4, %v7855_v41 }
 0x3fe   : > { %5663 = vmatmul.msk.bf16.gmra.mxu3 %vm5662_vm7, %v8925_v44  ;;  %3960 = vrot.lane.b32.xlu1 %v8988_v47, %s6247_s20 }
 0x400   : > { %3958 = vrot.lane.b32.xlu0 %v8986_v42, %s6247_s20 }
 0x401   : > { %v7888_v31 = vpop.f32.mrf.mxu0  ;;  %v3296_v29 = vpop.f32.mrf.mxu3 }
 0x402   : > { %9005 = vst [vmem:[#allocation5_spill] sm:$0xff] %v7888_v31  ;;  %v7890_v55 = vpop.f32.mrf.mxu2 }
 0x403   : > { %v3012_v53 = vpop.f32.mrf.mxu1 }
 0x404   : > { %5562 = vmatmul.msk.bf16.gmra.mxu0 %vm2238_vm5, %v2212_v27  ;;  %vm3142_vm8 = vcmp.eq.f32.partialorder %v3012_v53, %v7472_v20  ;;  %v2832_v53 = vpop.permute.xlu0 %2831 }
 0x405   : > { %3956 = vrot.lane.b32.xlu2 %v8987_v61, %s6247_s20 }
 0x407   : > { %5603 = vmatmul.msk.bf16.gmra.mxu2 %vm2238_vm5, %v7405_v10  ;;  %v2181_v10 = vmax.f32 %v2116_v2, 0.0  ;;  %v3294_v2 = vadd.f32 %v7699_v4, %v3293_v22 }
 0x409   : > { %v7902_v1 = vpop.f32.mrf.mxu0  ;;  %v3298_v30 = vpop.f32.mrf.mxu3  ;;  %v2213_v0 = vpack.c.bf16 %v2181_v10, %v2180_v45  ;;  %v3452_v45 = vmax.f32 %v3294_v2, 0.0 }
 0x40a   : > { %9006 = vst [vmem:[#allocation7_spill] sm:$0xff] %v7902_v1  ;;  %v7905_v13 = vpop.f32.mrf.mxu2  ;;  %v3299_v2 = vadd.f32 %v7699_v4, %v3298_v30 }
 0x40b   : > { %v3014_v42 = vpop.f32.mrf.mxu1 }
 0x40c   : > { %vm3143_vm9 = vcmp.eq.f32.partialorder %v3014_v42, %v7472_v20  ;;  %v3451_v42 = vmax.f32 %v3292_v52, 0.0  ;;  %v2834_v52 = vpop.permute.xlu1 %2833 }
 0x40d   : > { %vm5664_vm10 = vmpackc.low %vm3143_vm9, %vm3142_vm8  ;;  %3962 = vrot.lane.b32.xlu2 %v8990_v9, %s6247_s20  ;;  %5631 = vmatmul.msk.bf16.gmra.mxu1 %vm693_vm1, %v2832_v53  ;;  %s5930_s20 = sshll.u32 %s6311_s28, 8  ;;  %s5204_s28 = scalar_lea.sflag [#allocation3], %s270_s21 }
 0x40e   : > { %5665 = vmatmul.msk.bf16.gmra.mxu3 %vm5664_vm10, %v8925_v44  ;;  %s5215_s8 = scalar_lea.hbm %s8873_s7, %s5930_s20 }
 0x40f   : > { %s5218_s13 = sshll.u32 %s5215_s8, 4  ;;  %s5219_s13 = int_to_ptr.hbm [resolvable:$true] %s5218_s13 }
 0x410   : > { %s6194_s14 = sshra.s32 %s5219_s13, 4  ;;  %s6195_s14 = int_to_ptr.hbm [resolvable:$true] %s6194_s14 }
 0x411   : > { %v7916_v24 = vpop.f32.mrf.mxu0  ;;  %v3301_v61 = vpop.f32.mrf.mxu3  ;;  %s6196_s15 = scalar_lea.hbm %s6195_s14, 256  ;;  %p6201_p0 = scmp.lt.s32.totalorder %s6195_s14, %s8873_s7 }
 0x412   : > { %9007 = vst [vmem:[#allocation8_spill] sm:$0xff] %v7916_v24  ;;  %v7921_v47 = vpop.f32.mrf.mxu2  ;;  %p6197_p11 = scmp.ne.s32.totalorder %s6195_s14, %s6196_s15  ;;  %p6202_p1 = scmp.lt.s32.totalorder %s6200_s18, %s6196_s15 }
 0x413   : > { %v3017_v27 = vpop.f32.mrf.mxu1 }
 0x414   : > { %5563 = vmatmul.msk.bf16.gmra.mxu0 %vm2238_vm5, %v2213_v0  ;;  %vm3144_vm11 = vcmp.eq.f32.partialorder %v3017_v27, %v7472_v20  ;;  %v3297_v27 = vadd.f32 %v7699_v4, %v3296_v29  ;;  %p6198_p12 = pnand %p6197_p11, %p6328_p5  ;;  %p6203_p2 = por %p6202_p1, %p6201_p0 }
 0x416   : > { %p6199_p13 = pneg %p6198_p12 }
 0x417   : > { %5604 = vmatmul.msk.bf16.gmra.mxu2 %vm2238_vm5, %v7428_v57  ;;  %v3515_v57 = vpack.c.bf16 %v3452_v45, %v3451_v42 }
 0x418   : > { %p6204_p3 = pnand %p6203_p2, %p6199_p13 }
 0x419   : > { %v7932_v34 = vpop.f32.mrf.mxu0  ;;  %v3303_v21 = vpop.f32.mrf.mxu3 }
 0x41a   : > { %9008 = vst [vmem:[#allocation6_spill] sm:$0xff] %v7932_v34  ;;  %v7934_v10 = vpop.f32.mrf.mxu2 }
 0x41b   : > { %v3019_v9 = vpop.f32.mrf.mxu1 }
 0x41c   : > { %vm3145_vm12 = vcmp.eq.f32.partialorder %v3019_v9, %v7472_v20  ;;  %v3453_v9 = vmax.f32 %v3297_v27, 0.0  ;;  %v2836_v27 = vpop.permute.xlu2 %2835 }
 0x41d   : > { %vm5666_vm13 = vmpackc.low %vm3145_vm12, %vm3144_vm11  ;;  %5632 = vmatmul.msk.bf16.gmra.mxu1 %vm693_vm1, %v2834_v52 }
 0x41e   : > { %5667 = vmatmul.msk.bf16.gmra.mxu3 %vm5666_vm13, %v8925_v44 }
 0x421   : > { %v7939_v0 = vpop.f32.mrf.mxu0  ;;  %v3306_v22 = vpop.f32.mrf.mxu3 }
 0x422   : > { %9009 = vst [vmem:[#allocation10_spill] sm:$0xff] %v7939_v0  ;;  %v7941_v41 = vpop.f32.mrf.mxu2  ;;  %v3454_v0 = vmax.f32 %v3299_v2, 0.0 }
 0x423   : > { %v3022_v53 = vpop.f32.mrf.mxu1 }
 0x424   : > { %5724 = vmatmul.msk.bf16.vlgmr.msra.gmra.mxu0 %vm2238_vm5, %v3515_v57  ;;  %vm3146_vm14 = vcmp.eq.f32.partialorder %v3022_v53, %v7472_v20  ;;  %v3516_v24 = vpack.c.bf16 %v3454_v0, %v3453_v9  ;;  %v3302_v53 = vadd.f32 %v7699_v4, %v3301_v61  ;;  %v3304_v0 = vadd.f32 %v7699_v4, %v3303_v21 }
 0x427   : > { %5605 = vmatmul.msk.bf16.gmra.mxu2 %vm2238_vm5, %v7449_v17 }
 0x429   : > { %v7949_v42 = vpop.f32.mrf.mxu0  ;;  %v3308_v34 = vpop.f32.mrf.mxu3 }
 0x42a   : > { %9010 = vst [vmem:[#allocation11_spill] sm:$0xff] %v7949_v42  ;;  %v7951_v45 = vpop.f32.mrf.mxu2 }
 0x42b   : > { %v3024_v57 = vpop.f32.mrf.mxu1 }
 0x42c   : > { %vm3147_vm15 = vcmp.eq.f32.partialorder %v3024_v57, %v7472_v20  ;;  %v3455_v57 = vmax.f32 %v3302_v53, 0.0  ;;  %v2838_v53 = vpop.permute.xlu0 %2837 }
 0x42d   : > { %vm5668_vm0 = vmpackc.low %vm3147_vm15, %vm3146_vm14  ;;  %5633 = vmatmul.msk.bf16.gmra.mxu1 %vm693_vm1, %v2836_v27 }
 0x42e   : > { %5669 = vmatmul.msk.bf16.gmra.mxu3 %vm5668_vm0, %v8925_v44 }
 0x431   : > { %v7956_v17 = vpop.f32.mrf.mxu0  ;;  %v3311_v30 = vpop.f32.mrf.mxu3 }
 0x432   : > { %9011 = vst [vmem:[#allocation9_spill] sm:$0xff] %v7956_v17  ;;  %v7958_v29 = vpop.f32.mrf.mxu2  ;;  %v3456_v17 = vmax.f32 %v3304_v0, 0.0 }
 0x433   : > { %v3027_v52 = vpop.f32.mrf.mxu1 }
 0x434   : > { %5725 = vmatmul.msk.bf16.gmra.mxu0 %vm2238_vm5, %v3516_v24  ;;  %vm3148_vm2 = vcmp.eq.f32.partialorder %v3027_v52, %v7472_v20  ;;  %v3517_v1 = vpack.c.bf16 %v3456_v17, %v3455_v57  ;;  %v3307_v52 = vadd.f32 %v7699_v4, %v3306_v22  ;;  %v3309_v17 = vadd.f32 %v7699_v4, %v3308_v34 }
 0x437   : > { %5606 = vmatmul.msk.bf16.gmra.mxu2 %vm2238_vm5, %v7477_v43 }
 0x439   : > { %v7966_v2 = vpop.f32.mrf.mxu0  ;;  %v3313_v42 = vpop.f32.mrf.mxu3 }
 0x43a   : > { %9012 = vst [vmem:[#allocation13_spill] sm:$0xff] %v7966_v2  ;;  %v7968_v9 = vpop.f32.mrf.mxu2 }
 0x43b   : > { %v3029_v24 = vpop.f32.mrf.mxu1 }
 0x43c   : > { %vm3149_vm3 = vcmp.eq.f32.partialorder %v3029_v24, %v7472_v20  ;;  %v3457_v24 = vmax.f32 %v3307_v52, 0.0  ;;  %v2840_v52 = vpop.permute.xlu1 %2839 }
 0x43d   : > { %vm5670_vm4 = vmpackc.low %vm3149_vm3, %vm3148_vm2  ;;  %5634 = vmatmul.msk.bf16.gmra.mxu1 %vm693_vm1, %v2838_v53 }
 0x43e   : > { %5671 = vmatmul.msk.bf16.gmra.mxu3 %vm5670_vm4, %v8925_v44 }
 0x441   : > { %v7973_v43 = vpop.f32.mrf.mxu0  ;;  %v3316_v21 = vpop.f32.mrf.mxu3 }
 0x442   : > { %9013 = vst [vmem:[#allocation15_spill] sm:$0xff] %v7973_v43  ;;  %v7975_v61 = vpop.f32.mrf.mxu2  ;;  %v3458_v43 = vmax.f32 %v3309_v17, 0.0 }
 0x443   : > { %v3032_v27 = vpop.f32.mrf.mxu1 }
 0x444   : > { %5726 = vmatmul.msk.bf16.gmra.mxu0 %vm2238_vm5, %v3517_v1  ;;  %vm3150_vm6 = vcmp.eq.f32.partialorder %v3032_v27, %v7472_v20  ;;  %v3518_v31 = vpack.c.bf16 %v3458_v43, %v3457_v24  ;;  %v3312_v27 = vadd.f32 %v7699_v4, %v3311_v30  ;;  %v3314_v43 = vadd.f32 %v7699_v4, %v3313_v42 }
 0x447   : > { %5607 = vmatmul.msk.bf16.gmra.mxu2 %vm2238_vm5, %v7502_v56 }
 0x449   : > { %v7983_v0 = vpop.f32.mrf.mxu0  ;;  %v3318_v2 = vpop.f32.mrf.mxu3 }
 0x44a   : > { %9014 = vst [vmem:[#allocation12_spill] sm:$0xff] %v7983_v0  ;;  %v7985_v57 = vpop.f32.mrf.mxu2 }
 0x44b   : > { %v3034_v1 = vpop.f32.mrf.mxu1 }
 0x44c   : > { %vm3151_vm7 = vcmp.eq.f32.partialorder %v3034_v1, %v7472_v20  ;;  %v3459_v1 = vmax.f32 %v3312_v27, 0.0  ;;  %v2842_v27 = vpop.permute.xlu0 %2841 }
 0x44d   : > { %vm5672_vm8 = vmpackc.low %vm3151_vm7, %vm3150_vm6  ;;  %5635 = vmatmul.msk.bf16.gmra.mxu1 %vm693_vm1, %v2840_v52 }
 0x44e   : > { %5673 = vmatmul.msk.bf16.gmra.mxu3 %vm5672_vm8, %v8925_v44 }
 0x451   : > { %v7990_v56 = vpop.f32.mrf.mxu0  ;;  %v3321_v34 = vpop.f32.mrf.mxu3 }
 0x452   : > { %9015 = vst [vmem:[#allocation59_spill] sm:$0xff] %v7990_v56  ;;  %v7992_v22 = vpop.f32.mrf.mxu2  ;;  %v3460_v56 = vmax.f32 %v3314_v43, 0.0 }
 0x453   : > { %v3037_v53 = vpop.f32.mrf.mxu1 }
 0x454   : > { %5727 = vmatmul.msk.bf16.gmra.mxu0 %vm2238_vm5, %v3518_v31  ;;  %vm3152_vm9 = vcmp.eq.f32.partialorder %v3037_v53, %v7472_v20  ;;  %v3519_v50 = vpack.c.bf16 %v3460_v56, %v3459_v1  ;;  %v3317_v53 = vadd.f32 %v7699_v4, %v3316_v21  ;;  %v3319_v56 = vadd.f32 %v7699_v4, %v3318_v2  ;;  %v8026_v21 = vld [vmem:[%s8868_s2] ss:$0 sm:$0xff] }
 0x457   : > { %5608 = vmatmul.msk.bf16.gmra.mxu2 %vm2238_vm5, %v7524_v16 }
 0x459   : > { %v8000_v17 = vpop.f32.mrf.mxu0  ;;  %v3323_v0 = vpop.f32.mrf.mxu3 }
 0x45a   : > { %9016 = vst [vmem:[#allocation60_spill] sm:$0xff] %v8000_v17  ;;  %v8002_v24 = vpop.f32.mrf.mxu2 }
 0x45b   : > { %9017 = vst [vmem:[#allocation61_spill] sm:$0xff] %v8002_v24  ;;  %v3039_v31 = vpop.f32.mrf.mxu1 }
 0x45c   : > { %vm3153_vm10 = vcmp.eq.f32.partialorder %v3039_v31, %v7472_v20  ;;  %v3461_v31 = vmax.f32 %v3317_v53, 0.0  ;;  %v3324_v53 = vadd.f32 %v7699_v4, %v3323_v0 }
 0x45d   : > { %vm5674_vm11 = vmpackc.low %vm3153_vm10, %vm3152_vm9  ;;  %5636 = vmatmul.msk.bf16.gmra.mxu1 %vm693_vm1, %v2842_v27 }
 0x45e   : > { %5675 = vmatmul.msk.bf16.gmra.mxu3 %vm5674_vm11, %v8925_v44 }
 0x461   : > { %v8007_v16 = vpop.f32.mrf.mxu0  ;;  %v3326_v42 = vpop.f32.mrf.mxu3 }
 0x462   : > { %9018 = vst [vmem:[#allocation62_spill] sm:$0xff] %v8007_v16  ;;  %v8009_v30 = vpop.f32.mrf.mxu2  ;;  %v3462_v16 = vmax.f32 %v3319_v56, 0.0 }
 0x463   : > { %9019 = vst [vmem:[#allocation63_spill] sm:$0xff] %v8009_v30  ;;  %v3042_v52 = vpop.f32.mrf.mxu1 }
 0x464   : > { %5728 = vmatmul.msk.bf16.gmra.mxu0 %vm2238_vm5, %v3519_v50  ;;  %v3901_v50 = vpop.permute.xlu2 %3900  ;;  %vm3154_vm12 = vcmp.eq.f32.partialorder %v3042_v52, %v7472_v20  ;;  %v3322_v52 = vadd.f32 %v7699_v4, %v3321_v34 }
 0x467   : > { %5609 = vmatmul.msk.bf16.gmra.mxu2 %vm2238_vm5, %v7548_v32  ;;  %v3520_v32 = vpack.c.bf16 %v3462_v16, %v3461_v31  ;;  %v3463_v31 = vmax.f32 %v3322_v52, 0.0 }
 0x469   : > { %v8017_v43 = vpop.f32.mrf.mxu0  ;;  %v3328_v17 = vpop.f32.mrf.mxu3 }
 0x46a   : > { %9020 = vst [vmem:[#allocation64_spill] sm:$0xff] %v8017_v43  ;;  %v8019_v1 = vpop.f32.mrf.mxu2 }
 0x46b   : > { %9021 = vst [vmem:[#allocation65_spill] sm:$0xff] %v8019_v1  ;;  %v3044_v30 = vpop.f32.mrf.mxu1 }
 0x46c   : > { %vm3155_vm13 = vcmp.eq.f32.partialorder %v3044_v30, %v8026_v21  ;;  %v2844_v16 = vpop.permute.xlu2 %2843 }
 0x46d   : > { %vm5676_vm14 = vmpackc.low %vm3155_vm13, %vm3154_vm12  ;;  %5637 = vmatmul.msk.bf16.gmra.mxu1 %vm693_vm1, %v2844_v16 }
 0x46e   : > { %5677 = vmatmul.msk.bf16.gmra.mxu3 %vm5676_vm14, %v8925_v44 }
 0x471   : > { %v8029_v2 = vpop.f32.mrf.mxu0  ;;  %v3331_v27 = vpop.f32.mrf.mxu3 }
 0x472   : > { %9022 = vst [vmem:[#allocation66_spill] sm:$0xff] %v8029_v2  ;;  %v8031_v43 = vpop.f32.mrf.mxu2  ;;  %v3464_v2 = vmax.f32 %v3324_v53, 0.0 }
 0x473   : > { %9023 = vst [vmem:[#allocation67_spill] sm:$0xff] %v8031_v43  ;;  %v3047_v20 = vpop.f32.mrf.mxu1 }
 0x474   : > { %5729 = vmatmul.msk.bf16.gmra.mxu0 %vm2238_vm5, %v3520_v32  ;;  %v3903_v32 = vpop.permute.xlu1 %3902  ;;  %vm3156_vm15 = vcmp.eq.f32.partialorder %v3047_v20, %v8026_v21  ;;  %v3327_v20 = vadd.f32 %v7699_v4, %v3326_v42 }
 0x477   : > { %5610 = vmatmul.msk.bf16.gmra.mxu2 %vm2238_vm5, %v7570_v19  ;;  %v3521_v19 = vpack.c.bf16 %v3464_v2, %v3463_v31  ;;  %v3329_v2 = vadd.f32 %v7699_v4, %v3328_v17  ;;  %v5918_v31 = vld [vmem:[%s8871_s5 + $0x68] sm:$0xff] }
 0x478   : > { %4780 = vmatpush.bf16.msra.mxu3 %v5918_v31 }
 0x479   : > { %v8039_v30 = vpop.f32.mrf.mxu0  ;;  %v3333_v43 = vpop.f32.mrf.mxu3 }
 0x47a   : > { %9024 = vst [vmem:[#allocation68_spill] sm:$0xff] %v8039_v30  ;;  %v8041_v56 = vpop.f32.mrf.mxu2 }
 0x47b   : > { %9025 = vst [vmem:[#allocation69_spill] sm:$0xff] %v8041_v56  ;;  %v3049_v1 = vpop.f32.mrf.mxu1 }
 0x47c   : > { %vm3157_vm0 = vcmp.eq.f32.partialorder %v3049_v1, %v8026_v21  ;;  %v2846_v52 = vpop.permute.xlu1 %2845 }
 0x47d   : > { %vm5678_vm2 = vmpackc.low %vm3157_vm0, %vm3156_vm15  ;;  %5638 = vmatmul.msk.bf16.gmra.mxu1 %vm693_vm1, %v2846_v52 }
 0x47e   : > { %5679 = vmatmul.msk.bf16.gmra.mxu3 %vm5678_vm2, %v8925_v44 }
 0x481   : > { %v8046_v24 = vpop.f32.mrf.mxu0  ;;  %v3336_v34 = vpop.f32.mrf.mxu3 }
 0x482   : > { %9026 = vst [vmem:[#allocation70_spill] sm:$0xff] %v8046_v24  ;;  %v8048_v0 = vpop.f32.mrf.mxu2  ;;  %v3466_v24 = vmax.f32 %v3329_v2, 0.0 }
 0x483   : > { %9027 = vst [vmem:[#allocation71_spill] sm:$0xff] %v8048_v0  ;;  %v3052_v16 = vpop.f32.mrf.mxu1 }
 0x484   : > { %5730 = vmatmul.msk.bf16.gmra.mxu0 %vm2238_vm5, %v3521_v19  ;;  %v3465_v19 = vmax.f32 %v3327_v20, 0.0  ;;  %vm3158_vm3 = vcmp.eq.f32.partialorder %v3052_v16, %v8026_v21  ;;  %v3332_v16 = vadd.f32 %v7699_v4, %v3331_v27 }
 0x486   : > { %v3522_v0 = vpack.c.bf16 %v3466_v24, %v3465_v19  ;;  %v3334_v24 = vadd.f32 %v7699_v4, %v3333_v43 }
 0x487   : > { %5611 = vmatmul.msk.bf16.gmra.mxu2 %vm2238_vm5, %v7594_v3  ;;  %v3905_v3 = vpop.permute.xlu0 %3904 }
 0x489   : > { %v8056_v1 = vpop.f32.mrf.mxu0  ;;  %v3338_v30 = vpop.f32.mrf.mxu3 }
 0x48a   : > { %9028 = vst [vmem:[#allocation72_spill] sm:$0xff] %v8056_v1  ;;  %v8058_v53 = vpop.f32.mrf.mxu2 }
 0x48b   : > { %9029 = vst [vmem:[#allocation73_spill] sm:$0xff] %v8058_v53  ;;  %v3054_v42 = vpop.f32.mrf.mxu1  ;;  %v8080_v53 = vpop.permute.xlu2 %3906 }
 0x48c   : > { %vm3159_vm4 = vcmp.eq.f32.partialorder %v3054_v42, %v8026_v21  ;;  %v3467_v42 = vmax.f32 %v3332_v16, 0.0 }
 0x48d   : > { %vm5680_vm6 = vmpackc.low %vm3159_vm4, %vm3158_vm3 }
 0x48e   : > { %5681 = vmatmul.msk.bf16.gmra.mxu3 %vm5680_vm6, %v8925_v44 }
 0x48f   : > { %v2848_v2 = vpop.permute.xlu0 %2847 }
 0x490   : > { %5639 = vmatmul.msk.bf16.gmra.mxu1 %vm693_vm1, %v2848_v2 }
 0x491   : > { %v8066_v17 = vpop.f32.mrf.mxu0  ;;  %v3341_v52 = vpop.f32.mrf.mxu3 }
 0x492   : > { %9030 = vst [vmem:[#allocation74_spill] sm:$0xff] %v8066_v17  ;;  %v8068_v1 = vpop.f32.mrf.mxu2  ;;  %v3468_v17 = vmax.f32 %v3334_v24, 0.0 }
 0x493   : > { %9031 = vst [vmem:[#allocation75_spill] sm:$0xff] %v8068_v1  ;;  %v3057_v20 = vpop.f32.mrf.mxu1  ;;  %v2850_v16 = vpop.permute.xlu2 %2849 }
 0x494   : > { %5731 = vmatmul.msk.bf16.gmra.mxu0 %vm2238_vm5, %v3522_v0  ;;  %vm3160_vm7 = vcmp.eq.f32.partialorder %v3057_v20, %v8026_v21  ;;  %v2634_v0 = vadd.f32 %v7488_v36, %v7294_v14  ;;  %v3523_v27 = vpack.c.bf16 %v3468_v17, %v3467_v42  ;;  %v2636_v14 = vadd.f32 %v7497_v11, %v7310_v49  ;;  %v9036_v49 = vld [vmem:[#allocation14_spill] sm:$0xff]  ;;  %v9037_v11 = vld [vmem:[#allocation39_spill] sm:$0xff] }
 0x495   : > { %v3337_v36 = vadd.f32 %v7699_v4, %v3336_v34  ;;  %v3339_v17 = vadd.f32 %v7699_v4, %v3338_v30  ;;  %v2639_v34 = vadd.f32 %v9037_v11, %v9036_v49  ;;  %v9041_v49 = vld [vmem:[#allocation41_spill] sm:$0xff] }
 0x497   : > { %5756 = vmatmul.msk.bf16.vlgmr.msra.gmra.mxu2 %vm693_vm1, %v3901_v50 }
 0x499   : > { %v8075_v31 = vpop.f32.mrf.mxu0  ;;  %v3343_v1 = vpop.f32.mrf.mxu3 }
 0x49a   : > { %9032 = vst [vmem:[#allocation76_spill] sm:$0xff] %v8075_v31  ;;  %v8077_v19 = vpop.f32.mrf.mxu2 }
 0x49b   : > { %9033 = vst [vmem:[#allocation77_spill] sm:$0xff] %v8077_v19  ;;  %v3059_v50 = vpop.f32.mrf.mxu1 }
 0x49c   : > { %vm3161_vm8 = vcmp.eq.f32.partialorder %v3059_v50, %v8026_v21 }
 0x49d   : > { %vm5682_vm9 = vmpackc.low %vm3161_vm8, %vm3160_vm7 }
 0x49e   : > { %5683 = vmatmul.msk.bf16.gmra.mxu3 %vm5682_vm9, %v8925_v44 }
 0x4a0   : > { %5640 = vmatmul.msk.bf16.gmra.mxu1 %vm693_vm1, %v2850_v16 }
 0x4a1   : > { %v3676_v43 = vpop.f32.mrf.mxu0  ;;  %v3346_v2 = vpop.f32.mrf.mxu3 }
 0x4a2   : > { %v8086_v31 = vadd.f32 %v3676_v43, %v2634_v0  ;;  %v8088_v19 = vpop.f32.mrf.mxu2  ;;  %v3469_v0 = vmax.f32 %v3337_v36, 0.0 }
 0x4a3   : > { %9034 = vst [vmem:[#allocation78_spill] sm:$0xff] %v8088_v19  ;;  %v3062_v20 = vpop.f32.mrf.mxu1 }
 0x4a4   : > { %5732 = vmatmul.msk.bf16.gmra.mxu0 %vm2238_vm5, %v3523_v27  ;;  %v3470_v27 = vmax.f32 %v3339_v17, 0.0  ;;  %vm3162_vm10 = vcmp.eq.f32.partialorder %v3062_v20, %v8026_v21  ;;  %v9040_v17 = vld [vmem:[#allocation16_spill] sm:$0xff] }
 0x4a6   : > { %v3524_v56 = vpack.c.bf16 %v3470_v27, %v3469_v0  ;;  %v2641_v0 = vadd.f32 %v9041_v49, %v9040_v17  ;;  %v3344_v27 = vadd.f32 %v7699_v4, %v3343_v1  ;;  %v9043_v17 = vld [vmem:[#allocation18_spill] sm:$0xff] }
 0x4a7   : > { %5757 = vmatmul.msk.bf16.gmra.mxu2 %vm693_vm1, %v3903_v32  ;;  %v8102_v32 = vpop.permute.xlu1 %3908  ;;  %v9044_v49 = vld [vmem:[#allocation42_spill] sm:$0xff] }
 0x4a9   : > { %v3678_v24 = vpop.f32.mrf.mxu0  ;;  %v3348_v43 = vpop.f32.mrf.mxu3 }
 0x4aa   : > { %v8097_v42 = vadd.f32 %v3678_v24, %v2636_v14  ;;  %v8099_v50 = vpop.f32.mrf.mxu2 }
 0x4ab   : > { %9035 = vst [vmem:[#allocation79_spill] sm:$0xff] %v8099_v50  ;;  %v3064_v19 = vpop.f32.mrf.mxu1 }
 0x4ac   : > { %vm3163_vm11 = vcmp.eq.f32.partialorder %v3064_v19, %v8026_v21  ;;  %v3342_v19 = vadd.f32 %v7699_v4, %v3341_v52  ;;  %v2644_v52 = vadd.f32 %v9044_v49, %v9043_v17 }
 0x4ad   : > { %vm5684_vm12 = vmpackc.low %vm3163_vm11, %vm3162_vm10 }
 0x4ae   : > { %5685 = vmatmul.msk.bf16.gmra.mxu3 %vm5684_vm12, %v8925_v44 }
 0x4af   : > { %v2852_v36 = vpop.permute.xlu1 %2851 }
 0x4b0   : > { %5641 = vmatmul.msk.bf16.gmra.mxu1 %vm693_vm1, %v2852_v36 }
 0x4b1   : > { %v3681_v30 = vpop.f32.mrf.mxu0  ;;  %v3351_v16 = vpop.f32.mrf.mxu3 }
 0x4b2   : > { %v8108_v14 = vadd.f32 %v3681_v30, %v2639_v34  ;;  %v8110_v24 = vpop.f32.mrf.mxu2 }
 0x4b3   : > { %9039 = vst [vmem:[#allocation39_spill] sm:$0xff] %v8110_v24  ;;  %v3067_v20 = vpop.f32.mrf.mxu1  ;;  %v3472_v24 = vmax.f32 %v3344_v27, 0.0  ;;  %v9047_v27 = vld [vmem:[#allocation20_spill] sm:$0xff] }
 0x4b4   : > { %9038 = vst [vmem:[#allocation14_spill] sm:$0xff] %v8108_v14  ;;  %5733 = vmatmul.msk.bf16.gmra.mxu0 %vm2238_vm5, %v3524_v56  ;;  %v3471_v56 = vmax.f32 %v3342_v19, 0.0  ;;  %vm3164_vm13 = vcmp.eq.f32.partialorder %v3067_v20, %v8026_v21 }
 0x4b6   : > { %v3525_v14 = vpack.c.bf16 %v3472_v24, %v3471_v56  ;;  %v2646_v24 = vadd.f32 %v7545_v35, %v9047_v27  ;;  %v3349_v56 = vadd.f32 %v7699_v4, %v3348_v43  ;;  %v9051_v35 = vld [vmem:[#allocation45_spill] sm:$0xff] }
 0x4b7   : > { %5758 = vmatmul.msk.bf16.gmra.mxu2 %vm693_vm1, %v3905_v3  ;;  %v8124_v3 = vpop.permute.xlu0 %3910 }
 0x4b9   : > { %v3683_v11 = vpop.f32.mrf.mxu0  ;;  %v3353_v50 = vpop.f32.mrf.mxu3 }
 0x4ba   : > { %v8119_v34 = vadd.f32 %v3683_v11, %v2641_v0  ;;  %v8121_v30 = vpop.f32.mrf.mxu2 }
 0x4bb   : > { %9042 = vst [vmem:[#allocation16_spill] sm:$0xff] %v8121_v30  ;;  %v3069_v33 = vpop.f32.mrf.mxu1 }
 0x4bc   : > { %vm3165_vm14 = vcmp.eq.f32.partialorder %v3069_v33, %v8026_v21  ;;  %v3347_v33 = vadd.f32 %v7699_v4, %v3346_v2 }
 0x4bd   : > { %vm5686_vm15 = vmpackc.low %vm3165_vm14, %vm3164_vm13 }
 0x4be   : > { %5687 = vmatmul.msk.bf16.gmra.mxu3 %vm5686_vm15, %v8925_v44 }
 0x4bf   : > { %v2854_v19 = vpop.permute.xlu0 %2853 }
 0x4c0   : > { %5642 = vmatmul.msk.bf16.gmra.mxu1 %vm693_vm1, %v2854_v19 }
 0x4c1   : > { %v3686_v1 = vpop.f32.mrf.mxu0  ;;  %v3356_v36 = vpop.f32.mrf.mxu3 }
 0x4c2   : > { %v8130_v0 = vadd.f32 %v3686_v1, %v2644_v52  ;;  %v8132_v11 = vpop.f32.mrf.mxu2  ;;  %v3474_v1 = vmax.f32 %v3349_v56, 0.0  ;;  %v9055_v56 = vld [vmem:[#allocation47_spill] sm:$0xff] }
 0x4c3   : > { %9046 = vst [vmem:[#allocation18_spill] sm:$0xff] %v8132_v11  ;;  %v3072_v20 = vpop.f32.mrf.mxu1 }
 0x4c4   : > { %9045 = vst [vmem:[#allocation41_spill] sm:$0xff] %v8130_v0  ;;  %5734 = vmatmul.msk.bf16.gmra.mxu0 %vm2238_vm5, %v3525_v14  ;;  %v3473_v14 = vmax.f32 %v3347_v33, 0.0  ;;  %vm3166_vm0 = vcmp.eq.f32.partialorder %v3072_v20, %v8026_v21  ;;  %v9050_v0 = vld [vmem:[#allocation31_spill] sm:$0xff] }
 0x4c5   : > { %v2649_v27 = vadd.f32 %v9051_v35, %v9050_v0  ;;  %v9054_v0 = vld [vmem:[#allocation22_spill] sm:$0xff] }
 0x4c6   : > { %v3526_v2 = vpack.c.bf16 %v3474_v1, %v3473_v14  ;;  %v2651_v14 = vadd.f32 %v9055_v56, %v9054_v0  ;;  %v3354_v1 = vadd.f32 %v7699_v4, %v3353_v50 }
 0x4c7   : > { %5759 = vmatmul.msk.bf16.gmra.mxu2 %vm693_vm1, %v8080_v53  ;;  %v3913_v53 = vpop.permute.xlu2 %3912 }
 0x4c9   : > { %v3688_v17 = vpop.f32.mrf.mxu0  ;;  %v3358_v11 = vpop.f32.mrf.mxu3 }
 0x4ca   : > { %v8142_v49 = vadd.f32 %v3688_v17, %v2646_v24  ;;  %v8144_v52 = vpop.f32.mrf.mxu2 }
 0x4cb   : > { %9049 = vst [vmem:[#allocation20_spill] sm:$0xff] %v8144_v52  ;;  %v3074_v30 = vpop.f32.mrf.mxu1 }
 0x4cc   : > { %9048 = vst [vmem:[#allocation42_spill] sm:$0xff] %v8142_v49  ;;  %vm3167_vm2 = vcmp.eq.f32.partialorder %v3074_v30, %v8026_v21  ;;  %v3352_v30 = vadd.f32 %v7699_v4, %v3351_v16  ;;  %v9058_v49 = vld [vmem:[#allocation49_spill] sm:$0xff] }
 0x4cd   : > { %vm5688_vm3 = vmpackc.low %vm3167_vm2, %vm3166_vm0 }
 0x4ce   : > { %5689 = vmatmul.msk.bf16.gmra.mxu3 %vm5688_vm3, %v8925_v44 }
 0x4cf   : > { %v2856_v33 = vpop.permute.xlu2 %2855 }
 0x4d0   : > { %5643 = vmatmul.msk.bf16.gmra.mxu1 %vm693_vm1, %v2856_v33 }
 0x4d1   : > { %v3691_v43 = vpop.f32.mrf.mxu0  ;;  %v3361_v19 = vpop.f32.mrf.mxu3 }
 0x4d2   : > { %v8151_v24 = vadd.f32 %v3691_v43, %v2649_v27  ;;  %v8153_v17 = vpop.f32.mrf.mxu2 }
 0x4d3   : > { %9053 = vst [vmem:[#allocation45_spill] sm:$0xff] %v8153_v17  ;;  %v3077_v20 = vpop.f32.mrf.mxu1  ;;  %v3476_v17 = vmax.f32 %v3354_v1, 0.0 }
 0x4d4   : > { %9052 = vst [vmem:[#allocation31_spill] sm:$0xff] %v8151_v24  ;;  %5735 = vmatmul.msk.bf16.gmra.mxu0 %vm2238_vm5, %v3526_v2  ;;  %v3475_v2 = vmax.f32 %v3352_v30, 0.0  ;;  %vm3168_vm4 = vcmp.eq.f32.partialorder %v3077_v20, %v8026_v21  ;;  %v9057_v24 = vld [vmem:[#allocation32_spill] sm:$0xff] }
 0x4d5   : > { %v2654_v0 = vadd.f32 %v9058_v49, %v9057_v24  ;;  %v9060_v30 = vld [vmem:[#allocation24_spill] sm:$0xff]  ;;  %v3357_v24 = vadd.f32 %v7699_v4, %v3356_v36 }
 0x4d6   : > { %v3527_v56 = vpack.c.bf16 %v3476_v17, %v3475_v2  ;;  %v2656_v49 = vadd.f32 %v7591_v60, %v9060_v30  ;;  %v3359_v17 = vadd.f32 %v7699_v4, %v3358_v11  ;;  %v9063_v30 = vld [vmem:[#allocation26_spill] sm:$0xff] }
 0x4d7   : > { %5760 = vmatmul.msk.bf16.gmra.mxu2 %vm693_vm1, %v8102_v32 }
 0x4d9   : > { %v3693_v35 = vpop.f32.mrf.mxu0  ;;  %v3363_v52 = vpop.f32.mrf.mxu3 }
 0x4da   : > { %v8163_v27 = vadd.f32 %v3693_v35, %v2651_v14  ;;  %v8165_v43 = vpop.f32.mrf.mxu2 }
 0x4db   : > { %9056 = vst [vmem:[#allocation22_spill] sm:$0xff] %v8165_v43  ;;  %v3079_v32 = vpop.f32.mrf.mxu1 }
 0x4dc   : > { %vm3169_vm6 = vcmp.eq.f32.partialorder %v3079_v32, %v8026_v21  ;;  %v3477_v32 = vmax.f32 %v3357_v24, 0.0 }
 0x4dd   : > { %vm5690_vm7 = vmpackc.low %vm3169_vm6, %vm3168_vm4 }
 0x4de   : > { %5691 = vmatmul.msk.bf16.gmra.mxu3 %vm5690_vm7, %v8925_v44 }
 0x4e1   : > { %v3696_v50 = vpop.f32.mrf.mxu0  ;;  %v3366_v33 = vpop.f32.mrf.mxu3 }
 0x4e2   : > { %v8172_v16 = vadd.f32 %v3696_v50, %v2654_v0  ;;  %v8174_v14 = vpop.f32.mrf.mxu2  ;;  %v3478_v0 = vmax.f32 %v3359_v17, 0.0 }
 0x4e3   : > { %9059 = vst [vmem:[#allocation47_spill] sm:$0xff] %v8174_v14  ;;  %v3082_v20 = vpop.f32.mrf.mxu1 }
 0x4e4   : > { %5736 = vmatmul.msk.bf16.gmra.mxu0 %vm2238_vm5, %v3527_v56  ;;  %vm3170_vm8 = vcmp.eq.f32.partialorder %v3082_v20, %v8026_v21  ;;  %v3528_v43 = vpack.c.bf16 %v3478_v0, %v3477_v32 }
 0x4e7   : > { %5761 = vmatmul.msk.bf16.gmra.mxu2 %vm693_vm1, %v8124_v3  ;;  %v9061_v3 = vld [vmem:[#allocation33_spill] sm:$0xff] }
 0x4e8   : > { %v2659_v14 = vadd.f32 %v7604_v28, %v9061_v3  ;;  %v2661_v28 = vadd.f32 %v7613_v23, %v9063_v30 }
 0x4e9   : > { %v3698_v1 = vpop.f32.mrf.mxu0  ;;  %v3368_v56 = vpop.f32.mrf.mxu3 }
 0x4ea   : > { %v8184_v35 = vadd.f32 %v3698_v1, %v2656_v49  ;;  %v8186_v2 = vpop.f32.mrf.mxu2  ;;  %v8204_v49 = vld [vmem:[%s8870_s4] ss:$0 sm:$0xff] }
 0x4eb   : > { %v3084_v50 = vpop.f32.mrf.mxu1  ;;  %v3364_v24 = vadd.f32 %v8204_v49, %v3363_v52 }
 0x4ec   : > { %vm3171_vm9 = vcmp.eq.f32.partialorder %v3084_v50, %v8026_v21  ;;  %v9065_v50 = vld [vmem:[#allocation34_spill] sm:$0xff] }
 0x4ed   : > { %vm5692_vm10 = vmpackc.low %vm3171_vm9, %vm3170_vm8  ;;  %v2664_v3 = vadd.f32 %v7625_v48, %v9065_v50 }
 0x4ee   : > { %5693 = vmatmul.msk.bf16.gmra.mxu3 %vm5692_vm10, %v8925_v44 }
 0x4f1   : > { %v3701_v60 = vpop.f32.mrf.mxu0  ;;  %v3371_v36 = vpop.f32.mrf.mxu3 }
 0x4f2   : > { %v8192_v4 = vadd.f32 %v3701_v60, %v2659_v14  ;;  %v8194_v11 = vpop.f32.mrf.mxu2  ;;  %v3362_v14 = vadd.f32 %v8204_v49, %v3361_v19 }
 0x4f3   : > { %9062 = vst [vmem:[#allocation32_spill] sm:$0xff] %v8194_v11  ;;  %v3087_v20 = vpop.f32.mrf.mxu1 }
 0x4f4   : > { %5737 = vmatmul.msk.bf16.gmra.mxu0 %vm2238_vm5, %v3528_v43  ;;  %v3479_v32 = vmax.f32 %v3362_v14, 0.0  ;;  %vm3172_vm11 = vcmp.eq.f32.partialorder %v3087_v20, %v8026_v21 }
 0x4f7   : > { %5762 = vmatmul.msk.bf16.gmra.mxu2 %vm693_vm1, %v3913_v53  ;;  %v3480_v53 = vmax.f32 %v3364_v24, 0.0  ;;  %v9067_v24 = vld [vmem:[#allocation28_spill] sm:$0xff] }
 0x4f8   : > { %v2666_v48 = vadd.f32 %v7636_v7, %v9067_v24  ;;  %v5917_v24 = vld [vmem:[%s8871_s5 + $0x60] sm:$0xff] }
 0x4f9   : > { %v3703_v17 = vpop.f32.mrf.mxu0  ;;  %v3373_v0 = vpop.f32.mrf.mxu3  ;;  %v3529_v60 = vpack.c.bf16 %v3480_v53, %v3479_v32  ;;  %v3369_v32 = vadd.f32 %v8204_v49, %v3368_v56  ;;  %4781 = vmatpush.bf16.msra.mxu3 %v5917_v24 }
 0x4fa   : > { %v8208_v1 = vadd.f32 %v3703_v17, %v2661_v28  ;;  %v8210_v43 = vpop.f32.mrf.mxu2  ;;  %v3915_v28 = vpop.permute.xlu1 %3914  ;;  %v3367_v17 = vadd.f32 %v8204_v49, %v3366_v33 }
 0x4fb   : > { %9064 = vst [vmem:[#allocation49_spill] sm:$0xff] %v8210_v43  ;;  %v3089_v23 = vpop.f32.mrf.mxu1 }
 0x4fc   : > { %vm3173_vm12 = vcmp.eq.f32.partialorder %v3089_v23, %v8026_v21 }
 0x4fd   : > { %vm5694_vm13 = vmpackc.low %vm3173_vm12, %vm3172_vm11 }
 0x4fe   : > { %5695 = vmatmul.msk.bf16.gmra.mxu3 %vm5694_vm13, %v8925_v44 }
 0x501   : > { %v3706_v19 = vpop.f32.mrf.mxu0  ;;  %v3376_v14 = vpop.f32.mrf.mxu3 }
 0x502   : > { %v8216_v52 = vadd.f32 %v3706_v19, %v2664_v3  ;;  %v8218_v30 = vpop.f32.mrf.mxu2  ;;  %v3481_v3 = vmax.f32 %v3367_v17, 0.0  ;;  %v3482_v19 = vmax.f32 %v3369_v32, 0.0  ;;  %v3372_v17 = vadd.f32 %v8204_v49, %v3371_v36 }
 0x503   : > { %9066 = vst [vmem:[#allocation24_spill] sm:$0xff] %v8218_v30  ;;  %v3092_v20 = vpop.f32.mrf.mxu1  ;;  %v3374_v32 = vadd.f32 %v8204_v49, %v3373_v0 }
 0x504   : > { %5738 = vmatmul.msk.bf16.gmra.mxu0 %vm2238_vm5, %v3529_v60  ;;  %vm3174_vm14 = vcmp.eq.f32.partialorder %v3092_v20, %v8026_v21  ;;  %v3530_v11 = vpack.c.bf16 %v3482_v19, %v3481_v3  ;;  %v3917_v20 = vpop.permute.xlu0 %3916 }
 0x507   : > { %5763 = vmatmul.msk.bf16.gmra.mxu2 %vm693_vm1, %v3915_v28  ;;  %v9069_v28 = vld [vmem:[#allocation35_spill] sm:$0xff] }
 0x508   : > { %v2669_v43 = vadd.f32 %v7648_v12, %v9069_v28  ;;  %v3483_v28 = vmax.f32 %v3372_v17, 0.0  ;;  %v3377_v17 = vadd.f32 %v8204_v49, %v3376_v14 }
 0x509   : > { %v3708_v53 = vpop.f32.mrf.mxu0  ;;  %v3378_v60 = vpop.f32.mrf.mxu3 }
 0x50a   : > { %v8227_v23 = vadd.f32 %v3708_v53, %v2666_v48  ;;  %v8229_v50 = vpop.f32.mrf.mxu2  ;;  %v9071_v48 = vld [vmem:[#allocation36_spill] sm:$0xff] }
 0x50b   : > { %9068 = vst [vmem:[#allocation33_spill] sm:$0xff] %v8229_v50  ;;  %v3094_v30 = vpop.f32.mrf.mxu1 }
 0x50c   : > { %vm3175_vm15 = vcmp.eq.f32.partialorder %v3094_v30, %v8026_v21 }
 0x50d   : > { %vm5696_vm0 = vmpackc.low %vm3175_vm15, %vm3174_vm14 }
 0x50e   : > { %5697 = vmatmul.msk.bf16.gmra.mxu3 %vm5696_vm0, %v8925_v44 }
 0x511   : > { %v3711_v7 = vpop.f32.mrf.mxu0  ;;  %v3381_v12 = vpop.f32.mrf.mxu3 }
 0x512   : > { %v8235_v33 = vadd.f32 %v3711_v7, %v2669_v43  ;;  %v8237_v56 = vpop.f32.mrf.mxu2  ;;  %v2671_v43 = vadd.f32 %v7662_v15, %v9071_v48  ;;  %v3484_v7 = vmax.f32 %v3374_v32, 0.0  ;;  %v9073_v48 = vld [vmem:[#allocation38_spill] sm:$0xff]  ;;  %v3379_v32 = vadd.f32 %v8204_v49, %v3378_v60 }
 0x513   : > { %9070 = vst [vmem:[#allocation26_spill] sm:$0xff] %v8237_v56  ;;  %v3097_v30 = vpop.f32.mrf.mxu1  ;;  %v9072_v56 = vld [vmem:[#allocation37_spill] sm:$0xff] }
 0x514   : > { %5739 = vmatmul.msk.bf16.gmra.mxu0 %vm2238_vm5, %v3530_v11  ;;  %vm3176_vm2 = vcmp.eq.f32.partialorder %v3097_v30, %v8026_v21  ;;  %v3531_v50 = vpack.c.bf16 %v3484_v7, %v3483_v28  ;;  %v3919_v30 = vpop.permute.xlu1 %3918  ;;  %v3485_v7 = vmax.f32 %v3377_v17, 0.0 }
 0x517   : > { %5764 = vmatmul.msk.bf16.gmra.mxu2 %vm693_vm1, %v3917_v20  ;;  %v2674_v20 = vadd.f32 %v7675_v5, %v9072_v56 }
 0x519   : > { %v3713_v53 = vpop.f32.mrf.mxu0  ;;  %v3383_v11 = vpop.f32.mrf.mxu3 }
 0x51a   : > { %v8249_v3 = vadd.f32 %v3713_v53, %v2671_v43  ;;  %v4069_v19 = vpop.f32.mrf.mxu2  ;;  %v2676_v43 = vadd.f32 %v7686_v58, %v9073_v48 }
 0x51b   : > { %v3099_v24 = vpop.f32.mrf.mxu1  ;;  %vm4229_vm6 = vcmp.eq.f32.partialorder %v4069_v19, %v8026_v21 }
 0x51c   : > { %vm3177_vm3 = vcmp.eq.f32.partialorder %v3099_v24, %v8026_v21 }
 0x51d   : > { %vm5698_vm4 = vmpackc.low %vm3177_vm3, %vm3176_vm2 }
 0x51e   : > { %5699 = vmatmul.msk.bf16.gmra.mxu3 %vm5698_vm4, %v8925_v44 }
 0x521   : > { %v3716_v15 = vpop.f32.mrf.mxu0  ;;  %v3386_v5 = vpop.f32.mrf.mxu3 }
 0x522   : > { %v8255_v36 = vadd.f32 %v3716_v15, %v2674_v20  ;;  %v4071_v0 = vpop.f32.mrf.mxu2  ;;  %v9074_v15 = vld [vmem:[#allocation40_spill] sm:$0xff] }
 0x523   : > { %vm4230_vm7 = vcmp.eq.f32.partialorder %v4071_v0, %v8026_v21  ;;  %v3102_v56 = vpop.f32.mrf.mxu1  ;;  %v2679_v0 = vadd.f32 %v7703_v40, %v9074_v15 }
 0x524   : > { %vm5788_vm8 = vmpackc.low %vm4230_vm7, %vm4229_vm6  ;;  %5740 = vmatmul.msk.bf16.gmra.mxu0 %vm2238_vm5, %v3531_v50  ;;  %v3486_v50 = vmax.f32 %v3379_v32, 0.0  ;;  %vm3178_vm9 = vcmp.eq.f32.partialorder %v3102_v56, %v8026_v21  ;;  %v3921_v56 = vpop.permute.xlu2 %3920  ;;  %v3382_v32 = vadd.f32 %v8204_v49, %v3381_v12 }
 0x525   : > { %5789 = vmatmul.msk.bf16.vlgmr.msra.gmra.mxu1 %vm5788_vm8, %v8925_v44 }
 0x527   : > { %5765 = vmatmul.msk.bf16.gmra.mxu2 %vm693_vm1, %v3919_v30  ;;  %v3532_v30 = vpack.c.bf16 %v3486_v50, %v3485_v7 }
 0x529   : > { %v3718_v53 = vpop.f32.mrf.mxu0  ;;  %v3388_v24 = vpop.f32.mrf.mxu3 }
 0x52a   : > { %v8267_v19 = vadd.f32 %v3718_v53, %v2676_v43  ;;  %v4074_v28 = vpop.f32.mrf.mxu2  ;;  %v9075_v43 = vld [vmem:[#allocation30_spill] sm:$0xff]  ;;  %v3384_v53 = vadd.f32 %v8204_v49, %v3383_v11 }
 0x52b   : > { %v3104_v20 = vpop.f32.mrf.mxu1  ;;  %vm4231_vm12 = vcmp.eq.f32.partialorder %v4074_v28, %v8026_v21  ;;  %v2681_v17 = vadd.f32 %v7720_v37, %v9075_v43 }
 0x52c   : > { %vm3179_vm10 = vcmp.eq.f32.partialorder %v3104_v20, %v8026_v21  ;;  %v3487_v20 = vmax.f32 %v3382_v32, 0.0  ;;  %v3488_v15 = vmax.f32 %v3384_v53, 0.0  ;;  %v3387_v53 = vadd.f32 %v8204_v49, %v3386_v5 }
 0x52d   : > { %vm5700_vm11 = vmpackc.low %vm3179_vm10, %vm3178_vm9 }
 0x52e   : > { %5701 = vmatmul.msk.bf16.gmra.mxu3 %vm5700_vm11, %v8925_v44 }
 0x531   : > { %v3721_v58 = vpop.f32.mrf.mxu0  ;;  %v3391_v40 = vpop.f32.mrf.mxu3 }
 0x532   : > { %v8273_v14 = vadd.f32 %v3721_v58, %v2679_v0  ;;  %v4076_v60 = vpop.f32.mrf.mxu2  ;;  %v9076_v58 = vld [vmem:[#allocation43_spill] sm:$0xff] }
 0x533   : > { %vm4232_vm13 = vcmp.eq.f32.partialorder %v4076_v60, %v8026_v21  ;;  %v3107_v48 = vpop.f32.mrf.mxu1  ;;  %v2684_v60 = vadd.f32 %v7736_v46, %v9076_v58 }
 0x534   : > { %vm5790_vm14 = vmpackc.low %vm4232_vm13, %vm4231_vm12  ;;  %5741 = vmatmul.msk.bf16.gmra.mxu0 %vm2238_vm5, %v3532_v30  ;;  %vm3180_vm15 = vcmp.eq.f32.partialorder %v3107_v48, %v8026_v21  ;;  %v3923_v48 = vpop.permute.xlu0 %3922 }
 0x535   : > { %5791 = vmatmul.msk.bf16.gmra.mxu1 %vm5790_vm14, %v8925_v44 }
 0x537   : > { %5766 = vmatmul.msk.bf16.gmra.mxu2 %vm693_vm1, %v3921_v56  ;;  %v3533_v56 = vpack.c.bf16 %v3488_v15, %v3487_v20 }
 0x539   : > { %v3723_v28 = vpop.f32.mrf.mxu0  ;;  %v3393_v0 = vpop.f32.mrf.mxu3 }
 0x53a   : > { %v8285_v7 = vadd.f32 %v3723_v28, %v2681_v17  ;;  %v4079_v50 = vpop.f32.mrf.mxu2  ;;  %v9077_v17 = vld [vmem:[#allocation44_spill] sm:$0xff]  ;;  %v3389_v28 = vadd.f32 %v8204_v49, %v3388_v24 }
 0x53b   : > { %v3109_v30 = vpop.f32.mrf.mxu1  ;;  %vm4233_vm3 = vcmp.eq.f32.partialorder %v4079_v50, %v8026_v21  ;;  %v2686_v32 = vadd.f32 %v7753_v59, %v9077_v17 }
 0x53c   : > { %vm3181_vm0 = vcmp.eq.f32.partialorder %v3109_v30, %v8026_v21  ;;  %v3489_v30 = vmax.f32 %v3387_v53, 0.0  ;;  %v3490_v58 = vmax.f32 %v3389_v28, 0.0  ;;  %v3392_v28 = vadd.f32 %v8204_v49, %v3391_v40 }
 0x53d   : > { %vm5702_vm2 = vmpackc.low %vm3181_vm0, %vm3180_vm15 }
 0x53e   : > { %5703 = vmatmul.msk.bf16.gmra.mxu3 %vm5702_vm2, %v8925_v44 }
 0x541   : > { %v3726_v37 = vpop.f32.mrf.mxu0  ;;  %v3396_v46 = vpop.f32.mrf.mxu3 }
 0x542   : > { %v8291_v12 = vadd.f32 %v3726_v37, %v2684_v60  ;;  %v4081_v11 = vpop.f32.mrf.mxu2  ;;  %v9078_v37 = vld [vmem:[#allocation46_spill] sm:$0xff] }
 0x543   : > { %vm4234_vm4 = vcmp.eq.f32.partialorder %v4081_v11, %v8026_v21  ;;  %v3112_v43 = vpop.f32.mrf.mxu1  ;;  %v2689_v11 = vadd.f32 %v7769_v54, %v9078_v37 }
 0x544   : > { %vm5792_vm6 = vmpackc.low %vm4234_vm4, %vm4233_vm3  ;;  %5742 = vmatmul.msk.bf16.gmra.mxu0 %vm2238_vm5, %v3533_v56  ;;  %vm3182_vm7 = vcmp.eq.f32.partialorder %v3112_v43, %v8026_v21  ;;  %v3925_v43 = vpop.permute.xlu1 %3924 }
 0x545   : > { %5793 = vmatmul.msk.bf16.gmra.mxu1 %vm5792_vm6, %v8925_v44 }
 0x547   : > { %5767 = vmatmul.msk.bf16.gmra.mxu2 %vm693_vm1, %v3923_v48  ;;  %v3534_v48 = vpack.c.bf16 %v3490_v58, %v3489_v30 }
 0x549   : > { %v3728_v50 = vpop.f32.mrf.mxu0  ;;  %v3398_v60 = vpop.f32.mrf.mxu3 }
 0x54a   : > { %v8303_v20 = vadd.f32 %v3728_v50, %v2686_v32  ;;  %v4084_v15 = vpop.f32.mrf.mxu2  ;;  %v9079_v32 = vld [vmem:[#allocation48_spill] sm:$0xff]  ;;  %v3394_v50 = vadd.f32 %v8204_v49, %v3393_v0 }
 0x54b   : > { %v3114_v56 = vpop.f32.mrf.mxu1  ;;  %vm4235_vm10 = vcmp.eq.f32.partialorder %v4084_v15, %v8026_v21  ;;  %v2691_v53 = vadd.f32 %v7786_v18, %v9079_v32  ;;  %v3397_v32 = vadd.f32 %v8204_v49, %v3396_v46 }
 0x54c   : > { %vm3183_vm8 = vcmp.eq.f32.partialorder %v3114_v56, %v8026_v21  ;;  %v3491_v56 = vmax.f32 %v3392_v28, 0.0  ;;  %v3492_v37 = vmax.f32 %v3394_v50, 0.0 }
 0x54d   : > { %vm5704_vm9 = vmpackc.low %vm3183_vm8, %vm3182_vm7 }
 0x54e   : > { %5705 = vmatmul.msk.bf16.gmra.mxu3 %vm5704_vm9, %v8925_v44 }
 0x551   : > { %v3731_v59 = vpop.f32.mrf.mxu0  ;;  %v3401_v54 = vpop.f32.mrf.mxu3 }
 0x552   : > { %v8309_v5 = vadd.f32 %v3731_v59, %v2689_v11  ;;  %v4086_v24 = vpop.f32.mrf.mxu2  ;;  %v2694_v59 = vadd.f32 %v7802_v25, %v7589_v51  ;;  %v9080_v25 = vld [vmem:[#allocation50_spill] sm:$0xff] }
 0x553   : > { %vm4236_vm11 = vcmp.eq.f32.partialorder %v4086_v24, %v8026_v21  ;;  %v3117_v17 = vpop.f32.mrf.mxu1  ;;  %v3535_v24 = vpack.c.bf16 %v3492_v37, %v3491_v56 }
 0x554   : > { %vm5794_vm12 = vmpackc.low %vm4236_vm11, %vm4235_vm10  ;;  %5743 = vmatmul.msk.bf16.gmra.mxu0 %vm2238_vm5, %v3534_v48  ;;  %vm3184_vm13 = vcmp.eq.f32.partialorder %v3117_v17, %v8026_v21  ;;  %v2696_v17 = vadd.f32 %v7817_v8, %v9080_v25  ;;  %v3929_v8 = vpop.permute.xlu0 %3928  ;;  %v3402_v25 = vadd.f32 %v8204_v49, %v3401_v54 }
 0x555   : > { %5795 = vmatmul.msk.bf16.gmra.mxu1 %vm5794_vm12, %v8925_v44 }
 0x557   : > { %5768 = vmatmul.msk.bf16.gmra.mxu2 %vm693_vm1, %v3925_v43  ;;  %v3927_v43 = vpop.permute.xlu2 %3926 }
 0x559   : > { %v3733_v15 = vpop.f32.mrf.mxu0  ;;  %v3403_v11 = vpop.f32.mrf.mxu3 }
 0x55a   : > { %v8321_v30 = vadd.f32 %v3733_v15, %v2691_v53  ;;  %v4089_v58 = vpop.f32.mrf.mxu2  ;;  %v3399_v53 = vadd.f32 %v8204_v49, %v3398_v60  ;;  %v9082_v60 = vld [vmem:[#allocation52_spill] sm:$0xff] }
 0x55b   : > { %v3119_v48 = vpop.f32.mrf.mxu1  ;;  %vm4237_vm0 = vcmp.eq.f32.partialorder %v4089_v58, %v8026_v21  ;;  %v3493_v58 = vmax.f32 %v3397_v32, 0.0 }
 0x55c   : > { %vm3185_vm14 = vcmp.eq.f32.partialorder %v3119_v48, %v8026_v21  ;;  %v3494_v56 = vmax.f32 %v3399_v53, 0.0  ;;  %v9081_v48 = vld [vmem:[#allocation51_spill] sm:$0xff] }
 0x55d   : > { %vm5706_vm15 = vmpackc.low %vm3185_vm14, %vm3184_vm13 }
 0x55e   : > { %5707 = vmatmul.msk.bf16.gmra.mxu3 %vm5706_vm15, %v8925_v44 }
 0x561   : > { %v3736_v18 = vpop.f32.mrf.mxu0  ;;  %v3406_v51 = vpop.f32.mrf.mxu3 }
 0x562   : > { %v8327_v40 = vadd.f32 %v3736_v18, %v2694_v59  ;;  %v4091_v0 = vpop.f32.mrf.mxu2  ;;  %v2699_v59 = vadd.f32 %v7834_v6, %v9081_v48  ;;  %v2701_v6 = vadd.f32 %v7849_v62, %v9082_v60  ;;  %v9083_v48 = vld [vmem:[#allocation53_spill] sm:$0xff]  ;;  %v3931_v62 = vpop.permute.xlu1 %3930  ;;  %v3407_v60 = vadd.f32 %v8204_v49, %v3406_v51 }
 0x563   : > { %vm4238_vm2 = vcmp.eq.f32.partialorder %v4091_v0, %v8026_v21 }
 0x564   : > { %vm5796_vm3 = vmpackc.low %vm4238_vm2, %vm4237_vm0  ;;  %5744 = vmatmul.msk.bf16.gmra.mxu0 %vm2238_vm5, %v3535_v24  ;;  %v3536_v24 = vpack.c.bf16 %v3494_v56, %v3493_v58 }
 0x565   : > { %5797 = vmatmul.msk.bf16.gmra.mxu1 %vm5796_vm3, %v8925_v44 }
 0x567   : > { %5769 = vmatmul.msk.bf16.gmra.mxu2 %vm693_vm1, %v3927_v43 }
 0x569   : > { %v3738_v28 = vpop.f32.mrf.mxu0  ;;  %v3408_v37 = vpop.f32.mrf.mxu3 }
 0x56a   : > { %v8339_v50 = vadd.f32 %v3738_v28, %v2696_v17  ;;  %v4094_v15 = vpop.f32.mrf.mxu2  ;;  %v3404_v17 = vadd.f32 %v8204_v49, %v3403_v11  ;;  %v9084_v11 = vld [vmem:[#allocation54_spill] sm:$0xff] }
 0x56b   : > { %vm4239_vm4 = vcmp.eq.f32.partialorder %v4094_v15, %v8026_v21  ;;  %v3495_v15 = vmax.f32 %v3402_v25, 0.0 }
 0x56c   : > { %v3496_v58 = vmax.f32 %v3404_v17, 0.0 }
 0x571   : > { %v3741_v18 = vpop.f32.mrf.mxu0  ;;  %v3411_v46 = vpop.f32.mrf.mxu3 }
 0x572   : > { %v8343_v0 = vadd.f32 %v3741_v18, %v2699_v59  ;;  %v4096_v43 = vpop.f32.mrf.mxu2  ;;  %v2704_v59 = vadd.f32 %v7869_v63, %v9083_v48  ;;  %v2706_v63 = vadd.f32 %v7890_v55, %v9084_v11  ;;  %v9085_v48 = vld [vmem:[#allocation55_spill] sm:$0xff]  ;;  %v3933_v55 = vpop.permute.xlu2 %3932  ;;  %v3412_v11 = vadd.f32 %v8204_v49, %v3411_v46 }
 0x573   : > { %vm4240_vm6 = vcmp.eq.f32.partialorder %v4096_v43, %v8026_v21  ;;  %v3935_v46 = vpop.permute.xlu0 %3934 }
 0x574   : > { %vm5798_vm7 = vmpackc.low %vm4240_vm6, %vm4239_vm4  ;;  %5745 = vmatmul.msk.bf16.gmra.mxu0 %vm2238_vm5, %v3536_v24  ;;  %v3537_v24 = vpack.c.bf16 %v3496_v58, %v3495_v15 }
 0x575   : > { %5799 = vmatmul.msk.bf16.gmra.mxu1 %vm5798_vm7, %v8925_v44 }
 0x577   : > { %5770 = vmatmul.msk.bf16.gmra.mxu2 %vm693_vm1, %v3929_v8 }
 0x579   : > { %v3743_v32 = vpop.f32.mrf.mxu0  ;;  %v3413_v56 = vpop.f32.mrf.mxu3 }
 0x57a   : > { %v8354_v53 = vadd.f32 %v3743_v32, %v2701_v6  ;;  %v4099_v28 = vpop.f32.mrf.mxu2  ;;  %v3409_v6 = vadd.f32 %v8204_v49, %v3408_v37  ;;  %v9086_v37 = vld [vmem:[#allocation56_spill] sm:$0xff] }
 0x57b   : > { %vm4241_vm8 = vcmp.eq.f32.partialorder %v4099_v28, %v8026_v21  ;;  %v3497_v28 = vmax.f32 %v3407_v60, 0.0 }
 0x57c   : > { %v3498_v15 = vmax.f32 %v3409_v6, 0.0 }
 0x581   : > { %v3746_v18 = vpop.f32.mrf.mxu0  ;;  %v3416_v54 = vpop.f32.mrf.mxu3 }
 0x582   : > { %v8358_v43 = vadd.f32 %v3746_v18, %v2704_v59  ;;  %v4101_v8 = vpop.f32.mrf.mxu2  ;;  %v2709_v59 = vadd.f32 %v7905_v13, %v9085_v48  ;;  %v2711_v13 = vadd.f32 %v7921_v47, %v9086_v37 }
 0x583   : > { %vm4242_vm9 = vcmp.eq.f32.partialorder %v4101_v8, %v8026_v21 }
 0x584   : > { %vm5800_vm10 = vmpackc.low %vm4242_vm9, %vm4241_vm8  ;;  %5746 = vmatmul.msk.bf16.gmra.mxu0 %vm2238_vm5, %v3537_v24  ;;  %v3538_v24 = vpack.c.bf16 %v3498_v15, %v3497_v28  ;;  %v2714_v15 = vadd.f32 %v7934_v10, %v7684_v38  ;;  %v9087_v38 = vld [vmem:[#allocation57_spill] sm:$0xff] }
 0x585   : > { %5801 = vmatmul.msk.bf16.gmra.mxu1 %vm5800_vm10, %v8925_v44  ;;  %v2716_v10 = vadd.f32 %v7941_v41, %v9087_v38  ;;  %v9088_v41 = vld [vmem:[#allocation58_spill] sm:$0xff] }
 0x587   : > { %5771 = vmatmul.msk.bf16.gmra.mxu2 %vm693_vm1, %v3931_v62 }
 0x589   : > { %v3748_v25 = vpop.f32.mrf.mxu0  ;;  %v3418_v58 = vpop.f32.mrf.mxu3 }
 0x58a   : > { %v8369_v17 = vadd.f32 %v3748_v25, %v2706_v63  ;;  %v4104_v32 = vpop.f32.mrf.mxu2  ;;  %v3414_v63 = vadd.f32 %v8204_v49, %v3413_v56  ;;  %v3417_v56 = vadd.f32 %v8204_v49, %v3416_v54  ;;  %v2719_v54 = vadd.f32 %v7951_v45, %v9088_v41  ;;  %v9089_v45 = vld [vmem:[#allocation19_spill] sm:$0xff] }
 0x58b   : > { %vm4243_vm11 = vcmp.eq.f32.partialorder %v4104_v32, %v8026_v21  ;;  %v3499_v32 = vmax.f32 %v3412_v11, 0.0 }
 0x58c   : > { %v3500_v28 = vmax.f32 %v3414_v63, 0.0 }
 0x58e   : > { %v3539_v48 = vpack.c.bf16 %v3500_v28, %v3499_v32  ;;  %v3501_v28 = vmax.f32 %v3417_v56, 0.0  ;;  %v3937_v56 = vpop.permute.xlu1 %3936 }
 0x591   : > { %v3751_v18 = vpop.f32.mrf.mxu0  ;;  %v3421_v51 = vpop.f32.mrf.mxu3 }
 0x592   : > { %v8373_v8 = vadd.f32 %v3751_v18, %v2709_v59  ;;  %v4106_v62 = vpop.f32.mrf.mxu2 }
 0x593   : > { %vm4244_vm12 = vcmp.eq.f32.partialorder %v4106_v62, %v8026_v21 }
 0x594   : > { %vm5802_vm13 = vmpackc.low %vm4244_vm12, %vm4243_vm11  ;;  %5747 = vmatmul.msk.bf16.gmra.mxu0 %vm2238_vm5, %v3538_v24 }
 0x595   : > { %5803 = vmatmul.msk.bf16.gmra.mxu1 %vm5802_vm13, %v8925_v44 }
 0x597   : > { %5772 = vmatmul.msk.bf16.gmra.mxu2 %vm693_vm1, %v3933_v55  ;;  %v3419_v55 = vadd.f32 %v8204_v49, %v3418_v58 }
 0x599   : > { %v3753_v60 = vpop.f32.mrf.mxu0  ;;  %v3423_v24 = vpop.f32.mrf.mxu3 }
 0x59a   : > { %v8384_v6 = vadd.f32 %v3753_v60, %v2711_v13  ;;  %v4109_v25 = vpop.f32.mrf.mxu2 }
 0x59b   : > { %vm4245_vm14 = vcmp.eq.f32.partialorder %v4109_v25, %v8026_v21 }
 0x5a1   : > { %v3756_v59 = vpop.f32.mrf.mxu0  ;;  %v3426_v32 = vpop.f32.mrf.mxu3 }
 0x5a2   : > { %v8388_v18 = vadd.f32 %v3756_v59, %v2714_v15  ;;  %v4111_v62 = vpop.f32.mrf.mxu2  ;;  %v4398_v47 = vpop.f32.mrf.mxu1  ;;  %v3502_v15 = vmax.f32 %v3419_v55, 0.0 }
 0x5a3   : > { %vm4246_vm15 = vcmp.eq.f32.partialorder %v4111_v62, %v8026_v21  ;;  %v4399_v37 = vadd.f32 %v8204_v49, %v4398_v47 }
 0x5a4   : > { %vm5804_vm0 = vmpackc.low %vm4246_vm15, %vm4245_vm14  ;;  %5748 = vmatmul.msk.bf16.gmra.mxu0 %vm2238_vm5, %v3539_v48 }
 0x5a5   : > { %5805 = vmatmul.msk.bf16.gmra.mxu1 %vm5804_vm0, %v8925_v44  ;;  %v4558_v48 = vmax.f32 %v4399_v37, 0.0  ;;  %v2721_v37 = vadd.f32 %v7958_v29, %v9089_v45  ;;  %v9090_v29 = vld [vmem:[#allocation17_spill] sm:$0xff] }
 0x5a7   : > { %5773 = vmatmul.msk.bf16.gmra.mxu2 %vm693_vm1, %v3935_v46  ;;  %v3540_v46 = vpack.c.bf16 %v3502_v15, %v3501_v28 }
 0x5a9   : > { %v3758_v13 = vpop.f32.mrf.mxu0  ;;  %v3428_v55 = vpop.f32.mrf.mxu3 }
 0x5aa   : > { %v8400_v11 = vadd.f32 %v3758_v13, %v2716_v10  ;;  %v4114_v63 = vpop.f32.mrf.mxu2  ;;  %v4400_v60 = vpop.f32.mrf.mxu1  ;;  %v3422_v13 = vadd.f32 %v8204_v49, %v3421_v51  ;;  %v2724_v51 = vadd.f32 %v7968_v9, %v9090_v29 }
 0x5ab   : > { %v4401_v25 = vadd.f32 %v8204_v49, %v4400_v60  ;;  %vm4247_vm2 = vcmp.eq.f32.partialorder %v4114_v63, %v8026_v21  ;;  %v3424_v60 = vadd.f32 %v8204_v49, %v3423_v24  ;;  %v3939_v9 = vpop.permute.xlu2 %3938 }
 0x5ad   : > { %v4559_v59 = vmax.f32 %v4401_v25, 0.0 }
 0x5af   : > { %v4622_v62 = vpack.c.bf16 %v4559_v59, %v4558_v48  ;;  %v3503_v59 = vmax.f32 %v3422_v13, 0.0  ;;  %v9091_v13 = vld [vmem:[#allocation21_spill] sm:$0xff] }
 0x5b1   : > { %v3761_v58 = vpop.f32.mrf.mxu0  ;;  %5868 = vmatmul.msk.bf16.vlgmr.msra.gmra.mxu3 %vm2238_vm5, %v4622_v62  ;;  %v3504_v62 = vmax.f32 %v3424_v60, 0.0  ;;  %v2726_v60 = vadd.f32 %v7975_v61, %v9091_v13  ;;  %v2729_v61 = vadd.f32 %v7985_v57, %v7784_v26  ;;  %v2731_v26 = vadd.f32 %v7992_v22, %v7798_v39 }
 0x5b2   : > { %v8406_v47 = vadd.f32 %v3761_v58, %v2719_v54  ;;  %v4116_v38 = vpop.f32.mrf.mxu2  ;;  %v4403_v10 = vpop.f32.mrf.mxu1 }
 0x5b3   : > { %vm4248_vm3 = vcmp.eq.f32.partialorder %v4116_v38, %v8026_v21  ;;  %v4404_v63 = vadd.f32 %v8204_v49, %v4403_v10  ;;  %v3431_v58 = vpop.f32.mrf.mxu3  ;;  %v3541_v38 = vpack.c.bf16 %v3504_v62, %v3503_v59 }
 0x5b4   : > { %vm5806_vm4 = vmpackc.low %vm4248_vm3, %vm4247_vm2  ;;  %5749 = vmatmul.msk.bf16.gmra.mxu0 %vm2238_vm5, %v3540_v46  ;;  %v3432_v57 = vadd.f32 %v8204_v49, %v3431_v58 }
 0x5b5   : > { %5807 = vmatmul.msk.bf16.gmra.mxu1 %vm5806_vm4, %v8925_v44  ;;  %v4560_v41 = vmax.f32 %v4404_v63, 0.0  ;;  %v3427_v63 = vadd.f32 %v8204_v49, %v3426_v32 }
 0x5b7   : > { %5774 = vmatmul.msk.bf16.gmra.mxu2 %vm693_vm1, %v3937_v56 }
 0x5b9   : > { %v3763_v25 = vpop.f32.mrf.mxu0 }
 0x5ba   : > { %v8418_v21 = vadd.f32 %v3763_v25, %v2721_v37  ;;  %v4119_v28 = vpop.f32.mrf.mxu2  ;;  %v4405_v15 = vpop.f32.mrf.mxu1  ;;  %v8429_v37 = vld [vmem:[%s8868_s2] ss:$0 sm:$0xff]  ;;  %v3429_v25 = vadd.f32 %v8204_v49, %v3428_v55 }
 0x5bb   : > { %v4406_v48 = vadd.f32 %v8204_v49, %v4405_v15  ;;  %vm4249_vm6 = vcmp.eq.f32.partialorder %v4119_v28, %v8429_v37 }
 0x5bc   : > { %v3506_v29 = vmax.f32 %v3429_v25, 0.0 }
 0x5bd   : > { %v4561_v54 = vmax.f32 %v4406_v48, 0.0  ;;  %v3433_v48 = vpop.f32.mrf.mxu3 }
 0x5bf   : > { %v4623_v46 = vpack.c.bf16 %v4561_v54, %v4560_v41 }
 0x5c1   : > { %v3766_v24 = vpop.f32.mrf.mxu0  ;;  %5869 = vmatmul.msk.bf16.gmra.mxu3 %vm2238_vm5, %v4623_v46  ;;  %v3505_v46 = vmax.f32 %v3427_v63, 0.0  ;;  %v3434_v63 = vadd.f32 %v8204_v49, %v3433_v48  ;;  %v3943_v48 = vpop.permute.xlu1 %3942 }
 0x5c2   : > { %v8424_v10 = vadd.f32 %v3766_v24, %v2724_v51  ;;  %v4121_v56 = vpop.f32.mrf.mxu2  ;;  %v4408_v45 = vpop.f32.mrf.mxu1 }
 0x5c3   : > { %vm4250_vm7 = vcmp.eq.f32.partialorder %v4121_v56, %v8429_v37  ;;  %v4409_v15 = vadd.f32 %v8204_v49, %v4408_v45  ;;  %v3542_v32 = vpack.c.bf16 %v3506_v29, %v3505_v46  ;;  %v3507_v46 = vmax.f32 %v3432_v57, 0.0 }
 0x5c4   : > { %vm5808_vm8 = vmpackc.low %vm4250_vm7, %vm4249_vm6  ;;  %5750 = vmatmul.msk.bf16.gmra.mxu0 %vm2238_vm5, %v3541_v38  ;;  %v3508_v29 = vmax.f32 %v3434_v63, 0.0 }
 0x5c5   : > { %5809 = vmatmul.msk.bf16.gmra.mxu1 %vm5808_vm8, %v8925_v44  ;;  %v4562_v51 = vmax.f32 %v4409_v15, 0.0  ;;  %v3436_v13 = vpop.f32.mrf.mxu3 }
 0x5c6   : > { %v3543_v39 = vpack.c.bf16 %v3508_v29, %v3507_v46 }
 0x5c7   : > { %5775 = vmatmul.msk.bf16.gmra.mxu2 %vm693_vm1, %v3939_v9 }
 0x5c9   : > { %v3768_v28 = vpop.f32.mrf.mxu0 }
 0x5ca   : > { %v8441_v59 = vadd.f32 %v3768_v28, %v2726_v60  ;;  %v4124_v62 = vpop.f32.mrf.mxu2  ;;  %v4410_v41 = vpop.f32.mrf.mxu1 }
 0x5cb   : > { %v4411_v54 = vadd.f32 %v8204_v49, %v4410_v41  ;;  %vm4251_vm9 = vcmp.eq.f32.partialorder %v4124_v62, %v8429_v37  ;;  %v3941_v60 = vpop.permute.xlu0 %3940 }
 0x5cd   : > { %v4563_v38 = vmax.f32 %v4411_v54, 0.0 }
 0x5cf   : > { %v4624_v24 = vpack.c.bf16 %v4563_v38, %v4562_v51 }
 0x5d1   : > { %v3771_v55 = vpop.f32.mrf.mxu0  ;;  %5870 = vmatmul.msk.bf16.gmra.mxu3 %vm2238_vm5, %v4624_v24  ;;  %v3438_v24 = vpop.f32.mrf.mxu3 }
 0x5d2   : > { %v8447_v56 = vadd.f32 %v3771_v55, %v2729_v61  ;;  %v4126_v45 = vpop.f32.mrf.mxu2  ;;  %v4413_v9 = vpop.f32.mrf.mxu1  ;;  %v3437_v55 = vadd.f32 %v8204_v49, %v3436_v13 }
 0x5d3   : > { %vm4252_vm10 = vcmp.eq.f32.partialorder %v4126_v45, %v8429_v37  ;;  %v4414_v25 = vadd.f32 %v8204_v49, %v4413_v9  ;;  %v3439_v45 = vadd.f32 %v8204_v49, %v3438_v24  ;;  %v3945_v13 = vpop.permute.xlu2 %3944 }
 0x5d4   : > { %vm5810_vm11 = vmpackc.low %vm4252_vm10, %vm4251_vm9  ;;  %5751 = vmatmul.msk.bf16.gmra.mxu0 %vm2238_vm5, %v3542_v32  ;;  %v3509_v63 = vmax.f32 %v3437_v55, 0.0 }
 0x5d5   : > { %5811 = vmatmul.msk.bf16.gmra.mxu1 %vm5810_vm11, %v8925_v44  ;;  %v4564_v51 = vmax.f32 %v4414_v25, 0.0  ;;  %v3510_v25 = vmax.f32 %v3439_v45, 0.0 }
 0x5d7   : > { %5776 = vmatmul.msk.bf16.gmra.mxu2 %vm693_vm1, %v3941_v60 }
 0x5d9   : > { %v3773_v15 = vpop.f32.mrf.mxu0  ;;  %v3441_v32 = vpop.f32.mrf.mxu3 }
 0x5da   : > { %v8459_v28 = vadd.f32 %v3773_v15, %v2731_v26  ;;  %v4129_v62 = vpop.f32.mrf.mxu2  ;;  %v4415_v41 = vpop.f32.mrf.mxu1 }
 0x5db   : > { %v4416_v54 = vadd.f32 %v8204_v49, %v4415_v41  ;;  %vm4253_vm12 = vcmp.eq.f32.partialorder %v4129_v62, %v8429_v37 }
 0x5dd   : > { %v4565_v38 = vmax.f32 %v4416_v54, 0.0  ;;  %v3544_v54 = vpack.c.bf16 %v3510_v25, %v3509_v63 }
 0x5df   : > { %v4625_v61 = vpack.c.bf16 %v4565_v38, %v4564_v51  ;;  %v3442_v38 = vadd.f32 %v8204_v49, %v3441_v32  ;;  %v3947_v32 = vpop.permute.xlu0 %3946 }
 0x5e1   : > { %5871 = vmatmul.msk.bf16.gmra.mxu3 %vm2238_vm5, %v4625_v61  ;;  %v3443_v46 = vpop.f32.mrf.mxu3  ;;  %v3511_v55 = vmax.f32 %v3442_v38, 0.0 }
 0x5e2   : > { %v4131_v22 = vpop.f32.mrf.mxu2  ;;  %v4418_v58 = vpop.f32.mrf.mxu1  ;;  %v3444_v24 = vadd.f32 %v8204_v49, %v3443_v46 }
 0x5e3   : > { %vm4254_vm13 = vcmp.eq.f32.partialorder %v4131_v22, %v8429_v37  ;;  %v4419_v9 = vadd.f32 %v8204_v49, %v4418_v58 }
 0x5e4   : > { %vm5812_vm14 = vmpackc.low %vm4254_vm13, %vm4253_vm12  ;;  %5752 = vmatmul.msk.bf16.gmra.mxu0 %vm2238_vm5, %v3543_v39  ;;  %v3512_v45 = vmax.f32 %v3444_v24, 0.0 }
 0x5e5   : > { %5813 = vmatmul.msk.bf16.gmra.mxu1 %vm5812_vm14, %v8925_v44  ;;  %v4566_v15 = vmax.f32 %v4419_v9, 0.0 }
 0x5e7   : > { %5777 = vmatmul.msk.bf16.gmra.mxu2 %vm693_vm1, %v3943_v48 }
 0x5e9   : > { %v3446_v48 = vpop.f32.mrf.mxu3 }
 0x5ea   : > { %v4134_v60 = vpop.f32.mrf.mxu2  ;;  %v4420_v26 = vpop.f32.mrf.mxu1 }
 0x5eb   : > { %v4421_v57 = vadd.f32 %v8204_v49, %v4420_v26  ;;  %vm4255_vm15 = vcmp.eq.f32.partialorder %v4134_v60, %v8429_v37 }
 0x5ed   : > { %v4567_v62 = vmax.f32 %v4421_v57, 0.0  ;;  %v3545_v57 = vpack.c.bf16 %v3512_v45, %v3511_v55 }
 0x5ef   : > { %v4626_v41 = vpack.c.bf16 %v4567_v62, %v4566_v15  ;;  %v3447_v62 = vadd.f32 %v8204_v49, %v3446_v48  ;;  %v3949_v48 = vpop.permute.xlu1 %3948 }
 0x5f1   : > { %5872 = vmatmul.msk.bf16.gmra.mxu3 %vm2238_vm5, %v4626_v41  ;;  %v3448_v15 = vpop.f32.mrf.mxu3 }
 0x5f2   : > { %v4136_v29 = vpop.f32.mrf.mxu2  ;;  %v4423_v51 = vpop.f32.mrf.mxu1  ;;  %v3449_v41 = vadd.f32 %v8204_v49, %v3448_v15 }
 0x5f3   : > { %vm4256_vm0 = vcmp.eq.f32.partialorder %v4136_v29, %v8429_v37  ;;  %v4424_v61 = vadd.f32 %v8204_v49, %v4423_v51 }
 0x5f4   : > { %vm5814_vm2 = vmpackc.low %vm4256_vm0, %vm4255_vm15  ;;  %5753 = vmatmul.msk.bf16.gmra.mxu0 %vm2238_vm5, %v3544_v54  ;;  %v3514_v38 = vmax.f32 %v3449_v41, 0.0 }
 0x5f5   : > { %5815 = vmatmul.msk.bf16.gmra.mxu1 %vm5814_vm2, %v8925_v44  ;;  %v4568_v9 = vmax.f32 %v4424_v61, 0.0 }
 0x5f7   : > { %5778 = vmatmul.msk.bf16.gmra.mxu2 %vm693_vm1, %v3945_v13  ;;  %v3513_v13 = vmax.f32 %v3447_v62, 0.0  ;;  %v3951_v62 = vpop.permute.xlu2 %3950 }
 0x5fa   : > { %v4139_v39 = vpop.f32.mrf.mxu2  ;;  %v4425_v22 = vpop.f32.mrf.mxu1 }
 0x5fb   : > { %v4426_v58 = vadd.f32 %v8204_v49, %v4425_v22  ;;  %vm4257_vm3 = vcmp.eq.f32.partialorder %v4139_v39, %v8429_v37  ;;  %v3546_v22 = vpack.c.bf16 %v3514_v38, %v3513_v13 }
 0x5fd   : > { %v4569_v60 = vmax.f32 %v4426_v58, 0.0 }
 0x5ff   : > { %v4627_v26 = vpack.c.bf16 %v4569_v60, %v4568_v9 }
 0x601   : > { %5873 = vmatmul.msk.bf16.gmra.mxu3 %vm2238_vm5, %v4627_v26 }
 0x602   : > { %v4141_v63 = vpop.f32.mrf.mxu2  ;;  %v4428_v25 = vpop.f32.mrf.mxu1 }
 0x603   : > { %vm4258_vm4 = vcmp.eq.f32.partialorder %v4141_v63, %v8429_v37  ;;  %v4429_v54 = vadd.f32 %v8204_v49, %v4428_v25 }
 0x604   : > { %vm5816_vm6 = vmpackc.low %vm4258_vm4, %vm4257_vm3  ;;  %5754 = vmatmul.msk.bf16.gmra.mxu0 %vm2238_vm5, %v3545_v57 }
 0x605   : > { %5817 = vmatmul.msk.bf16.gmra.mxu1 %vm5816_vm6, %v8925_v44  ;;  %v4570_v24 = vmax.f32 %v4429_v54, 0.0 }
 0x607   : > { %5779 = vmatmul.msk.bf16.gmra.mxu2 %vm693_vm1, %v3947_v32 }
 0x60a   : > { %v4144_v46 = vpop.f32.mrf.mxu2  ;;  %v4430_v29 = vpop.f32.mrf.mxu1 }
 0x60b   : > { %v4431_v51 = vadd.f32 %v8204_v49, %v4430_v29  ;;  %vm4259_vm7 = vcmp.eq.f32.partialorder %v4144_v46, %v8429_v37 }
 0x60d   : > { %v4571_v61 = vmax.f32 %v4431_v51, 0.0 }
 0x60f   : > { %v4628_v39 = vpack.c.bf16 %v4571_v61, %v4570_v24 }
 0x611   : > { %5874 = vmatmul.msk.bf16.gmra.mxu3 %vm2238_vm5, %v4628_v39 }
 0x612   : > { %v4146_v58 = vpop.f32.mrf.mxu2  ;;  %v4433_v55 = vpop.f32.mrf.mxu1 }
 0x613   : > { %vm4260_vm8 = vcmp.eq.f32.partialorder %v4146_v58, %v8429_v37  ;;  %v4434_v45 = vadd.f32 %v8204_v49, %v4433_v55 }
 0x614   : > { %vm5818_vm9 = vmpackc.low %vm4260_vm8, %vm4259_vm7  ;;  %5755 = vmatmul.msk.bf16.gmra.mxu0 %vm2238_vm5, %v3546_v22  ;;  %v3953_v22 = vpop.permute.xlu0 %3952 }
 0x615   : > { %5819 = vmatmul.msk.bf16.gmra.mxu1 %vm5818_vm9, %v8925_v44  ;;  %v4572_v57 = vmax.f32 %v4434_v45, 0.0 }
 0x617   : > { %5780 = vmatmul.msk.bf16.gmra.mxu2 %vm693_vm1, %v3949_v48 }
 0x61a   : > { %v4149_v9 = vpop.f32.mrf.mxu2  ;;  %v4435_v60 = vpop.f32.mrf.mxu1 }
 0x61b   : > { %v4436_v26 = vadd.f32 %v8204_v49, %v4435_v60  ;;  %vm4261_vm10 = vcmp.eq.f32.partialorder %v4149_v9, %v8429_v37  ;;  %v8518_v9 = vld [vmem:[%s8872_s6] ss:$0 sm:$0xff] }
 0x61d   : > { %v4573_v63 = vmax.f32 %v4436_v26, 0.0 }
 0x61f   : > { %v4629_v25 = vpack.c.bf16 %v4573_v63, %v4572_v57 }
 0x621   : > { %5875 = vmatmul.msk.bf16.gmra.mxu3 %vm2238_vm5, %v4629_v25 }
 0x622   : > { %v4151_v32 = vpop.f32.mrf.mxu2  ;;  %v4438_v15 = vpop.f32.mrf.mxu1 }
 0x623   : > { %vm4262_vm11 = vcmp.eq.f32.partialorder %v4151_v32, %v8429_v37  ;;  %v4439_v41 = vadd.f32 %v8204_v49, %v4438_v15 }
 0x624   : > { %vm5820_vm12 = vmpackc.low %vm4262_vm11, %vm4261_vm10 }
 0x625   : > { %5821 = vmatmul.msk.bf16.gmra.mxu1 %vm5820_vm12, %v8925_v44  ;;  %v4574_v51 = vmax.f32 %v4439_v41, 0.0 }
 0x627   : > { %5781 = vmatmul.msk.bf16.gmra.mxu2 %vm693_vm1, %v3951_v62 }
 0x62a   : > { %v4154_v54 = vpop.f32.mrf.mxu2  ;;  %v4440_v46 = vpop.f32.mrf.mxu1 }
 0x62b   : > { %v4441_v29 = vadd.f32 %v8204_v49, %v4440_v46  ;;  %vm4263_vm13 = vcmp.eq.f32.partialorder %v4154_v54, %v8429_v37  ;;  %v8537_v46 = vld [vmem:[%s8870_s4] ss:$0 sm:$0xff] }
 0x62d   : > { %v4575_v13 = vmax.f32 %v4441_v29, 0.0 }
 0x62f   : > { %v4630_v38 = vpack.c.bf16 %v4575_v13, %v4574_v51 }
 0x631   : > { %5876 = vmatmul.msk.bf16.gmra.mxu3 %vm2238_vm5, %v4630_v38  ;;  %v9092_v38 = vld [vmem:[#allocation14_spill] sm:$0xff] }
 0x632   : > { %v4156_v24 = vpop.f32.mrf.mxu2  ;;  %v4443_v61 = vpop.f32.mrf.mxu1 }
 0x633   : > { %vm4264_vm14 = vcmp.eq.f32.partialorder %v4156_v24, %v8429_v37  ;;  %v4444_v58 = vadd.f32 %v8204_v49, %v4443_v61 }
 0x634   : > { %vm5822_vm15 = vmpackc.low %vm4264_vm14, %vm4263_vm13  ;;  %v4783_v39 = vpop.f32.mrf.mxu3 }
 0x635   : > { %5823 = vmatmul.msk.bf16.gmra.mxu1 %vm5822_vm15, %v8925_v44  ;;  %v4943_v45 = vadd.f32 %v4783_v39, %v8086_v31  ;;  %v4576_v57 = vmax.f32 %v4444_v58, 0.0 }
 0x637   : > { %5782 = vmatmul.msk.bf16.gmra.mxu2 %vm693_vm1, %v3953_v22  ;;  %v5011_v32 = vadd.f32 %v8518_v9, %v4943_v45 }
 0x63a   : > { %v4159_v55 = vpop.f32.mrf.mxu2  ;;  %v4445_v48 = vpop.f32.mrf.mxu1 }
 0x63b   : > { %v4446_v60 = vadd.f32 %v8204_v49, %v4445_v48  ;;  %vm4265_vm0 = vcmp.eq.f32.partialorder %v4159_v55, %v8429_v37  ;;  %v3955_v49 = vpop.permute.xlu1 %3954 }
 0x63c   : > { %v4785_v26 = vpop.f32.mrf.mxu3 }
 0x63d   : > { %v4577_v63 = vmax.f32 %v4446_v60, 0.0  ;;  %v4944_v25 = vadd.f32 %v4785_v26, %v8097_v42 }
 0x63f   : > { %v4631_v15 = vpack.c.bf16 %v4577_v63, %v4576_v57  ;;  %v5012_v62 = vadd.f32 %v8518_v9, %v4944_v25 }
 0x641   : > { %v5934_v31 = vpack.c.bf16 %v5012_v62, %v5011_v32  ;;  %5877 = vmatmul.msk.bf16.gmra.mxu3 %vm2238_vm5, %v4631_v15  ;;  %v3957_v32 = vpop.permute.xlu2 %3956 }
 0x642   : > { %v4161_v41 = vpop.f32.mrf.mxu2  ;;  %v4448_v54 = vpop.f32.mrf.mxu1 }
 0x643   : > { %5935 = vst [vmem:[%s8528_s16] sm:$0xff] %v5934_v31   ;;  %vm4266_vm2 = vcmp.eq.f32.partialorder %v4161_v41, %v8429_v37  ;;  %v4449_v29 = vadd.f32 %v8537_v46, %v4448_v54  ;;  %v9093_v31 = vld [vmem:[#allocation41_spill] sm:$0xff] }
 0x644   : > { %vm5824_vm3 = vmpackc.low %vm4266_vm2, %vm4265_vm0  ;;  %v4788_v42 = vpop.f32.mrf.mxu3 }
 0x645   : > { %5825 = vmatmul.msk.bf16.gmra.mxu1 %vm5824_vm3, %v8925_v44  ;;  %v4945_v24 = vadd.f32 %v4788_v42, %v9092_v38  ;;  %v4578_v22 = vmax.f32 %v4449_v29, 0.0 }
 0x647   : > { %5783 = vmatmul.msk.bf16.gmra.mxu2 %vm693_vm1, %v3955_v49  ;;  %v5013_v48 = vadd.f32 %v8518_v9, %v4945_v24 }
 0x64a   : > { %v4164_v51 = vpop.f32.mrf.mxu2  ;;  %v4450_v13 = vpop.f32.mrf.mxu1 }
 0x64b   : > { %v4451_v61 = vadd.f32 %v8537_v46, %v4450_v13  ;;  %vm4267_vm4 = vcmp.eq.f32.partialorder %v4164_v51, %v8429_v37  ;;  %v9094_v51 = vld [vmem:[#allocation42_spill] sm:$0xff] }
 0x64c   : > { %v4790_v39 = vpop.f32.mrf.mxu3 }
 0x64d   : > { %v4579_v58 = vmax.f32 %v4451_v61, 0.0  ;;  %v4946_v55 = vadd.f32 %v4790_v39, %v8119_v34 }
 0x64f   : > { %v4632_v45 = vpack.c.bf16 %v4579_v58, %v4578_v22  ;;  %v5014_v60 = vadd.f32 %v8518_v9, %v4946_v55 }
 0x651   : > { %v5939_v26 = vpack.c.bf16 %v5014_v60, %v5013_v48  ;;  %5878 = vmatmul.msk.bf16.gmra.mxu3 %vm2238_vm5, %v4632_v45  ;;  %v3959_v48 = vpop.permute.xlu0 %3958 }
 0x652   : > { %v4166_v57 = vpop.f32.mrf.mxu2  ;;  %v4453_v63 = vpop.f32.mrf.mxu1 }
 0x653   : > { %6091 = vst [vmem:[%s8528_s16 + $0x8] sm:$0xff] %v5939_v26   ;;  %vm4268_vm6 = vcmp.eq.f32.partialorder %v4166_v57, %v8429_v37  ;;  %v4454_v34 = vadd.f32 %v8537_v46, %v4453_v63  ;;  %v9095_v57 = vld [vmem:[#allocation31_spill] sm:$0xff] }
 0x654   : > { %vm5826_vm7 = vmpackc.low %vm4268_vm6, %vm4267_vm4  ;;  %v4793_v25 = vpop.f32.mrf.mxu3 }
 0x655   : > { %5827 = vmatmul.msk.bf16.gmra.mxu1 %vm5826_vm7, %v8925_v44  ;;  %v4947_v41 = vadd.f32 %v4793_v25, %v9093_v31  ;;  %v4580_v49 = vmax.f32 %v4454_v34, 0.0 }
 0x657   : > { %5784 = vmatmul.msk.bf16.gmra.mxu2 %vm693_vm1, %v3957_v32  ;;  %v5015_v38 = vadd.f32 %v8518_v9, %v4947_v41 }
 0x65a   : > { %v4169_v15 = vpop.f32.mrf.mxu2  ;;  %v4455_v62 = vpop.f32.mrf.mxu1 }
 0x65b   : > { %v4456_v54 = vadd.f32 %v8537_v46, %v4455_v62  ;;  %vm4269_vm8 = vcmp.eq.f32.partialorder %v4169_v15, %v8429_v37 }
 0x65c   : > { %v4795_v42 = vpop.f32.mrf.mxu3 }
 0x65d   : > { %v4581_v29 = vmax.f32 %v4456_v54, 0.0  ;;  %v4948_v13 = vadd.f32 %v4795_v42, %v9094_v51 }
 0x65f   : > { %v4633_v24 = vpack.c.bf16 %v4581_v29, %v4580_v49  ;;  %v5016_v61 = vadd.f32 %v8518_v9, %v4948_v13  ;;  %v3961_v13 = vpop.permute.xlu1 %3960 }
 0x661   : > { %v5944_v39 = vpack.c.bf16 %v5016_v61, %v5015_v38  ;;  %5879 = vmatmul.msk.bf16.gmra.mxu3 %vm2238_vm5, %v4633_v24 }
 0x662   : > { %v4171_v22 = vpop.f32.mrf.mxu2  ;;  %v4458_v58 = vpop.f32.mrf.mxu1 }
 0x663   : > { %6092 = vst [vmem:[%s8528_s16 + $0x10] sm:$0xff] %v5944_v39   ;;  %vm4270_vm9 = vcmp.eq.f32.partialorder %v4171_v22, %v8429_v37  ;;  %v4459_v45 = vadd.f32 %v8537_v46, %v4458_v58 }
 0x664   : > { %vm5828_vm10 = vmpackc.low %vm4270_vm9, %vm4269_vm8  ;;  %v4798_v55 = vpop.f32.mrf.mxu3 }
 0x665   : > { %5829 = vmatmul.msk.bf16.gmra.mxu1 %vm5828_vm10, %v8925_v44  ;;  %v4949_v63 = vadd.f32 %v4798_v55, %v9095_v57  ;;  %v4582_v34 = vmax.f32 %v4459_v45, 0.0 }
 0x667   : > { %5785 = vmatmul.msk.bf16.gmra.mxu2 %vm693_vm1, %v3959_v48  ;;  %v5017_v31 = vadd.f32 %v8518_v9, %v4949_v63 }
 0x66a   : > { %v4174_v60 = vpop.f32.mrf.mxu2  ;;  %v4460_v26 = vpop.f32.mrf.mxu1 }
 0x66b   : > { %v4461_v25 = vadd.f32 %v8537_v46, %v4460_v26  ;;  %vm4271_vm11 = vcmp.eq.f32.partialorder %v4174_v60, %v8429_v37 }
 0x66c   : > { %v4800_v32 = vpop.f32.mrf.mxu3 }
 0x66d   : > { %v4583_v15 = vmax.f32 %v4461_v25, 0.0  ;;  %v4950_v62 = vadd.f32 %v4800_v32, %v8163_v27  ;;  %v3963_v32 = vpop.permute.xlu2 %3962 }
 0x66f   : > { %v4634_v41 = vpack.c.bf16 %v4583_v15, %v4582_v34  ;;  %v5018_v54 = vadd.f32 %v8518_v9, %v4950_v62 }
 0x671   : > { %v5949_v42 = vpack.c.bf16 %v5018_v54, %v5017_v31  ;;  %5880 = vmatmul.msk.bf16.gmra.mxu3 %vm2238_vm5, %v4634_v41 }
 0x672   : > { %v4176_v49 = vpop.f32.mrf.mxu2  ;;  %v4463_v29 = vpop.f32.mrf.mxu1 }
 0x673   : > { %6093 = vst [vmem:[%s8528_s16 + $0x18] sm:$0xff] %v5949_v42   ;;  %vm4272_vm12 = vcmp.eq.f32.partialorder %v4176_v49, %v8429_v37  ;;  %v4464_v27 = vadd.f32 %v8537_v46, %v4463_v29 }
 0x674   : > { %vm5830_vm13 = vmpackc.low %vm4272_vm12, %vm4271_vm11  ;;  %v4803_v51 = vpop.f32.mrf.mxu3 }
 0x675   : > { %5831 = vmatmul.msk.bf16.gmra.mxu1 %vm5830_vm13, %v8925_v44  ;;  %v4951_v61 = vadd.f32 %v4803_v51, %v8172_v16  ;;  %v4584_v58 = vmax.f32 %v4464_v27, 0.0 }
 0x677   : > { %5786 = vmatmul.msk.bf16.gmra.mxu2 %vm693_vm1, %v3961_v13  ;;  %v5019_v45 = vadd.f32 %v8518_v9, %v4951_v61 }
 0x67a   : > { %v4179_v38 = vpop.f32.mrf.mxu2  ;;  %v4465_v24 = vpop.f32.mrf.mxu1 }
 0x67b   : > { %v4466_v39 = vadd.f32 %v8537_v46, %v4465_v24  ;;  %vm4273_vm14 = vcmp.eq.f32.partialorder %v4179_v38, %v8429_v37 }
 0x67c   : > { %v4805_v22 = vpop.f32.mrf.mxu3 }
 0x67d   : > { %v4585_v55 = vmax.f32 %v4466_v39, 0.0  ;;  %v4952_v48 = vadd.f32 %v4805_v22, %v8184_v35 }
 0x67f   : > { %v4635_v60 = vpack.c.bf16 %v4585_v55, %v4584_v58  ;;  %v5020_v26 = vadd.f32 %v8518_v9, %v4952_v48 }
 0x681   : > { %v5954_v57 = vpack.c.bf16 %v5020_v26, %v5019_v45  ;;  %5881 = vmatmul.msk.bf16.gmra.mxu3 %vm2238_vm5, %v4635_v60 }
 0x682   : > { %v4181_v63 = vpop.f32.mrf.mxu2  ;;  %v4468_v25 = vpop.f32.mrf.mxu1 }
 0x683   : > { %6094 = vst [vmem:[%s8528_s16 + $0x20] sm:$0xff] %v5954_v57   ;;  %vm4274_vm15 = vcmp.eq.f32.partialorder %v4181_v63, %v8429_v37  ;;  %v4469_v35 = vadd.f32 %v8537_v46, %v4468_v25 }
 0x684   : > { %vm5832_vm0 = vmpackc.low %vm4274_vm15, %vm4273_vm14  ;;  %v4808_v16 = vpop.f32.mrf.mxu3 }
 0x685   : > { %5833 = vmatmul.msk.bf16.gmra.mxu1 %vm5832_vm0, %v8925_v44  ;;  %v4953_v62 = vadd.f32 %v4808_v16, %v8192_v4  ;;  %v4586_v54 = vmax.f32 %v4469_v35, 0.0 }
 0x687   : > { %5787 = vmatmul.msk.bf16.gmra.mxu2 %vm693_vm1, %v3963_v32  ;;  %v5021_v29 = vadd.f32 %v8518_v9, %v4953_v62 }
 0x68a   : > { %v4184_v34 = vpop.f32.mrf.mxu2  ;;  %v4470_v15 = vpop.f32.mrf.mxu1 }
 0x68b   : > { %v4471_v31 = vadd.f32 %v8537_v46, %v4470_v15  ;;  %vm4275_vm1 = vcmp.eq.f32.partialorder %v4184_v34, %v8429_v37 }
 0x68c   : > { %v4810_v41 = vpop.f32.mrf.mxu3 }
 0x68d   : > { %v4587_v42 = vmax.f32 %v4471_v31, 0.0  ;;  %v4954_v49 = vadd.f32 %v4810_v41, %v8208_v1 }
 0x68f   : > { %v4636_v51 = vpack.c.bf16 %v4587_v42, %v4586_v54  ;;  %v5022_v13 = vadd.f32 %v8518_v9, %v4954_v49 }
 0x691   : > { %v5959_v27 = vpack.c.bf16 %v5022_v13, %v5021_v29  ;;  %5882 = vmatmul.msk.bf16.gmra.mxu3 %vm2238_vm5, %v4636_v51 }
 0x692   : > { %v4186_v38 = vpop.f32.mrf.mxu2  ;;  %v4473_v24 = vpop.f32.mrf.mxu1 }
 0x693   : > { %6095 = vst [vmem:[%s8528_s16 + $0x28] sm:$0xff] %v5959_v27   ;;  %vm4276_vm2 = vcmp.eq.f32.partialorder %v4186_v38, %v8429_v37  ;;  %v4474_v1 = vadd.f32 %v8537_v46, %v4473_v24 }
 0x694   : > { %vm5834_vm3 = vmpackc.low %vm4276_vm2, %vm4275_vm1  ;;  %v4813_v4 = vpop.f32.mrf.mxu3 }
 0x695   : > { %5835 = vmatmul.msk.bf16.gmra.mxu1 %vm5834_vm3, %v8925_v44  ;;  %v4955_v22 = vadd.f32 %v4813_v4, %v8216_v52  ;;  %v4588_v48 = vmax.f32 %v4474_v1, 0.0 }
 0x697   : > { %v5023_v26 = vadd.f32 %v8518_v9, %v4955_v22 }
 0x69a   : > { %v4189_v61 = vpop.f32.mrf.mxu2  ;;  %v4475_v39 = vpop.f32.mrf.mxu1 }
 0x69b   : > { %v4476_v58 = vadd.f32 %v8537_v46, %v4475_v39  ;;  %vm4277_vm4 = vcmp.eq.f32.partialorder %v4189_v61, %v8429_v37 }
 0x69c   : > { %v4815_v55 = vpop.f32.mrf.mxu3 }
 0x69d   : > { %v4589_v45 = vmax.f32 %v4476_v58, 0.0  ;;  %v4956_v60 = vadd.f32 %v4815_v55, %v8227_v23 }
 0x69f   : > { %v4637_v57 = vpack.c.bf16 %v4589_v45, %v4588_v48  ;;  %v5024_v63 = vadd.f32 %v8518_v9, %v4956_v60 }
 0x6a1   : > { %v5964_v25 = vpack.c.bf16 %v5024_v63, %v5023_v26  ;;  %5883 = vmatmul.msk.bf16.gmra.mxu3 %vm2238_vm5, %v4637_v57 }
 0x6a2   : > { %v4191_v16 = vpop.f32.mrf.mxu2  ;;  %v4478_v32 = vpop.f32.mrf.mxu1 }
 0x6a3   : > { %6096 = vst [vmem:[%s8528_s16 + $0x30] sm:$0xff] %v5964_v25   ;;  %vm4278_vm6 = vcmp.eq.f32.partialorder %v4191_v16, %v8429_v37  ;;  %v4479_v23 = vadd.f32 %v8537_v46, %v4478_v32 }
 0x6a4   : > { %vm5836_vm7 = vmpackc.low %vm4278_vm6, %vm4277_vm4  ;;  %v4818_v52 = vpop.f32.mrf.mxu3 }
 0x6a5   : > { %5837 = vmatmul.msk.bf16.gmra.mxu1 %vm5836_vm7, %v8925_v44  ;;  %v4957_v15 = vadd.f32 %v4818_v52, %v8235_v33  ;;  %v4590_v41 = vmax.f32 %v4479_v23, 0.0 }
 0x6a7   : > { %v5025_v49 = vadd.f32 %v8518_v9, %v4957_v15 }
 0x6aa   : > { %v4194_v35 = vpop.f32.mrf.mxu2  ;;  %v4480_v34 = vpop.f32.mrf.mxu1 }
 0x6ab   : > { %v4481_v62 = vadd.f32 %v8537_v46, %v4480_v34  ;;  %vm4279_vm8 = vcmp.eq.f32.partialorder %v4194_v35, %v8429_v37 }
 0x6ac   : > { %v4820_v31 = vpop.f32.mrf.mxu3 }
 0x6ad   : > { %v4591_v54 = vmax.f32 %v4481_v62, 0.0  ;;  %v4958_v42 = vadd.f32 %v4820_v31, %v8249_v3 }
 0x6af   : > { %v4638_v29 = vpack.c.bf16 %v4591_v54, %v4590_v41  ;;  %v5026_v51 = vadd.f32 %v8518_v9, %v4958_v42 }
 0x6b1   : > { %v5969_v13 = vpack.c.bf16 %v5026_v51, %v5025_v49  ;;  %5884 = vmatmul.msk.bf16.gmra.mxu3 %vm2238_vm5, %v4638_v29 }
 0x6b2   : > { %v4196_v27 = vpop.f32.mrf.mxu2  ;;  %v4483_v38 = vpop.f32.mrf.mxu1 }
 0x6b3   : > { %6097 = vst [vmem:[%s8528_s16 + $0x38] sm:$0xff] %v5969_v13   ;;  %vm4280_vm9 = vcmp.eq.f32.partialorder %v4196_v27, %v8429_v37  ;;  %v4484_v3 = vadd.f32 %v8537_v46, %v4483_v38 }
 0x6b4   : > { %vm5838_vm10 = vmpackc.low %vm4280_vm9, %vm4279_vm8  ;;  %v4823_v33 = vpop.f32.mrf.mxu3 }
 0x6b5   : > { %5839 = vmatmul.msk.bf16.gmra.mxu1 %vm5838_vm10, %v8925_v44  ;;  %v4959_v1 = vadd.f32 %v4823_v33, %v8255_v36  ;;  %v4592_v22 = vmax.f32 %v4484_v3, 0.0 }
 0x6b7   : > { %v5027_v48 = vadd.f32 %v8518_v9, %v4959_v1 }
 0x6ba   : > { %v4199_v24 = vpop.f32.mrf.mxu2  ;;  %v4485_v4 = vpop.f32.mrf.mxu1 }
 0x6bb   : > { %v4486_v61 = vadd.f32 %v8537_v46, %v4485_v4  ;;  %vm4281_vm11 = vcmp.eq.f32.partialorder %v4199_v24, %v8429_v37 }
 0x6bc   : > { %v4825_v39 = vpop.f32.mrf.mxu3 }
 0x6bd   : > { %v4593_v58 = vmax.f32 %v4486_v61, 0.0  ;;  %v4960_v55 = vadd.f32 %v4825_v39, %v8267_v19 }
 0x6bf   : > { %v4639_v45 = vpack.c.bf16 %v4593_v58, %v4592_v22  ;;  %v5028_v60 = vadd.f32 %v8518_v9, %v4960_v55 }
 0x6c1   : > { %v5974_v26 = vpack.c.bf16 %v5028_v60, %v5027_v48  ;;  %5885 = vmatmul.msk.bf16.gmra.mxu3 %vm2238_vm5, %v4639_v45 }
 0x6c2   : > { %v4201_v57 = vpop.f32.mrf.mxu2  ;;  %v4488_v63 = vpop.f32.mrf.mxu1 }
 0x6c3   : > { %6098 = vst [vmem:[%s8528_s16 + $0x40] sm:$0xff] %v5974_v26   ;;  %vm4282_vm12 = vcmp.eq.f32.partialorder %v4201_v57, %v8429_v37  ;;  %v4489_v19 = vadd.f32 %v8537_v46, %v4488_v63 }
 0x6c4   : > { %vm5840_vm13 = vmpackc.low %vm4282_vm12, %vm4281_vm11  ;;  %v4828_v36 = vpop.f32.mrf.mxu3 }
 0x6c5   : > { %5841 = vmatmul.msk.bf16.gmra.mxu1 %vm5840_vm13, %v8925_v44  ;;  %v4961_v32 = vadd.f32 %v4828_v36, %v8273_v14  ;;  %v4594_v35 = vmax.f32 %v4489_v19, 0.0 }
 0x6c7   : > { %v5029_v62 = vadd.f32 %v8518_v9, %v4961_v32 }
 0x6ca   : > { %v4204_v25 = vpop.f32.mrf.mxu2  ;;  %v4490_v16 = vpop.f32.mrf.mxu1 }
 0x6cb   : > { %v4491_v52 = vadd.f32 %v8537_v46, %v4490_v16  ;;  %vm4283_vm14 = vcmp.eq.f32.partialorder %v4204_v25, %v8429_v37 }
 0x6cc   : > { %v4830_v23 = vpop.f32.mrf.mxu3 }
 0x6cd   : > { %v4595_v34 = vmax.f32 %v4491_v52, 0.0  ;;  %v4962_v15 = vadd.f32 %v4830_v23, %v8285_v7 }
 0x6cf   : > { %v4640_v31 = vpack.c.bf16 %v4595_v34, %v4594_v35  ;;  %v5030_v41 = vadd.f32 %v8518_v9, %v4962_v15 }
 0x6d1   : > { %v5979_v54 = vpack.c.bf16 %v5030_v41, %v5029_v62  ;;  %5886 = vmatmul.msk.bf16.gmra.mxu3 %vm2238_vm5, %v4640_v31 }
 0x6d2   : > { %v4206_v42 = vpop.f32.mrf.mxu2  ;;  %v4493_v49 = vpop.f32.mrf.mxu1 }
 0x6d3   : > { %6099 = vst [vmem:[%s8528_s16 + $0x48] sm:$0xff] %v5979_v54   ;;  %vm4284_vm15 = vcmp.eq.f32.partialorder %v4206_v42, %v8429_v37  ;;  %v4494_v7 = vadd.f32 %v8537_v46, %v4493_v49 }
 0x6d4   : > { %vm5842_vm0 = vmpackc.low %vm4284_vm15, %vm4283_vm14  ;;  %v4833_v14 = vpop.f32.mrf.mxu3 }
 0x6d5   : > { %5843 = vmatmul.msk.bf16.gmra.mxu1 %vm5842_vm0, %v8925_v44  ;;  %v4963_v13 = vadd.f32 %v4833_v14, %v8291_v12  ;;  %v4596_v33 = vmax.f32 %v4494_v7, 0.0 }
 0x6d7   : > { %v5031_v4 = vadd.f32 %v8518_v9, %v4963_v13 }
 0x6da   : > { %v4209_v29 = vpop.f32.mrf.mxu2  ;;  %v4495_v51 = vpop.f32.mrf.mxu1 }
 0x6db   : > { %v4496_v27 = vadd.f32 %v8537_v46, %v4495_v51  ;;  %vm4285_vm1 = vcmp.eq.f32.partialorder %v4209_v29, %v8429_v37 }
 0x6dc   : > { %v4835_v38 = vpop.f32.mrf.mxu3 }
 0x6dd   : > { %v4597_v3 = vmax.f32 %v4496_v27, 0.0  ;;  %v4964_v24 = vadd.f32 %v4835_v38, %v8303_v20 }
 0x6df   : > { %v4641_v1 = vpack.c.bf16 %v4597_v3, %v4596_v33  ;;  %v5032_v61 = vadd.f32 %v8518_v9, %v4964_v24 }
 0x6e1   : > { %v5984_v39 = vpack.c.bf16 %v5032_v61, %v5031_v4  ;;  %5887 = vmatmul.msk.bf16.gmra.mxu3 %vm2238_vm5, %v4641_v1 }
 0x6e2   : > { %v4211_v22 = vpop.f32.mrf.mxu2  ;;  %v4498_v58 = vpop.f32.mrf.mxu1 }
 0x6e3   : > { %6100 = vst [vmem:[%s8528_s16 + $0x50] sm:$0xff] %v5984_v39   ;;  %vm4286_vm2 = vcmp.eq.f32.partialorder %v4211_v22, %v8429_v37  ;;  %v4499_v20 = vadd.f32 %v8537_v46, %v4498_v58 }
 0x6e4   : > { %vm5844_vm3 = vmpackc.low %vm4286_vm2, %vm4285_vm1  ;;  %v4838_v12 = vpop.f32.mrf.mxu3 }
 0x6e5   : > { %5845 = vmatmul.msk.bf16.gmra.mxu1 %vm5844_vm3, %v8925_v44  ;;  %v4965_v45 = vadd.f32 %v4838_v12, %v8309_v5  ;;  %v4598_v57 = vmax.f32 %v4499_v20, 0.0 }
 0x6e7   : > { %v5033_v19 = vadd.f32 %v8518_v9, %v4965_v45 }
 0x6ea   : > { %v4214_v55 = vpop.f32.mrf.mxu2  ;;  %v4500_v48 = vpop.f32.mrf.mxu1 }
 0x6eb   : > { %v4501_v60 = vadd.f32 %v8537_v46, %v4500_v48  ;;  %vm4287_vm4 = vcmp.eq.f32.partialorder %v4214_v55, %v8429_v37 }
 0x6ec   : > { %v4840_v26 = vpop.f32.mrf.mxu3 }
 0x6ed   : > { %v4599_v63 = vmax.f32 %v4501_v60, 0.0  ;;  %v4966_v36 = vadd.f32 %v4840_v26, %v8321_v30 }
 0x6ef   : > { %v4642_v25 = vpack.c.bf16 %v4599_v63, %v4598_v57  ;;  %v5034_v16 = vadd.f32 %v8518_v9, %v4966_v36 }
 0x6f1   : > { %v5989_v32 = vpack.c.bf16 %v5034_v16, %v5033_v19  ;;  %5888 = vmatmul.msk.bf16.gmra.mxu3 %vm2238_vm5, %v4642_v25 }
 0x6f2   : > { %v4216_v52 = vpop.f32.mrf.mxu2  ;;  %v4503_v23 = vpop.f32.mrf.mxu1 }
 0x6f3   : > { %6101 = vst [vmem:[%s8528_s16 + $0x58] sm:$0xff] %v5989_v32   ;;  %vm4288_vm6 = vcmp.eq.f32.partialorder %v4216_v52, %v8429_v37  ;;  %v4504_v30 = vadd.f32 %v8537_v46, %v4503_v23 }
 0x6f4   : > { %vm5846_vm7 = vmpackc.low %vm4288_vm6, %vm4287_vm4  ;;  %v4843_v5 = vpop.f32.mrf.mxu3 }
 0x6f5   : > { %5847 = vmatmul.msk.bf16.gmra.mxu1 %vm5846_vm7, %v8925_v44  ;;  %v4967_v15 = vadd.f32 %v4843_v5, %v8327_v40  ;;  %v4600_v41 = vmax.f32 %v4504_v30, 0.0 }
 0x6f7   : > { %v5035_v49 = vadd.f32 %v8518_v9, %v4967_v15 }
 0x6fa   : > { %v4219_v35 = vpop.f32.mrf.mxu2  ;;  %v4505_v34 = vpop.f32.mrf.mxu1 }
 0x6fb   : > { %v4506_v62 = vadd.f32 %v8537_v46, %v4505_v34  ;;  %vm4289_vm8 = vcmp.eq.f32.partialorder %v4219_v35, %v8429_v37 }
 0x6fc   : > { %v4845_v31 = vpop.f32.mrf.mxu3 }
 0x6fd   : > { %v4601_v54 = vmax.f32 %v4506_v62, 0.0  ;;  %v4968_v42 = vadd.f32 %v4845_v31, %v8339_v50 }
 0x6ff   : > { %v4643_v14 = vpack.c.bf16 %v4601_v54, %v4600_v41  ;;  %v5036_v7 = vadd.f32 %v8518_v9, %v4968_v42 }
 0x701   : > { %v5994_v29 = vpack.c.bf16 %v5036_v7, %v5035_v49  ;;  %5889 = vmatmul.msk.bf16.gmra.mxu3 %vm2238_vm5, %v4643_v14 }
 0x702   : > { %v4221_v51 = vpop.f32.mrf.mxu2  ;;  %v4508_v13 = vpop.f32.mrf.mxu1 }
 0x703   : > { %6102 = vst [vmem:[%s8528_s16 + $0x60] sm:$0xff] %v5994_v29   ;;  %vm4290_vm9 = vcmp.eq.f32.partialorder %v4221_v51, %v8429_v37  ;;  %v4509_v50 = vadd.f32 %v8537_v46, %v4508_v13 }
 0x704   : > { %vm5848_vm10 = vmpackc.low %vm4290_vm9, %vm4289_vm8  ;;  %v4848_v40 = vpop.f32.mrf.mxu3 }
 0x705   : > { %5849 = vmatmul.msk.bf16.gmra.mxu1 %vm5848_vm10, %v8925_v44  ;;  %v4969_v33 = vadd.f32 %v4848_v40, %v8343_v0  ;;  %v4602_v4 = vmax.f32 %v4509_v50, 0.0 }
 0x707   : > { %v5037_v39 = vadd.f32 %v8518_v9, %v4969_v33  ;;  %v3776_v33 = vpop.f32.mrf.mxu0 }
 0x70a   : > { %v4224_v27 = vpop.f32.mrf.mxu2  ;;  %v4510_v38 = vpop.f32.mrf.mxu1 }
 0x70b   : > { %v4511_v3 = vadd.f32 %v8537_v46, %v4510_v38  ;;  %vm4291_vm11 = vcmp.eq.f32.partialorder %v4224_v27, %v8429_v37 }
 0x70c   : > { %v4850_v24 = vpop.f32.mrf.mxu3 }
 0x70d   : > { %v4603_v1 = vmax.f32 %v4511_v3, 0.0  ;;  %v4970_v61 = vadd.f32 %v4850_v24, %v8354_v53 }
 0x70f   : > { %v4644_v22 = vpack.c.bf16 %v4603_v1, %v4602_v4  ;;  %v5038_v58 = vadd.f32 %v8518_v9, %v4970_v61  ;;  %v3778_v61 = vpop.f32.mrf.mxu0 }
 0x711   : > { %v5999_v12 = vpack.c.bf16 %v5038_v58, %v5037_v39  ;;  %5890 = vmatmul.msk.bf16.gmra.mxu3 %vm2238_vm5, %v4644_v22 }
 0x712   : > { %v4226_v20 = vpop.f32.mrf.mxu2  ;;  %v4513_v55 = vpop.f32.mrf.mxu1 }
 0x713   : > { %6103 = vst [vmem:[%s8528_s16 + $0x68] sm:$0xff] %v5999_v12   ;;  %vm4292_vm12 = vcmp.eq.f32.partialorder %v4226_v20, %v8429_v37  ;;  %v4514_v53 = vadd.f32 %v8537_v46, %v4513_v55 }
 0x714   : > { %vm5850_vm13 = vmpackc.low %vm4292_vm12, %vm4291_vm11  ;;  %v4853_v0 = vpop.f32.mrf.mxu3 }
 0x715   : > { %5851 = vmatmul.msk.bf16.gmra.mxu1 %vm5850_vm13, %v8925_v44  ;;  %v4971_v45 = vadd.f32 %v4853_v0, %v8358_v43  ;;  %v4604_v57 = vmax.f32 %v4514_v53, 0.0 }
 0x717   : > { %v5039_v19 = vadd.f32 %v8518_v9, %v4971_v45 }
 0x71a   : > { %v4515_v48 = vpop.f32.mrf.mxu1 }
 0x71b   : > { %v4516_v60 = vadd.f32 %v8537_v46, %v4515_v48 }
 0x71c   : > { %v4855_v26 = vpop.f32.mrf.mxu3 }
 0x71d   : > { %v4605_v63 = vmax.f32 %v4516_v60, 0.0  ;;  %v4972_v36 = vadd.f32 %v4855_v26, %v8369_v17 }
 0x71f   : > { %v4645_v37 = vpack.c.bf16 %v4605_v63, %v4604_v57  ;;  %v5040_v25 = vadd.f32 %v8518_v9, %v4972_v36 }
 0x721   : > { %v6004_v16 = vpack.c.bf16 %v5040_v25, %v5039_v19  ;;  %5891 = vmatmul.msk.bf16.gmra.mxu3 %vm2238_vm5, %v4645_v37 }
 0x722   : > { %v4518_v44 = vpop.f32.mrf.mxu1 }
 0x723   : > { %6104 = vst [vmem:[%s8528_s16 + $0x70] sm:$0xff] %v6004_v16   ;;  %v4519_v43 = vadd.f32 %v8537_v46, %v4518_v44 }
 0x724   : > { %v4858_v32 = vpop.f32.mrf.mxu3 }
 0x725   : > { %v4973_v23 = vadd.f32 %v4858_v32, %v8373_v8  ;;  %v4606_v30 = vmax.f32 %v4519_v43, 0.0 }
 0x727   : > { %v5041_v15 = vadd.f32 %v8518_v9, %v4973_v23 }
 0x72a   : > { %v4520_v52 = vpop.f32.mrf.mxu1 }
 0x72b   : > { %v4521_v5 = vadd.f32 %v8537_v46, %v4520_v52 }
 0x72c   : > { %v4860_v17 = vpop.f32.mrf.mxu3 }
 0x72d   : > { %v4607_v35 = vmax.f32 %v4521_v5, 0.0  ;;  %v4974_v34 = vadd.f32 %v4860_v17, %v8384_v6 }
 0x72f   : > { %v4646_v62 = vpack.c.bf16 %v4607_v35, %v4606_v30  ;;  %v5042_v31 = vadd.f32 %v8518_v9, %v4974_v34 }
 0x731   : > { %v6009_v41 = vpack.c.bf16 %v5042_v31, %v5041_v15  ;;  %5892 = vmatmul.msk.bf16.gmra.mxu3 %vm2238_vm5, %v4646_v62 }
 0x732   : > { %v4523_v54 = vpop.f32.mrf.mxu1 }
 0x733   : > { %6105 = vst [vmem:[%s8528_s16 + $0x78] sm:$0xff] %v6009_v41   ;;  %v4524_v8 = vadd.f32 %v8537_v46, %v4523_v54 }
 0x734   : > { %v4863_v42 = vpop.f32.mrf.mxu3 }
 0x735   : > { %v4975_v14 = vadd.f32 %v4863_v42, %v8388_v18  ;;  %v4608_v29 = vmax.f32 %v4524_v8, 0.0 }
 0x737   : > { %v5043_v40 = vadd.f32 %v8518_v9, %v4975_v14 }
 0x73a   : > { %v4525_v49 = vpop.f32.mrf.mxu1 }
 0x73b   : > { %v4526_v7 = vadd.f32 %v8537_v46, %v4525_v49 }
 0x73c   : > { %v4865_v6 = vpop.f32.mrf.mxu3 }
 0x73d   : > { %v4609_v51 = vmax.f32 %v4526_v7, 0.0  ;;  %v4976_v13 = vadd.f32 %v4865_v6, %v8400_v11  ;;  %v9097_v7 = vld [vmem:[#allocation61_spill] sm:$0xff] }
 0x73f   : > { %v4647_v50 = vpack.c.bf16 %v4609_v51, %v4608_v29  ;;  %v5044_v27 = vadd.f32 %v8518_v9, %v4976_v13  ;;  %v9098_v29 = vld [vmem:[#allocation23_spill] sm:$0xff] }
 0x740   : > { %v9099_v51 = vld [vmem:[#allocation63_spill] sm:$0xff] }
 0x741   : > { %v6014_v38 = vpack.c.bf16 %v5044_v27, %v5043_v40  ;;  %5893 = vmatmul.msk.bf16.gmra.mxu3 %vm2238_vm5, %v4647_v50  ;;  %v2736_v13 = vadd.f32 %v9099_v51, %v9098_v29 }
 0x742   : > { %v4528_v3 = vpop.f32.mrf.mxu1 }
 0x743   : > { %6106 = vst [vmem:[%s8528_s16 + $0x80] sm:$0xff] %v6014_v38   ;;  %v4529_v18 = vadd.f32 %v8537_v46, %v4528_v3  ;;  %v3877_v27 = vadd.f32 %v3778_v61, %v2736_v13  ;;  %v9100_v61 = vld [vmem:[#allocation27_spill] sm:$0xff] }
 0x744   : > { %v4868_v24 = vpop.f32.mrf.mxu3 }
 0x745   : > { %v4977_v1 = vadd.f32 %v4868_v24, %v8406_v47  ;;  %v4610_v22 = vmax.f32 %v4529_v18, 0.0  ;;  %v3781_v47 = vpop.f32.mrf.mxu0 }
 0x747   : > { %v5045_v20 = vadd.f32 %v8518_v9, %v4977_v1 }
 0x74a   : > { %v4530_v4 = vpop.f32.mrf.mxu1 }
 0x74b   : > { %v4531_v11 = vadd.f32 %v8537_v46, %v4530_v4 }
 0x74c   : > { %v4870_v39 = vpop.f32.mrf.mxu3 }
 0x74d   : > { %v4611_v58 = vmax.f32 %v4531_v11, 0.0  ;;  %v4978_v12 = vadd.f32 %v4870_v39, %v8418_v21  ;;  %v3783_v32 = vpop.f32.mrf.mxu0 }
 0x74f   : > { %v4648_v55 = vpack.c.bf16 %v4611_v58, %v4610_v22  ;;  %v5046_v0 = vadd.f32 %v8518_v9, %v4978_v12 }
 0x751   : > { %v6019_v53 = vpack.c.bf16 %v5046_v0, %v5045_v20  ;;  %5894 = vmatmul.msk.bf16.gmra.mxu3 %vm2238_vm5, %v4648_v55  ;;  %v9101_v55 = vld [vmem:[#allocation65_spill] sm:$0xff] }
 0x752   : > { %v4533_v48 = vpop.f32.mrf.mxu1  ;;  %v2739_v0 = vadd.f32 %v9101_v55, %v9100_v61 }
 0x753   : > { %6107 = vst [vmem:[%s8528_s16 + $0x88] sm:$0xff] %v6019_v53   ;;  %v4534_v60 = vadd.f32 %v8537_v46, %v4533_v48  ;;  %v9102_v48 = vld [vmem:[#allocation29_spill] sm:$0xff] }
 0x754   : > { %v4873_v45 = vpop.f32.mrf.mxu3 }
 0x755   : > { %v4979_v57 = vadd.f32 %v4873_v45, %v8424_v10  ;;  %v4612_v36 = vmax.f32 %v4534_v60, 0.0  ;;  %v3786_v5 = vpop.f32.mrf.mxu0  ;;  %v9103_v45 = vld [vmem:[#allocation67_spill] sm:$0xff] }
 0x756   : > { %v2741_v60 = vadd.f32 %v9103_v45, %v9102_v48  ;;  %v9113_v48 = vld [vmem:[#allocation77_spill] sm:$0xff] }
 0x757   : > { %v5047_v25 = vadd.f32 %v8518_v9, %v4979_v57 }
 0x75a   : > { %v4535_v26 = vpop.f32.mrf.mxu1 }
 0x75b   : > { %v4536_v21 = vadd.f32 %v8537_v46, %v4535_v26  ;;  %v3878_v26 = vadd.f32 %v3781_v47, %v2739_v0  ;;  %v9112_v0 = vld [vmem:[#allocation10_spill] sm:$0xff] }
 0x75c   : > { %v4875_v63 = vpop.f32.mrf.mxu3  ;;  %v2754_v45 = vadd.f32 %v9113_v48, %v9112_v0 }
 0x75d   : > { %v4613_v19 = vmax.f32 %v4536_v21, 0.0  ;;  %v4980_v37 = vadd.f32 %v4875_v63, %v8441_v59  ;;  %v3788_v49 = vpop.f32.mrf.mxu0  ;;  %v3879_v63 = vadd.f32 %v3783_v32, %v2741_v60  ;;  %v9104_v32 = vld [vmem:[#allocation5_spill] sm:$0xff]  ;;  %v9114_v60 = vld [vmem:[#allocation11_spill] sm:$0xff] }
 0x75f   : > { %v4649_v16 = vpack.c.bf16 %v4613_v19, %v4612_v36  ;;  %v5048_v44 = vadd.f32 %v8518_v9, %v4980_v37 }
 0x761   : > { %v6024_v43 = vpack.c.bf16 %v5048_v44, %v5047_v25  ;;  %5895 = vmatmul.msk.bf16.gmra.mxu3 %vm2238_vm5, %v4649_v16 }
 0x762   : > { %v4538_v52 = vpop.f32.mrf.mxu1 }
 0x763   : > { %6108 = vst [vmem:[%s8528_s16 + $0x90] sm:$0xff] %v6024_v43   ;;  %v4539_v10 = vadd.f32 %v8537_v46, %v4538_v52 }
 0x764   : > { %v4878_v23 = vpop.f32.mrf.mxu3 }
 0x765   : > { %v4981_v30 = vadd.f32 %v4878_v23, %v8447_v56  ;;  %v4614_v34 = vmax.f32 %v4539_v10, 0.0  ;;  %v9096_v56 = vld [vmem:[#allocation25_spill] sm:$0xff]  ;;  %v3791_v11 = vpop.f32.mrf.mxu0 }
 0x766   : > { %v2734_v6 = vadd.f32 %v9097_v7, %v9096_v56 }
 0x767   : > { %v5049_v31 = vadd.f32 %v8518_v9, %v4981_v30 }
 0x768   : > { %v3876_v40 = vadd.f32 %v3776_v33, %v2734_v6 }
 0x76a   : > { %v4540_v17 = vpop.f32.mrf.mxu1 }
 0x76b   : > { %v4541_v59 = vadd.f32 %v8537_v46, %v4540_v17 }
 0x76c   : > { %v4880_v35 = vpop.f32.mrf.mxu3 }
 0x76d   : > { %v4615_v15 = vmax.f32 %v4541_v59, 0.0  ;;  %v4982_v62 = vadd.f32 %v4880_v35, %v8459_v28  ;;  %v3793_v53 = vpop.f32.mrf.mxu0  ;;  %v9105_v59 = vld [vmem:[#allocation69_spill] sm:$0xff] }
 0x76e   : > { %v2744_v35 = vadd.f32 %v9105_v59, %v9104_v32 }
 0x76f   : > { %v4650_v41 = vpack.c.bf16 %v4615_v15, %v4614_v34  ;;  %v5050_v54 = vadd.f32 %v8518_v9, %v4982_v62  ;;  %v9106_v34 = vld [vmem:[#allocation7_spill] sm:$0xff] }
 0x770   : > { %v9107_v15 = vld [vmem:[#allocation71_spill] sm:$0xff] }
 0x771   : > { %v6029_v42 = vpack.c.bf16 %v5050_v54, %v5049_v31  ;;  %5896 = vmatmul.msk.bf16.gmra.mxu3 %vm2238_vm5, %v4650_v41  ;;  %v2746_v62 = vadd.f32 %v9107_v15, %v9106_v34  ;;  %v3880_v31 = vadd.f32 %v3786_v5, %v2744_v35 }
 0x772   : > { %v4543_v8 = vpop.f32.mrf.mxu1 }
 0x773   : > { %6109 = vst [vmem:[%s8528_s16 + $0x98] sm:$0xff] %v6029_v42   ;;  %v4544_v28 = vadd.f32 %v8537_v46, %v4543_v8  ;;  %v3881_v42 = vadd.f32 %v3788_v49, %v2746_v62 }
 0x774   : > { %v4883_v14 = vpop.f32.mrf.mxu3 }
 0x775   : > { %v4983_v38 = vadd.f32 %v4883_v14, %v3876_v40  ;;  %v4616_v18 = vmax.f32 %v4544_v28, 0.0  ;;  %v3796_v47 = vpop.f32.mrf.mxu0 }
 0x777   : > { %v5051_v39 = vadd.f32 %v8518_v9, %v4983_v38  ;;  %v9109_v38 = vld [vmem:[#allocation73_spill] sm:$0xff] }
 0x77a   : > { %v4545_v50 = vpop.f32.mrf.mxu1 }
 0x77b   : > { %v4546_v3 = vadd.f32 %v8537_v46, %v4545_v50 }
 0x77c   : > { %v4885_v24 = vpop.f32.mrf.mxu3 }
 0x77d   : > { %v4617_v4 = vmax.f32 %v4546_v3, 0.0  ;;  %v4984_v1 = vadd.f32 %v4885_v24, %v3877_v27  ;;  %v3798_v56 = vpop.f32.mrf.mxu0  ;;  %v9108_v27 = vld [vmem:[#allocation8_spill] sm:$0xff]  ;;  %v9110_v3 = vld [vmem:[#allocation6_spill] sm:$0xff]  ;;  %v9111_v24 = vld [vmem:[#allocation75_spill] sm:$0xff] }
 0x77f   : > { %v4651_v22 = vpack.c.bf16 %v4617_v4, %v4616_v18  ;;  %v5052_v58 = vadd.f32 %v8518_v9, %v4984_v1  ;;  %v2751_v18 = vadd.f32 %v9111_v24, %v9110_v3  ;;  %v9124_v24 = vld [vmem:[#allocation59_spill] sm:$0xff] }
 0x781   : > { %v6034_v12 = vpack.c.bf16 %v5052_v58, %v5051_v39  ;;  %5897 = vmatmul.msk.bf16.gmra.mxu3 %vm2238_vm5, %v4651_v22  ;;  %v3883_v1 = vadd.f32 %v3793_v53, %v2751_v18  ;;  %v9125_v18 = vld [vmem:[#allocation20_spill] sm:$0xff] }
 0x782   : > { %v4548_v33 = vpop.f32.mrf.mxu1 }
 0x783   : > { %6110 = vst [vmem:[%s8528_s16 + $0xa0] sm:$0xff] %v6034_v12   ;;  %v4549_v57 = vadd.f32 %v8537_v46, %v4548_v33 }
 0x784   : > { %v4888_v20 = vpop.f32.mrf.mxu3 }
 0x785   : > { %v4985_v36 = vadd.f32 %v4888_v20, %v3878_v26  ;;  %v4618_v25 = vmax.f32 %v4549_v57, 0.0  ;;  %v3801_v49 = vpop.f32.mrf.mxu0  ;;  %v9115_v26 = vld [vmem:[#allocation78_spill] sm:$0xff] }
 0x786   : > { %v2756_v57 = vadd.f32 %v9115_v26, %v9114_v60 }
 0x787   : > { %v5053_v43 = vadd.f32 %v8518_v9, %v4985_v36 }
 0x78a   : > { %v4550_v21 = vpop.f32.mrf.mxu1 }
 0x78b   : > { %v4551_v19 = vadd.f32 %v8537_v46, %v4550_v21  ;;  %v3885_v21 = vadd.f32 %v3798_v56, %v2756_v57  ;;  %v9128_v57 = vld [vmem:[#allocation62_spill] sm:$0xff] }
 0x78c   : > { %v4890_v37 = vpop.f32.mrf.mxu3 }
 0x78d   : > { %v4619_v16 = vmax.f32 %v4551_v19, 0.0  ;;  %v4986_v44 = vadd.f32 %v4890_v37, %v3879_v63  ;;  %v3803_v20 = vpop.f32.mrf.mxu0 }
 0x78f   : > { %v4652_v52 = vpack.c.bf16 %v4619_v16, %v4618_v25  ;;  %v5054_v23 = vadd.f32 %v8518_v9, %v4986_v44 }
 0x791   : > { %v6039_v10 = vpack.c.bf16 %v5054_v23, %v5053_v43  ;;  %5898 = vmatmul.msk.bf16.gmra.mxu3 %vm2238_vm5, %v4652_v52  ;;  %v9116_v52 = vld [vmem:[#allocation9_spill] sm:$0xff]  ;;  %v9117_v23 = vld [vmem:[#allocation79_spill] sm:$0xff] }
 0x792   : > { %v4553_v17 = vpop.f32.mrf.mxu1 }
 0x793   : > { %6111 = vst [vmem:[%s8528_s16 + $0xa8] sm:$0xff] %v6039_v10   ;;  %v4554_v41 = vadd.f32 %v8537_v46, %v4553_v17  ;;  %v2759_v10 = vadd.f32 %v9117_v23, %v9116_v52  ;;  %v9118_v17 = vld [vmem:[#allocation13_spill] sm:$0xff] }
 0x794   : > { %v4893_v30 = vpop.f32.mrf.mxu3 }
 0x795   : > { %v4987_v8 = vadd.f32 %v4893_v30, %v3880_v31  ;;  %v4620_v6 = vmax.f32 %v4554_v41, 0.0  ;;  %v3806_v53 = vpop.f32.mrf.mxu0  ;;  %v9119_v30 = vld [vmem:[#allocation39_spill] sm:$0xff]  ;;  %v3886_v32 = vadd.f32 %v3801_v49, %v2759_v10 }
 0x797   : > { %v5055_v13 = vadd.f32 %v8518_v9, %v4987_v8  ;;  %v9120_v8 = vld [vmem:[#allocation15_spill] sm:$0xff] }
 0x79a   : > { %v4555_v54 = vpop.f32.mrf.mxu1 }
 0x79b   : > { %v4556_v14 = vadd.f32 %v8537_v46, %v4555_v54  ;;  %v2749_v46 = vadd.f32 %v9109_v38, %v9108_v27 }
 0x79c   : > { %v4895_v7 = vpop.f32.mrf.mxu3 }
 0x79d   : > { %v4621_v29 = vmax.f32 %v4556_v14, 0.0  ;;  %v4988_v51 = vadd.f32 %v4895_v7, %v3881_v42  ;;  %v3882_v4 = vadd.f32 %v3791_v11, %v2749_v46  ;;  %v3884_v11 = vadd.f32 %v3796_v47, %v2754_v45  ;;  %v3808_v44 = vpop.f32.mrf.mxu0  ;;  %v9121_v14 = vld [vmem:[#allocation16_spill] sm:$0xff] }
 0x79e   : > { %v2761_v47 = vadd.f32 %v9119_v30, %v9118_v17  ;;  %v2764_v56 = vadd.f32 %v9121_v14, %v9120_v8  ;;  %v9132_v30 = vld [vmem:[#allocation66_spill] sm:$0xff] }
 0x79f   : > { %v4653_v40 = vpack.c.bf16 %v4621_v29, %v4620_v6  ;;  %v5056_v28 = vadd.f32 %v8518_v9, %v4988_v51  ;;  %v9122_v6 = vld [vmem:[#allocation12_spill] sm:$0xff]  ;;  %v9123_v29 = vld [vmem:[#allocation18_spill] sm:$0xff] }
 0x7a0   : > { %v3887_v59 = vadd.f32 %v3803_v20, %v2761_v47  ;;  %v2766_v51 = vadd.f32 %v9123_v29, %v9122_v6  ;;  %v2779_v47 = vadd.f32 %v8186_v2, %v9132_v30  ;;  %v9135_v2 = vld [vmem:[#allocation70_spill] sm:$0xff]  ;;  %v9136_v6 = vld [vmem:[#allocation49_spill] sm:$0xff] }
 0x7a1   : > { %v6044_v50 = vpack.c.bf16 %v5056_v28, %v5055_v13  ;;  %5899 = vmatmul.msk.bf16.gmra.mxu3 %vm2238_vm5, %v4653_v40  ;;  %v3888_v13 = vadd.f32 %v3806_v53, %v2764_v56  ;;  %v2784_v29 = vadd.f32 %v9136_v6, %v9135_v2 }
 0x7a2   : > { %v3889_v40 = vadd.f32 %v3808_v44, %v2766_v51  ;;  %v9137_v51 = vld [vmem:[#allocation72_spill] sm:$0xff] }
 0x7a3   : > { %6112 = vst [vmem:[%s8528_s16 + $0xb0] sm:$0xff] %v6044_v50  }
 0x7a4   : > { %v4898_v5 = vpop.f32.mrf.mxu3 }
 0x7a5   : > { %v4989_v39 = vadd.f32 %v4898_v5, %v3882_v4  ;;  %v3811_v62 = vpop.f32.mrf.mxu0  ;;  %v2769_v4 = vadd.f32 %v9125_v18, %v9124_v24 }
 0x7a7   : > { %v5057_v12 = vadd.f32 %v8518_v9, %v4989_v39  ;;  %v9127_v39 = vld [vmem:[#allocation45_spill] sm:$0xff] }
 0x7ac   : > { %v4900_v22 = vpop.f32.mrf.mxu3 }
 0x7ad   : > { %v4990_v58 = vadd.f32 %v4900_v22, %v3883_v1  ;;  %v3813_v7 = vpop.f32.mrf.mxu0  ;;  %v9126_v1 = vld [vmem:[#allocation60_spill] sm:$0xff] }
 0x7ae   : > { %v2771_v22 = vadd.f32 %v9127_v39, %v9126_v1  ;;  %v9140_v1 = vld [vmem:[#allocation33_spill] sm:$0xff] }
 0x7af   : > { %v5058_v33 = vadd.f32 %v8518_v9, %v4990_v58  ;;  %v3890_v58 = vadd.f32 %v3811_v62, %v2769_v4  ;;  %v9139_v4 = vld [vmem:[#allocation74_spill] sm:$0xff] }
 0x7b0   : > { %v2789_v39 = vadd.f32 %v9140_v1, %v9139_v4 }
 0x7b1   : > { %v6049_v61 = vpack.c.bf16 %v5058_v33, %v5057_v12  ;;  %v3891_v12 = vadd.f32 %v3813_v7, %v2771_v22 }
 0x7b3   : > { %6113 = vst [vmem:[%s8528_s16 + $0xb8] sm:$0xff] %v6049_v61  }
 0x7b4   : > { %v4903_v55 = vpop.f32.mrf.mxu3 }
 0x7b5   : > { %v4991_v63 = vadd.f32 %v4903_v55, %v3884_v11  ;;  %v3816_v46 = vpop.f32.mrf.mxu0  ;;  %v9129_v11 = vld [vmem:[#allocation22_spill] sm:$0xff] }
 0x7b6   : > { %v2774_v53 = vadd.f32 %v9129_v11, %v9128_v57 }
 0x7b7   : > { %v5059_v37 = vadd.f32 %v8518_v9, %v4991_v63  ;;  %v9131_v63 = vld [vmem:[#allocation47_spill] sm:$0xff] }
 0x7bc   : > { %v4905_v36 = vpop.f32.mrf.mxu3 }
 0x7bd   : > { %v4992_v19 = vadd.f32 %v4905_v36, %v3885_v21  ;;  %v3818_v20 = vpop.f32.mrf.mxu0  ;;  %v9130_v21 = vld [vmem:[#allocation64_spill] sm:$0xff] }
 0x7be   : > { %v2776_v36 = vadd.f32 %v9131_v63, %v9130_v21 }
 0x7bf   : > { %v5060_v25 = vadd.f32 %v8518_v9, %v4992_v19  ;;  %v8785_v9 = vld [vmem:[%s8872_s6] ss:$0 sm:$0xff]  ;;  %v3892_v19 = vadd.f32 %v3816_v46, %v2774_v53 }
 0x7c1   : > { %v6054_v16 = vpack.c.bf16 %v5060_v25, %v5059_v37  ;;  %v3893_v37 = vadd.f32 %v3818_v20, %v2776_v36 }
 0x7c3   : > { %6114 = vst [vmem:[%s8528_s16 + $0xc0] sm:$0xff] %v6054_v16  }
 0x7c4   : > { %v4908_v43 = vpop.f32.mrf.mxu3 }
 0x7c5   : > { %v4993_v35 = vadd.f32 %v4908_v43, %v3886_v32  ;;  %v3821_v26 = vpop.f32.mrf.mxu0  ;;  %v9133_v32 = vld [vmem:[#allocation68_spill] sm:$0xff] }
 0x7c7   : > { %v5061_v31 = vadd.f32 %v8785_v9, %v4993_v35 }
 0x7cc   : > { %v4910_v34 = vpop.f32.mrf.mxu3 }
 0x7cd   : > { %v4994_v15 = vadd.f32 %v4910_v34, %v3887_v59  ;;  %v3823_v23 = vpop.f32.mrf.mxu0  ;;  %v9134_v59 = vld [vmem:[#allocation32_spill] sm:$0xff]  ;;  %v3894_v34 = vadd.f32 %v3821_v26, %v2779_v47 }
 0x7ce   : > { %v2781_v35 = vadd.f32 %v9134_v59, %v9133_v32 }
 0x7cf   : > { %v5062_v41 = vadd.f32 %v8785_v9, %v4994_v15 }
 0x7d0   : > { %v3895_v62 = vadd.f32 %v3823_v23, %v2781_v35 }
 0x7d1   : > { %v6059_v54 = vpack.c.bf16 %v5062_v41, %v5061_v31 }
 0x7d3   : > { %6115 = vst [vmem:[%s8528_s16 + $0xc8] sm:$0xff] %v6059_v54  }
 0x7d4   : > { %v4913_v42 = vpop.f32.mrf.mxu3 }
 0x7d5   : > { %v4995_v28 = vadd.f32 %v4913_v42, %v3888_v13  ;;  %v3826_v15 = vpop.f32.mrf.mxu0  ;;  %v9138_v13 = vld [vmem:[#allocation24_spill] sm:$0xff] }
 0x7d7   : > { %v5063_v49 = vadd.f32 %v8785_v9, %v4995_v28  ;;  %v3896_v28 = vadd.f32 %v3826_v15, %v2784_v29 }
 0x7dc   : > { %v4915_v50 = vpop.f32.mrf.mxu3 }
 0x7dd   : > { %v4996_v5 = vadd.f32 %v4915_v50, %v3889_v40  ;;  %v3828_v56 = vpop.f32.mrf.mxu0  ;;  %v2786_v40 = vadd.f32 %v9138_v13, %v9137_v51 }
 0x7df   : > { %v5064_v27 = vadd.f32 %v8785_v9, %v4996_v5  ;;  %v3897_v50 = vadd.f32 %v3828_v56, %v2786_v40 }
 0x7e1   : > { %v6064_v38 = vpack.c.bf16 %v5064_v27, %v5063_v49 }
 0x7e3   : > { %6116 = vst [vmem:[%s8528_s16 + $0xd0] sm:$0xff] %v6064_v38  }
 0x7e4   : > { %v4918_v3 = vpop.f32.mrf.mxu3 }
 0x7e5   : > { %v4997_v33 = vadd.f32 %v4918_v3, %v3890_v58  ;;  %v3831_v38 = vpop.f32.mrf.mxu0  ;;  %v9141_v58 = vld [vmem:[#allocation76_spill] sm:$0xff] }
 0x7e6   : > { %v3898_v20 = vadd.f32 %v3831_v38, %v2789_v39 }
 0x7e7   : > { %v5065_v0 = vadd.f32 %v8785_v9, %v4997_v33 }
 0x7ec   : > { %v4920_v61 = vpop.f32.mrf.mxu3 }
 0x7ed   : > { %v4998_v55 = vadd.f32 %v4920_v61, %v3891_v12  ;;  %v3833_v22 = vpop.f32.mrf.mxu0  ;;  %v9142_v12 = vld [vmem:[#allocation26_spill] sm:$0xff] }
 0x7ee   : > { %v2791_v33 = vadd.f32 %v9142_v12, %v9141_v58 }
 0x7ef   : > { %v5066_v48 = vadd.f32 %v8785_v9, %v4998_v55 }
 0x7f0   : > { %v3899_v61 = vadd.f32 %v3833_v22, %v2791_v33 }
 0x7f1   : > { %v6069_v45 = vpack.c.bf16 %v5066_v48, %v5065_v0 }
 0x7f3   : > { %6117 = vst [vmem:[%s8528_s16 + $0xd8] sm:$0xff] %v6069_v45  }
 0x7f4   : > { %v4923_v60 = vpop.f32.mrf.mxu3 }
 0x7f5   : > { %v4999_v25 = vadd.f32 %v4923_v60, %v3892_v19 }
 0x7f7   : > { %v5067_v43 = vadd.f32 %v8785_v9, %v4999_v25 }
 0x7fc   : > { %v4925_v16 = vpop.f32.mrf.mxu3 }
 0x7fd   : > { %v5000_v44 = vadd.f32 %v4925_v16, %v3893_v37 }
 0x7ff   : > { %v5068_v52 = vadd.f32 %v8785_v9, %v5000_v44 }
 0x801   : > { %v6074_v10 = vpack.c.bf16 %v5068_v52, %v5067_v43 }
 0x803   : > { %6118 = vst [vmem:[%s8528_s16 + $0xe0] sm:$0xff] %v6074_v10  }
 0x804   : > { %v4928_v17 = vpop.f32.mrf.mxu3 }
 0x805   : > { %v5001_v31 = vadd.f32 %v4928_v17, %v3894_v34 }
 0x807   : > { %v5069_v42 = vadd.f32 %v8785_v9, %v5001_v31 }
 0x80c   : > { %v4930_v41 = vpop.f32.mrf.mxu3 }
 0x80d   : > { %v5002_v54 = vadd.f32 %v4930_v41, %v3895_v62 }
 0x80f   : > { %v5070_v8 = vadd.f32 %v8785_v9, %v5002_v54 }
 0x811   : > { %v6079_v14 = vpack.c.bf16 %v5070_v8, %v5069_v42 }
 0x813   : > { %6119 = vst [vmem:[%s8528_s16 + $0xe8] sm:$0xff] %v6079_v14  }
 0x814   : > { %v4933_v7 = vpop.f32.mrf.mxu3 }
 0x815   : > { %v5003_v5 = vadd.f32 %v4933_v7, %v3896_v28 }
 0x817   : > { %v5071_v46 = vadd.f32 %v8785_v9, %v5003_v5 }
 0x81c   : > { %v4935_v49 = vpop.f32.mrf.mxu3 }
 0x81d   : > { %v5004_v27 = vadd.f32 %v4935_v49, %v3897_v50 }
 0x81f   : > { %v5072_v3 = vadd.f32 %v8785_v9, %v5004_v27 }
 0x821   : > { %v6084_v24 = vpack.c.bf16 %v5072_v3, %v5071_v46 }
 0x823   : > { %6120 = vst [vmem:[%s8528_s16 + $0xf0] sm:$0xff] %v6084_v24  }
 0x824   : > { %v4938_v18 = vpop.f32.mrf.mxu3 }
 0x825   : > { %v5005_v55 = vadd.f32 %v4938_v18, %v3898_v20 }
 0x827   : > { %v5073_v45 = vadd.f32 %v8785_v9, %v5005_v55 }
 0x82c   : > { %v4940_v0 = vpop.f32.mrf.mxu3 }
 0x82d   : > { %v5006_v48 = vadd.f32 %v4940_v0, %v3899_v61 }
 0x82f   : > { %v5074_v60 = vadd.f32 %v8785_v9, %v5006_v48 }
 0x831   : > { %v6089_v26 = vpack.c.bf16 %v5074_v60, %v5073_v45 }
 0x833   : > { %6121 = vst [vmem:[%s8528_s16 + $0xf8] sm:$0xff] %v6089_v26  }
 0x834   : > { %6207 = shalt.err (!%p6204_p3)
}
 0x835   : > { %s6248_s21 = smov 64   ;;  %s6249_s16 = smov 4  }
 0x836   : > { %6122 = dma.vmem_to_hbm [thread:$0]  (%p6328_p5), %s5217_s9, 4096, %s5219_s13, %s5204_s28, %s6248_s21, %s6248_s21, %s6249_s16  }
 0x837 PF: > { %p6128_p4 = scmp.ge.s32.totalorder %s6242_s27, 2  ;;  %s5233_s23 = sand.u32 1, %s6230_s24  }
 0x838   : > { %s5234_s29 = scalar_lea.sflag [#allocation3], %s5233_s23 }
 0x839   : > { %p6125_p7 = pnand %p6128_p4, %p6332_p6 }
 0x83b   : > { %p6126_p8 = pneg %p6125_p7 }
 0x83d   : > { %6225 = dma.done.wait (%p6126_p8), %s5234_s29, 4096  }
 0x83e   : > { %6227 = vsyncadd (%p6126_p8), %s5234_s29, 4294963200  ;;  %p17_p9 = scmp.ge.s32.totalorder %s6315_s30, 6   ;;  %s9143_s24 = smov %s6234_s25 }
 0x83f   : > { %s9144_s25 = smov %s6238_s26  ;;  %s9145_s26 = smov %s6326_s10 }
 0x840   : > { %s9146_s27 = smov %s6315_s30  ;;  %19 = sbr.rel (!%p17_p9) target bundleno = 3 (0x3), region = 83 }
 0x845   :  { %5240 = vsyncpa [#allocation3], 1 }
 0x846   :  { %5242 = vsyncpa [#allocation3 + $0x1], 1 }

</bundles_post_ra>
